<compile_context>
chip_gen: v6e
topology: v6e:2x2x1
jax: 0.10.0
libtpu: 0.0.40
codegen_flags: <defaults>
</compile_context>

<pallas_src>
import functools
import math

import jax
import jax.numpy as jnp
import numpy as np
from jax import lax
from jax.experimental import pallas as pl
from jax.experimental.pallas import tpu as pltpu

EPS = 1e-6  # Norm eps (classic "Transformer from scratch" Norm module)

# batched dimension-number shorthands (batch dim 0); both patterns are proven on Mosaic
_NN = (((2,), (1,)), ((0,), (0,)))   # (b,m,k) x (b,k,n) -> (b,m,n)
_NT = (((2,), (2,)), ((0,), (0,)))   # (b,m,k) x (b,n,k) -> (b,m,n)


def _bdot(a, b, dims):
    return lax.dot_general(a, b, dimension_numbers=dims,
                           preferred_element_type=jnp.float32)


def _layernorm(x, alpha, bias, eps):
    # torch Norm: alpha * (x - mean) / (std + eps) + bias, torch.std unbiased (ddof=1)
    e = x.shape[-1]
    mean = jnp.mean(x, axis=-1, keepdims=True)
    var = jnp.sum((x - mean) ** 2, axis=-1, keepdims=True) / (e - 1)
    inv = 1.0 / (jnp.sqrt(var) + eps)        # exact divide on a tiny column (reviewer concern)
    return alpha * (x - mean) * inv + bias


def _softmax(x):
    m = jnp.max(x, axis=-1, keepdims=True)   # max-subtraction keeps masked rows finite
    p = jnp.exp(x - m)
    return p * pl.reciprocal(jnp.sum(p, axis=-1, keepdims=True), approx=True)  # EUP


def encoder_layer_kernel(
    x_ref, mask_ref,
    n1a_ref, n1b_ref,
    wqkv_ref, bqkv_ref, weT_ref, beT_ref, wfT_ref, bfT_ref, wo_ref, bo_ref,
    n2a_ref, n2b_ref,
    w1_ref, b1_ref, w2_ref, b2_ref,
    o_ref,
    *, num_heads, dim_k, linear_dim, seq_len, batch_block, eps,
):
    H, dk, L, S, bt = num_heads, dim_k, linear_dim, seq_len, batch_block
    HD = H * dk
    bf16 = jnp.bfloat16
    use_linear = L < S               # static branch; same test as `e.shape[-1] < k.shape[-2]`

    x = x_ref[...]                   # (bt*S, E) f32
    E = x.shape[-1]

    # ---- sub-layer 1: norm_1 over the whole batch block ----
    x2 = _layernorm(x, n1a_ref[...], n1b_ref[...], eps).astype(bf16)

    # ---- fused q|k|v projection: ONE slab-wide MXU matmul (M=bt*S, N=3*H*dk, K=E) ----
    # 1/sqrt(dk) is already folded into the q columns/bias in the wrapper.
    qkv = jnp.dot(x2, wqkv_ref[...], preferred_element_type=jnp.float32) + bqkv_ref[...]
    qkv3 = qkv.reshape(bt, S, 3 * HD)        # leading-dim split only (S % 8 == 0)
    x2_3 = x2.reshape(bt, S, E)

    mask_add = mask_ref[...]                 # (bt, 1, S) additive mask (0 / -1e9)

    head_outs = []
    for h in range(H):                       # static, small loop over heads
        q_h = qkv3[:, :, h * dk:(h + 1) * dk].astype(bf16)                # (bt, S, dk)
        k_h = qkv3[:, :, HD + h * dk:HD + (h + 1) * dk].astype(bf16)
        v_h = qkv3[:, :, 2 * HD + h * dk:2 * HD + (h + 1) * dk].astype(bf16)

        if use_linear:
            # e/f projections produced directly transposed: (bt, L, S).  Broadcasting the
            # small (L, E) per-head weight over bt keeps every contraction in standard
            # (NN / rhs-transposed) form -- no activation transposes needed.
            weT_h = jnp.broadcast_to(weT_ref[h][None], (bt, L, E))
            wfT_h = jnp.broadcast_to(wfT_ref[h][None], (bt, L, E))
            eT = (_bdot(weT_h, x2_3, _NT) + beT_ref[h]).astype(bf16)      # (bt, L, S)
            fT = (_bdot(wfT_h, x2_3, _NT) + bfT_ref[h]).astype(bf16)
            kp = _bdot(eT, k_h, _NN).astype(bf16)                         # (bt, L, dk) = e^T k
            vp = _bdot(fT, v_h, _NN).astype(bf16)                         # (bt, L, dk) = f^T v
            sc = _bdot(q_h, kp, _NT) + mask_add[:, :, :L]                 # (bt, S, L)
            p = _softmax(sc).astype(bf16)
            head_outs.append(_bdot(p, vp, _NN))                           # (bt, S, dk) f32
        else:
            sc = _bdot(q_h, k_h, _NT) + mask_add                          # (bt, S, S)
            p = _softmax(sc).astype(bf16)
            head_outs.append(_bdot(p, v_h, _NN))                          # (bt, S, dk) f32

    # lane-concat head outputs once -> single out-projection matmul with K = H*dk
    attn = jnp.concatenate(head_outs, axis=-1) if H > 1 else head_outs[0]  # (bt, S, H*dk)
    attn = attn.reshape(bt * S, HD).astype(bf16)
    attn_out = jnp.dot(attn, wo_ref[...], preferred_element_type=jnp.float32) + bo_ref[...]

    # dropout_1 is identity (eval mode)
    # TODO(synk): stochastic dropout not implemented (deterministic forward).
    xr = x + attn_out                                                      # (bt*S, E)

    # ---- sub-layer 2: norm_2 -> FeedForward -> residual ----
    x2b = _layernorm(xr, n2a_ref[...], n2b_ref[...], eps).astype(bf16)
    h1 = jnp.maximum(
        jnp.dot(x2b, w1_ref[...], preferred_element_type=jnp.float32) + b1_ref[...], 0.0)
    ffo = jnp.dot(h1.astype(bf16), w2_ref[...],
                  preferred_element_type=jnp.float32) + b2_ref[...]
    o_ref[...] = (xr + ffo).astype(o_ref.dtype)


def _prep_weights(params, *, num_heads, linear_dim, emb_dim):
    """Wrapper-side (plain JAX) weight packing: fused qkv, composed e/f, bf16 casts."""
    H, L, E = num_heads, linear_dim, emb_dim
    dk = params["wq"].shape[1] // H
    hi = jax.lax.Precision.HIGHEST
    bf16 = jnp.bfloat16
    inv_sqrt_dk = 1.0 / math.sqrt(dk)

    # fused q|k|v weight (E, 3*H*dk) with 1/sqrt(dk) folded into the q columns (+ bias)
    wqkv = jnp.concatenate(
        [params["wq"] * inv_sqrt_dk, params["wk"], params["wv"]], axis=1).astype(bf16)
    bqkv = jnp.concatenate(
        [params["bq"] * inv_sqrt_dk, params["bk"], params["bv"]], axis=1)          # f32

    # pre-compose e/f with the k/v projections:  e = x2 @ (wk@we) + (bk@we + be)
    we_eff = jnp.matmul(params["wk"], params["we"], precision=hi)                  # (E, H*L)
    be_eff = jnp.matmul(params["bk"], params["we"], precision=hi) + params["be"]   # (1, H*L)
    wf_eff = jnp.matmul(params["wv"], params["wf"], precision=hi)
    bf_eff = jnp.matmul(params["bv"], params["wf"], precision=hi) + params["bf"]
    weT = jnp.transpose(we_eff.reshape(E, H, L), (1, 2, 0)).astype(bf16)           # (H, L, E)
    wfT = jnp.transpose(wf_eff.reshape(E, H, L), (1, 2, 0)).astype(bf16)
    beT = be_eff.reshape(H, L)[:, :, None]                                         # (H, L, 1)
    bfT = bf_eff.reshape(H, L)[:, :, None]

    return [
        params["n1a"], params["n1b"],
        wqkv, bqkv, weT, beT, wfT, bfT,
        params["wo"].astype(bf16), params["bo"],
        params["n2a"], params["n2b"],
        params["w1"].astype(bf16), params["b1"],
        params["w2"].astype(bf16), params["b2"],
    ]


def _pick_batch_block(B, S, target_rows=512):
    """Largest divisor of B with bt*S <= target_rows while keeping grid = B//bt >= 2 when
    possible, so the `parallel` grid axis can shard across both v7x TensorCores."""
    best = 1
    for d in range(1, B + 1):
        if B % d:
            continue
        if d > 1 and d * S > target_rows:
            continue
        if B >= 2 and B // d < 2:
            continue
        best = d
    return best


def _estimate_vmem_bytes(weights, bt, S, E, H, dk, L, ff):
    """Rough upper bound on the kernel's VMEM working set (with margin), capped at 64 MiB."""
    wbytes = sum(int(np.prod(w.shape)) * jnp.dtype(w.dtype).itemsize for w in weights)
    rows = bt * S
    io_blocks = 2 * rows * E * 4 + bt * S * 4                 # x/out blocks + mask block
    inter = rows * (3 * H * dk + 4 * E + ff) * 4              # qkv / norm / attn / ffn slabs
    inter += bt * (2 * L * S + 2 * L * dk + S * max(L, S)) * 4  # per-head transients
    est = 2 * wbytes + 2 * io_blocks + inter
    return int(min(64 * 2 ** 20, max(16 * 2 ** 20, 2 * est)))


def linformer_encoder_layer(x, mask, params, *, num_heads, linear_dim,
                            batch_block=None, out_dtype=None, target_rows=512):
    B, S, E = x.shape
    H = num_heads
    dk = params["wq"].shape[1] // H
    L = linear_dim
    ff = params["w1"].shape[1]
    assert S % 8 == 0, "seq_len must be a multiple of 8 (TPU sublane tile)"

    bt = batch_block if batch_block is not None else _pick_batch_block(B, S, target_rows)
    assert B % bt == 0

    weights = _prep_weights(params, num_heads=H, linear_dim=L, emb_dim=E)
    # additive mask precomputed once on the host side: 0 where kept, -1e9 where masked
    mask_add = jnp.where(mask == 0.0, -1e9, 0.0).astype(jnp.float32)       # (B, 1, S)
    xf = x.reshape(B * S, E)                                               # (bt*S, E) slabs
    out_dtype = x.dtype if out_dtype is None else out_dtype
    vmem_limit = _estimate_vmem_bytes(weights, bt, S, E, H, dk, L, ff)

    kernel = functools.partial(
        encoder_layer_kernel,
        num_heads=H, dim_k=dk, linear_dim=L, seq_len=S, batch_block=bt, eps=EPS)

    def const_spec(shape, single_buffer):
        nd = len(shape)
        idx = lambda i, _nd=nd: (0,) * _nd
        if single_buffer and hasattr(pl, "Buffered"):
            try:
                # weights never change across grid steps -> single-buffer them (halves their
                # VMEM footprint; matters on v7x's 64 MiB VMEM at realistic sizes).
                return pl.BlockSpec(shape, idx, pipeline_mode=pl.Buffered(1))
            except TypeError:
                pass
        return pl.BlockSpec(shape, idx)

    def run(single_buffer):
        in_specs = [
            pl.BlockSpec((bt * S, E), lambda i: (i, 0)),
            pl.BlockSpec((bt, 1, S), lambda i: (i, 0, 0)),
        ] + [const_spec(w.shape, single_buffer) for w in weights]
        return pl.pallas_call(
            kernel,
            out_shape=jax.ShapeDtypeStruct((B * S, E), out_dtype),
            grid=(B // bt,),
            in_specs=in_specs,
            out_specs=pl.BlockSpec((bt * S, E), lambda i: (i, 0)),
            compiler_params=pltpu.CompilerParams(
                dimension_semantics=("parallel",),
                vmem_limit_bytes=vmem_limit),
        )(xf, mask_add, *weights)

    try:
        out = run(single_buffer=True)
    except Exception:
        # pipeline_mode / Buffered(1) not supported by this JAX version -> default buffering
        out = run(single_buffer=False)
    return out.reshape(B, S, E)


def init_params(key, emb_dim, linear_dim, heads, ff_dim):
    dim_k = emb_dim // heads
    keys = jax.random.split(key, 8)

    def lin(k, fan_in, fan_out):
        bound = 1.0 / math.sqrt(fan_in)
        kw, kb = jax.random.split(k)
        w = jax.random.uniform(kw, (fan_in, fan_out), jnp.float32, -bound, bound)
        b = jax.random.uniform(kb, (1, fan_out), jnp.float32, -bound, bound)
        return w, b

    p = {}
    p["n1a"] = jnp.ones((1, emb_dim), jnp.float32)
    p["n1b"] = jnp.zeros((1, emb_dim), jnp.float32)
    p["n2a"] = jnp.ones((1, emb_dim), jnp.float32)
    p["n2b"] = jnp.zeros((1, emb_dim), jnp.float32)
    p["wq"], p["bq"] = lin(keys[0], emb_dim, dim_k * heads)
    p["wk"], p["bk"] = lin(keys[1], emb_dim, dim_k * heads)
    p["wv"], p["bv"] = lin(keys[2], emb_dim, dim_k * heads)
    p["we"], p["be"] = lin(keys[3], emb_dim, linear_dim * heads)
    p["wf"], p["bf"] = lin(keys[4], emb_dim, linear_dim * heads)
    p["wo"], p["bo"] = lin(keys[5], dim_k * heads, emb_dim)
    p["w1"], p["b1"] = lin(keys[6], emb_dim, ff_dim)
    p["w2"], p["b2"] = lin(keys[7], ff_dim, emb_dim)
    return p


def reference(x, mask, p, *, num_heads, linear_dim):
    """Pure-JAX f32 port of the PyTorch forward, for correctness checking."""
    B, S, E = x.shape
    dim_k = E // num_heads
    dot = functools.partial(jnp.matmul, precision=jax.lax.Precision.HIGHEST)

    def norm(xx, a, b):
        mean = xx.mean(-1, keepdims=True)
        var = ((xx - mean) ** 2).sum(-1, keepdims=True) / (E - 1)
        return a * (xx - mean) / (jnp.sqrt(var) + EPS) + b

    x2 = norm(x, p["n1a"], p["n1b"])
    q = dot(x2, p["wq"]) + p["bq"]
    k = dot(x2, p["wk"]) + p["bk"]
    v = dot(x2, p["wv"]) + p["bv"]
    e = dot(k, p["we"]) + p["be"]
    f = dot(v, p["wf"]) + p["bf"]

    def split(t, d):
        return t.reshape(B, S, num_heads, d).transpose(0, 2, 1, 3)

    q, k, v = split(q, dim_k), split(k, dim_k), split(v, dim_k)
    e, f = split(e, linear_dim), split(f, linear_dim)

    if linear_dim < S:
        kproj = dot(jnp.swapaxes(e, -2, -1), k)                              # (B,H,L,dk)
        scores = dot(q, jnp.swapaxes(kproj, -2, -1)) / math.sqrt(dim_k)      # (B,H,S,L)
        m = mask[:, :, :linear_dim][:, None, :, :]
        scores = jnp.where(m == 0, -1e9, scores)
        sp = jax.nn.softmax(scores, axis=-1)
        vproj = dot(jnp.swapaxes(f, -2, -1), v)
        attn = dot(sp, vproj)
    else:
        scores = dot(q, jnp.swapaxes(k, -2, -1)) / math.sqrt(dim_k)
        m = mask[:, None, :, :]
        scores = jnp.where(m == 0, -1e9, scores)
        sp = jax.nn.softmax(scores, axis=-1)
        attn = dot(sp, v)

    concat = attn.transpose(0, 2, 1, 3).reshape(B, S, num_heads * dim_k)
    attn_out = dot(concat, p["wo"]) + p["bo"]
    xr = x + attn_out
    x2b = norm(xr, p["n2a"], p["n2b"])
    h1 = jax.nn.relu(dot(x2b, p["w1"]) + p["b1"])
    ffo = dot(h1, p["w2"]) + p["b2"]
    return xr + ffo


if __name__ == "__main__":
    B, S, E, H, L, FF = 2, 16, 32, 4, 8, 64   # linear_dim L < seq S -> Linformer path
    key = jax.random.PRNGKey(0)
    kx, kp = jax.random.split(key, 2)

    x = jax.random.normal(kx, (B, S, E), jnp.float32)
    # source mask of shape (B, 1, S); zero out a few positions of batch 1
    mask = jnp.ones((B, 1, S), jnp.float32)
    mask = mask.at[1, 0, 3:6].set(0.0)      # falls inside the narrowed window [:L]
    mask = mask.at[1, 0, S - 3:].set(0.0)

    params = init_params(kp, E, L, H, FF)

    out = linformer_encoder_layer(x, mask, params, num_heads=H, linear_dim=L)
    out = jax.block_until_ready(out)

    ref = reference(x, mask, params, num_heads=H, linear_dim=L)
    # bf16 MXU operands vs. f32-HIGHEST reference -> loosened tolerance
    np.testing.assert_allclose(np.asarray(out), np.asarray(ref), rtol=5e-2, atol=5e-2)
    print("KERNEL_OK")
</pallas_src>

<mosaic_0001>
module attributes {stable_mosaic.version = 11 : i64} {
  func.func @encoder_layer_kernel(%arg0: i32, %arg1: memref<16x32xf32, #tpu.memory_space<vmem>>, %arg2: memref<1x1x16xf32, #tpu.memory_space<vmem>>, %arg3: memref<1x32xf32, #tpu.memory_space<vmem>>, %arg4: memref<1x32xf32, #tpu.memory_space<vmem>>, %arg5: memref<32x96xbf16, #tpu.memory_space<vmem>>, %arg6: memref<1x96xf32, #tpu.memory_space<vmem>>, %arg7: memref<4x8x32xbf16, #tpu.memory_space<vmem>>, %arg8: memref<4x8x1xf32, #tpu.memory_space<vmem>>, %arg9: memref<4x8x32xbf16, #tpu.memory_space<vmem>>, %arg10: memref<4x8x1xf32, #tpu.memory_space<vmem>>, %arg11: memref<32x32xbf16, #tpu.memory_space<vmem>>, %arg12: memref<1x32xf32, #tpu.memory_space<vmem>>, %arg13: memref<1x32xf32, #tpu.memory_space<vmem>>, %arg14: memref<1x32xf32, #tpu.memory_space<vmem>>, %arg15: memref<32x64xbf16, #tpu.memory_space<vmem>>, %arg16: memref<1x64xf32, #tpu.memory_space<vmem>>, %arg17: memref<64x32xbf16, #tpu.memory_space<vmem>>, %arg18: memref<1x32xf32, #tpu.memory_space<vmem>>, %arg19: memref<16x32xf32, #tpu.memory_space<vmem>>) attributes {dimension_semantics = [#tpu.dimension_semantics<parallel>], iteration_bounds = array<i64: 2>, scalar_prefetch = 0 : i64, scratch_operands = 0 : i64, tpu.core_type = #tpu.core_type<tc>, window_params = [{transform_indices = @transform_0, window_bounds = array<i64: 16, 32>}, {transform_indices = @transform_1, window_bounds = array<i64: 1, 1, 16>}, {pipeline_mode = #tpu.pipeline_mode<synchronous>, transform_indices = @transform_2, window_bounds = array<i64: 1, 32>}, {pipeline_mode = #tpu.pipeline_mode<synchronous>, transform_indices = @transform_3, window_bounds = array<i64: 1, 32>}, {pipeline_mode = #tpu.pipeline_mode<synchronous>, transform_indices = @transform_4, window_bounds = array<i64: 32, 96>}, {pipeline_mode = #tpu.pipeline_mode<synchronous>, transform_indices = @transform_5, window_bounds = array<i64: 1, 96>}, {pipeline_mode = #tpu.pipeline_mode<synchronous>, transform_indices = @transform_6, window_bounds = array<i64: 4, 8, 32>}, {pipeline_mode = #tpu.pipeline_mode<synchronous>, transform_indices = @transform_7, window_bounds = array<i64: 4, 8, 1>}, {pipeline_mode = #tpu.pipeline_mode<synchronous>, transform_indices = @transform_8, window_bounds = array<i64: 4, 8, 32>}, {pipeline_mode = #tpu.pipeline_mode<synchronous>, transform_indices = @transform_9, window_bounds = array<i64: 4, 8, 1>}, {pipeline_mode = #tpu.pipeline_mode<synchronous>, transform_indices = @transform_10, window_bounds = array<i64: 32, 32>}, {pipeline_mode = #tpu.pipeline_mode<synchronous>, transform_indices = @transform_11, window_bounds = array<i64: 1, 32>}, {pipeline_mode = #tpu.pipeline_mode<synchronous>, transform_indices = @transform_12, window_bounds = array<i64: 1, 32>}, {pipeline_mode = #tpu.pipeline_mode<synchronous>, transform_indices = @transform_13, window_bounds = array<i64: 1, 32>}, {pipeline_mode = #tpu.pipeline_mode<synchronous>, transform_indices = @transform_14, window_bounds = array<i64: 32, 64>}, {pipeline_mode = #tpu.pipeline_mode<synchronous>, transform_indices = @transform_15, window_bounds = array<i64: 1, 64>}, {pipeline_mode = #tpu.pipeline_mode<synchronous>, transform_indices = @transform_16, window_bounds = array<i64: 64, 32>}, {pipeline_mode = #tpu.pipeline_mode<synchronous>, transform_indices = @transform_17, window_bounds = array<i64: 1, 32>}, {transform_indices = @transform_18, window_bounds = array<i64: 16, 32>}]} {
    %c0 = arith.constant 0 : index
    %c0_0 = arith.constant 0 : index
    %0 = vector.load %arg1[%c0, %c0_0] : memref<16x32xf32, #tpu.memory_space<vmem>>, vector<16x32xf32>
    %c0_1 = arith.constant 0 : index
    %c0_2 = arith.constant 0 : index
    %1 = vector.load %arg3[%c0_1, %c0_2] : memref<1x32xf32, #tpu.memory_space<vmem>>, vector<1x32xf32>
    %c0_3 = arith.constant 0 : index
    %c0_4 = arith.constant 0 : index
    %2 = vector.load %arg4[%c0_3, %c0_4] : memref<1x32xf32, #tpu.memory_space<vmem>>, vector<1x32xf32>
    %cst = arith.constant dense<0.000000e+00> : vector<16xf32>
    %3 = vector.multi_reduction <add>, %0, %cst [1] : vector<16x32xf32> to vector<16xf32>
    %4 = vector.shape_cast %3 : vector<16xf32> to vector<16x1xf32>
    %cst_5 = arith.constant 3.200000e+01 : f32
    %5 = vector.broadcast %cst_5 : f32 to vector<16x1xf32>
    %6 = arith.divf %4, %5 : vector<16x1xf32>
    %7 = vector.broadcast %6 : vector<16x1xf32> to vector<16x32xf32>
    %8 = arith.subf %0, %7 : vector<16x32xf32>
    %9 = arith.mulf %8, %8 : vector<16x32xf32>
    %cst_6 = arith.constant dense<0.000000e+00> : vector<16xf32>
    %10 = vector.multi_reduction <add>, %9, %cst_6 [1] : vector<16x32xf32> to vector<16xf32>
    %11 = vector.shape_cast %10 : vector<16xf32> to vector<16x1xf32>
    %cst_7 = arith.constant 3.100000e+01 : f32
    %12 = vector.broadcast %cst_7 : f32 to vector<16x1xf32>
    %13 = arith.divf %11, %12 : vector<16x1xf32>
    %14 = math.sqrt %13 : vector<16x1xf32>
    %cst_8 = arith.constant 9.99999997E-7 : f32
    %15 = vector.broadcast %cst_8 : f32 to vector<16x1xf32>
    %16 = arith.addf %14, %15 : vector<16x1xf32>
    %cst_9 = arith.constant 1.000000e+00 : f32
    %17 = vector.broadcast %cst_9 : f32 to vector<16x1xf32>
    %18 = arith.divf %17, %16 : vector<16x1xf32>
    %19 = vector.broadcast %6 : vector<16x1xf32> to vector<16x32xf32>
    %20 = arith.subf %0, %19 : vector<16x32xf32>
    %21 = vector.broadcast %1 : vector<1x32xf32> to vector<16x32xf32>
    %22 = arith.mulf %21, %20 : vector<16x32xf32>
    %23 = vector.broadcast %18 : vector<16x1xf32> to vector<16x32xf32>
    %24 = arith.mulf %22, %23 : vector<16x32xf32>
    %25 = vector.broadcast %2 : vector<1x32xf32> to vector<16x32xf32>
    %26 = arith.addf %24, %25 : vector<16x32xf32>
    %27 = arith.truncf %26 : vector<16x32xf32> to vector<16x32xbf16>
    %c0_10 = arith.constant 0 : index
    %c0_11 = arith.constant 0 : index
    %28 = vector.load %arg5[%c0_10, %c0_11] : memref<32x96xbf16, #tpu.memory_space<vmem>>, vector<32x96xbf16>
    %cst_12 = arith.constant dense<0.000000e+00> : vector<16x96xf32>
    %29 = tpu.matmul %27, %28, %cst_12 {dimension_numbers = #tpu.dot_dimension_numbers<[1], [0], [0], [1], [0, 0, 1, 1], [], []>} : vector<16x32xbf16>, vector<32x96xbf16>, vector<16x96xf32> -> vector<16x96xf32>
    %c0_13 = arith.constant 0 : index
    %c0_14 = arith.constant 0 : index
    %30 = vector.load %arg6[%c0_13, %c0_14] : memref<1x96xf32, #tpu.memory_space<vmem>>, vector<1x96xf32>
    %31 = vector.broadcast %30 : vector<1x96xf32> to vector<16x96xf32>
    %32 = arith.addf %29, %31 : vector<16x96xf32>
    %33 = vector.shape_cast %32 : vector<16x96xf32> to vector<1x16x96xf32>
    %34 = vector.shape_cast %27 : vector<16x32xbf16> to vector<1x16x32xbf16>
    %c0_15 = arith.constant 0 : index
    %c0_16 = arith.constant 0 : index
    %c0_17 = arith.constant 0 : index
    %35 = vector.load %arg2[%c0_15, %c0_16, %c0_17] : memref<1x1x16xf32, #tpu.memory_space<vmem>>, vector<1x1x16xf32>
    %36 = vector.extract_strided_slice %33 {offsets = [0, 0, 0], sizes = [1, 16, 8], strides = [1, 1, 1]} : vector<1x16x96xf32> to vector<1x16x8xf32>
    %37 = arith.truncf %36 : vector<1x16x8xf32> to vector<1x16x8xbf16>
    %38 = vector.extract_strided_slice %33 {offsets = [0, 0, 32], sizes = [1, 16, 8], strides = [1, 1, 1]} : vector<1x16x96xf32> to vector<1x16x8xf32>
    %39 = arith.truncf %38 : vector<1x16x8xf32> to vector<1x16x8xbf16>
    %40 = vector.extract_strided_slice %33 {offsets = [0, 0, 64], sizes = [1, 16, 8], strides = [1, 1, 1]} : vector<1x16x96xf32> to vector<1x16x8xf32>
    %41 = arith.truncf %40 : vector<1x16x8xf32> to vector<1x16x8xbf16>
    %c0_18 = arith.constant 0 : index
    %c0_19 = arith.constant 0 : index
    %c0_20 = arith.constant 0 : index
    %42 = vector.load %arg7[%c0_18, %c0_19, %c0_20] : memref<4x8x32xbf16, #tpu.memory_space<vmem>>, vector<1x8x32xbf16>
    %43 = vector.shape_cast %42 : vector<1x8x32xbf16> to vector<8x32xbf16>
    %44 = vector.shape_cast %43 : vector<8x32xbf16> to vector<1x8x32xbf16>
    %c0_21 = arith.constant 0 : index
    %c0_22 = arith.constant 0 : index
    %c0_23 = arith.constant 0 : index
    %45 = vector.load %arg9[%c0_21, %c0_22, %c0_23] : memref<4x8x32xbf16, #tpu.memory_space<vmem>>, vector<1x8x32xbf16>
    %46 = vector.shape_cast %45 : vector<1x8x32xbf16> to vector<8x32xbf16>
    %47 = vector.shape_cast %46 : vector<8x32xbf16> to vector<1x8x32xbf16>
    %cst_24 = arith.constant dense<0.000000e+00> : vector<1x8x16xf32>
    %48 = tpu.matmul %44, %34, %cst_24 {dimension_numbers = #tpu.dot_dimension_numbers<[2], [2], [1], [1], [0, 0, 0, 1, 1, 1], [0], [0]>} : vector<1x8x32xbf16>, vector<1x16x32xbf16>, vector<1x8x16xf32> -> vector<1x8x16xf32>
    %c0_25 = arith.constant 0 : index
    %c0_26 = arith.constant 0 : index
    %c0_27 = arith.constant 0 : index
    %49 = vector.load %arg8[%c0_25, %c0_26, %c0_27] : memref<4x8x1xf32, #tpu.memory_space<vmem>>, vector<1x8x1xf32>
    %50 = vector.shape_cast %49 : vector<1x8x1xf32> to vector<8x1xf32>
    %51 = vector.shape_cast %50 : vector<8x1xf32> to vector<1x8x1xf32>
    %52 = vector.broadcast %51 : vector<1x8x1xf32> to vector<1x8x16xf32>
    %53 = arith.addf %48, %52 : vector<1x8x16xf32>
    %54 = arith.truncf %53 : vector<1x8x16xf32> to vector<1x8x16xbf16>
    %cst_28 = arith.constant dense<0.000000e+00> : vector<1x8x16xf32>
    %55 = tpu.matmul %47, %34, %cst_28 {dimension_numbers = #tpu.dot_dimension_numbers<[2], [2], [1], [1], [0, 0, 0, 1, 1, 1], [0], [0]>} : vector<1x8x32xbf16>, vector<1x16x32xbf16>, vector<1x8x16xf32> -> vector<1x8x16xf32>
    %c0_29 = arith.constant 0 : index
    %c0_30 = arith.constant 0 : index
    %c0_31 = arith.constant 0 : index
    %56 = vector.load %arg10[%c0_29, %c0_30, %c0_31] : memref<4x8x1xf32, #tpu.memory_space<vmem>>, vector<1x8x1xf32>
    %57 = vector.shape_cast %56 : vector<1x8x1xf32> to vector<8x1xf32>
    %58 = vector.shape_cast %57 : vector<8x1xf32> to vector<1x8x1xf32>
    %59 = vector.broadcast %58 : vector<1x8x1xf32> to vector<1x8x16xf32>
    %60 = arith.addf %55, %59 : vector<1x8x16xf32>
    %61 = arith.truncf %60 : vector<1x8x16xf32> to vector<1x8x16xbf16>
    %cst_32 = arith.constant dense<0.000000e+00> : vector<1x8x8xf32>
    %62 = tpu.matmul %54, %39, %cst_32 {dimension_numbers = #tpu.dot_dimension_numbers<[2], [1], [1], [2], [0, 0, 0, 1, 1, 2], [0], [0]>} : vector<1x8x16xbf16>, vector<1x16x8xbf16>, vector<1x8x8xf32> -> vector<1x8x8xf32>
    %63 = arith.truncf %62 : vector<1x8x8xf32> to vector<1x8x8xbf16>
    %cst_33 = arith.constant dense<0.000000e+00> : vector<1x8x8xf32>
    %64 = tpu.matmul %61, %41, %cst_33 {dimension_numbers = #tpu.dot_dimension_numbers<[2], [1], [1], [2], [0, 0, 0, 1, 1, 2], [0], [0]>} : vector<1x8x16xbf16>, vector<1x16x8xbf16>, vector<1x8x8xf32> -> vector<1x8x8xf32>
    %65 = arith.truncf %64 : vector<1x8x8xf32> to vector<1x8x8xbf16>
    %cst_34 = arith.constant dense<0.000000e+00> : vector<1x16x8xf32>
    %66 = tpu.matmul %37, %63, %cst_34 {dimension_numbers = #tpu.dot_dimension_numbers<[2], [2], [1], [1], [0, 0, 0, 1, 1, 1], [0], [0]>} : vector<1x16x8xbf16>, vector<1x8x8xbf16>, vector<1x16x8xf32> -> vector<1x16x8xf32>
    %67 = vector.extract_strided_slice %35 {offsets = [0, 0, 0], sizes = [1, 1, 8], strides = [1, 1, 1]} : vector<1x1x16xf32> to vector<1x1x8xf32>
    %68 = vector.broadcast %67 : vector<1x1x8xf32> to vector<1x16x8xf32>
    %69 = arith.addf %66, %68 : vector<1x16x8xf32>
    %cst_35 = arith.constant dense<0xFF800000> : vector<1x16xf32>
    %70 = vector.multi_reduction <maximumf>, %69, %cst_35 [2] : vector<1x16x8xf32> to vector<1x16xf32>
    %71 = vector.shape_cast %70 : vector<1x16xf32> to vector<1x16x1xf32>
    %72 = vector.broadcast %71 : vector<1x16x1xf32> to vector<1x16x8xf32>
    %73 = arith.subf %69, %72 : vector<1x16x8xf32>
    %74 = math.exp %73 : vector<1x16x8xf32>
    %cst_36 = arith.constant dense<0.000000e+00> : vector<1x16xf32>
    %75 = vector.multi_reduction <add>, %74, %cst_36 [2] : vector<1x16x8xf32> to vector<1x16xf32>
    %76 = vector.shape_cast %75 : vector<1x16xf32> to vector<1x16x1xf32>
    %77 = tpu.reciprocal %76 {approx = true} : vector<1x16x1xf32> -> vector<1x16x1xf32>
    %78 = vector.broadcast %77 : vector<1x16x1xf32> to vector<1x16x8xf32>
    %79 = arith.mulf %74, %78 : vector<1x16x8xf32>
    %80 = arith.truncf %79 : vector<1x16x8xf32> to vector<1x16x8xbf16>
    %cst_37 = arith.constant dense<0.000000e+00> : vector<1x16x8xf32>
    %81 = tpu.matmul %80, %65, %cst_37 {dimension_numbers = #tpu.dot_dimension_numbers<[2], [1], [1], [2], [0, 0, 0, 1, 1, 2], [0], [0]>} : vector<1x16x8xbf16>, vector<1x8x8xbf16>, vector<1x16x8xf32> -> vector<1x16x8xf32>
    %82 = vector.extract_strided_slice %33 {offsets = [0, 0, 8], sizes = [1, 16, 8], strides = [1, 1, 1]} : vector<1x16x96xf32> to vector<1x16x8xf32>
    %83 = arith.truncf %82 : vector<1x16x8xf32> to vector<1x16x8xbf16>
    %84 = vector.extract_strided_slice %33 {offsets = [0, 0, 40], sizes = [1, 16, 8], strides = [1, 1, 1]} : vector<1x16x96xf32> to vector<1x16x8xf32>
    %85 = arith.truncf %84 : vector<1x16x8xf32> to vector<1x16x8xbf16>
    %86 = vector.extract_strided_slice %33 {offsets = [0, 0, 72], sizes = [1, 16, 8], strides = [1, 1, 1]} : vector<1x16x96xf32> to vector<1x16x8xf32>
    %87 = arith.truncf %86 : vector<1x16x8xf32> to vector<1x16x8xbf16>
    %c1 = arith.constant 1 : index
    %c0_38 = arith.constant 0 : index
    %c0_39 = arith.constant 0 : index
    %88 = vector.load %arg7[%c1, %c0_38, %c0_39] : memref<4x8x32xbf16, #tpu.memory_space<vmem>>, vector<1x8x32xbf16>
    %89 = vector.shape_cast %88 : vector<1x8x32xbf16> to vector<8x32xbf16>
    %90 = vector.shape_cast %89 : vector<8x32xbf16> to vector<1x8x32xbf16>
    %c1_40 = arith.constant 1 : index
    %c0_41 = arith.constant 0 : index
    %c0_42 = arith.constant 0 : index
    %91 = vector.load %arg9[%c1_40, %c0_41, %c0_42] : memref<4x8x32xbf16, #tpu.memory_space<vmem>>, vector<1x8x32xbf16>
    %92 = vector.shape_cast %91 : vector<1x8x32xbf16> to vector<8x32xbf16>
    %93 = vector.shape_cast %92 : vector<8x32xbf16> to vector<1x8x32xbf16>
    %cst_43 = arith.constant dense<0.000000e+00> : vector<1x8x16xf32>
    %94 = tpu.matmul %90, %34, %cst_43 {dimension_numbers = #tpu.dot_dimension_numbers<[2], [2], [1], [1], [0, 0, 0, 1, 1, 1], [0], [0]>} : vector<1x8x32xbf16>, vector<1x16x32xbf16>, vector<1x8x16xf32> -> vector<1x8x16xf32>
    %c1_44 = arith.constant 1 : index
    %c0_45 = arith.constant 0 : index
    %c0_46 = arith.constant 0 : index
    %95 = vector.load %arg8[%c1_44, %c0_45, %c0_46] : memref<4x8x1xf32, #tpu.memory_space<vmem>>, vector<1x8x1xf32>
    %96 = vector.shape_cast %95 : vector<1x8x1xf32> to vector<8x1xf32>
    %97 = vector.shape_cast %96 : vector<8x1xf32> to vector<1x8x1xf32>
    %98 = vector.broadcast %97 : vector<1x8x1xf32> to vector<1x8x16xf32>
    %99 = arith.addf %94, %98 : vector<1x8x16xf32>
    %100 = arith.truncf %99 : vector<1x8x16xf32> to vector<1x8x16xbf16>
    %cst_47 = arith.constant dense<0.000000e+00> : vector<1x8x16xf32>
    %101 = tpu.matmul %93, %34, %cst_47 {dimension_numbers = #tpu.dot_dimension_numbers<[2], [2], [1], [1], [0, 0, 0, 1, 1, 1], [0], [0]>} : vector<1x8x32xbf16>, vector<1x16x32xbf16>, vector<1x8x16xf32> -> vector<1x8x16xf32>
    %c1_48 = arith.constant 1 : index
    %c0_49 = arith.constant 0 : index
    %c0_50 = arith.constant 0 : index
    %102 = vector.load %arg10[%c1_48, %c0_49, %c0_50] : memref<4x8x1xf32, #tpu.memory_space<vmem>>, vector<1x8x1xf32>
    %103 = vector.shape_cast %102 : vector<1x8x1xf32> to vector<8x1xf32>
    %104 = vector.shape_cast %103 : vector<8x1xf32> to vector<1x8x1xf32>
    %105 = vector.broadcast %104 : vector<1x8x1xf32> to vector<1x8x16xf32>
    %106 = arith.addf %101, %105 : vector<1x8x16xf32>
    %107 = arith.truncf %106 : vector<1x8x16xf32> to vector<1x8x16xbf16>
    %cst_51 = arith.constant dense<0.000000e+00> : vector<1x8x8xf32>
    %108 = tpu.matmul %100, %85, %cst_51 {dimension_numbers = #tpu.dot_dimension_numbers<[2], [1], [1], [2], [0, 0, 0, 1, 1, 2], [0], [0]>} : vector<1x8x16xbf16>, vector<1x16x8xbf16>, vector<1x8x8xf32> -> vector<1x8x8xf32>
    %109 = arith.truncf %108 : vector<1x8x8xf32> to vector<1x8x8xbf16>
    %cst_52 = arith.constant dense<0.000000e+00> : vector<1x8x8xf32>
    %110 = tpu.matmul %107, %87, %cst_52 {dimension_numbers = #tpu.dot_dimension_numbers<[2], [1], [1], [2], [0, 0, 0, 1, 1, 2], [0], [0]>} : vector<1x8x16xbf16>, vector<1x16x8xbf16>, vector<1x8x8xf32> -> vector<1x8x8xf32>
    %111 = arith.truncf %110 : vector<1x8x8xf32> to vector<1x8x8xbf16>
    %cst_53 = arith.constant dense<0.000000e+00> : vector<1x16x8xf32>
    %112 = tpu.matmul %83, %109, %cst_53 {dimension_numbers = #tpu.dot_dimension_numbers<[2], [2], [1], [1], [0, 0, 0, 1, 1, 1], [0], [0]>} : vector<1x16x8xbf16>, vector<1x8x8xbf16>, vector<1x16x8xf32> -> vector<1x16x8xf32>
    %113 = vector.extract_strided_slice %35 {offsets = [0, 0, 0], sizes = [1, 1, 8], strides = [1, 1, 1]} : vector<1x1x16xf32> to vector<1x1x8xf32>
    %114 = vector.broadcast %113 : vector<1x1x8xf32> to vector<1x16x8xf32>
    %115 = arith.addf %112, %114 : vector<1x16x8xf32>
    %cst_54 = arith.constant dense<0xFF800000> : vector<1x16xf32>
    %116 = vector.multi_reduction <maximumf>, %115, %cst_54 [2] : vector<1x16x8xf32> to vector<1x16xf32>
    %117 = vector.shape_cast %116 : vector<1x16xf32> to vector<1x16x1xf32>
    %118 = vector.broadcast %117 : vector<1x16x1xf32> to vector<1x16x8xf32>
    %119 = arith.subf %115, %118 : vector<1x16x8xf32>
    %120 = math.exp %119 : vector<1x16x8xf32>
    %cst_55 = arith.constant dense<0.000000e+00> : vector<1x16xf32>
    %121 = vector.multi_reduction <add>, %120, %cst_55 [2] : vector<1x16x8xf32> to vector<1x16xf32>
    %122 = vector.shape_cast %121 : vector<1x16xf32> to vector<1x16x1xf32>
    %123 = tpu.reciprocal %122 {approx = true} : vector<1x16x1xf32> -> vector<1x16x1xf32>
    %124 = vector.broadcast %123 : vector<1x16x1xf32> to vector<1x16x8xf32>
    %125 = arith.mulf %120, %124 : vector<1x16x8xf32>
    %126 = arith.truncf %125 : vector<1x16x8xf32> to vector<1x16x8xbf16>
    %cst_56 = arith.constant dense<0.000000e+00> : vector<1x16x8xf32>
    %127 = tpu.matmul %126, %111, %cst_56 {dimension_numbers = #tpu.dot_dimension_numbers<[2], [1], [1], [2], [0, 0, 0, 1, 1, 2], [0], [0]>} : vector<1x16x8xbf16>, vector<1x8x8xbf16>, vector<1x16x8xf32> -> vector<1x16x8xf32>
    %128 = vector.extract_strided_slice %33 {offsets = [0, 0, 16], sizes = [1, 16, 8], strides = [1, 1, 1]} : vector<1x16x96xf32> to vector<1x16x8xf32>
    %129 = arith.truncf %128 : vector<1x16x8xf32> to vector<1x16x8xbf16>
    %130 = vector.extract_strided_slice %33 {offsets = [0, 0, 48], sizes = [1, 16, 8], strides = [1, 1, 1]} : vector<1x16x96xf32> to vector<1x16x8xf32>
    %131 = arith.truncf %130 : vector<1x16x8xf32> to vector<1x16x8xbf16>
    %132 = vector.extract_strided_slice %33 {offsets = [0, 0, 80], sizes = [1, 16, 8], strides = [1, 1, 1]} : vector<1x16x96xf32> to vector<1x16x8xf32>
    %133 = arith.truncf %132 : vector<1x16x8xf32> to vector<1x16x8xbf16>
    %c2 = arith.constant 2 : index
    %c0_57 = arith.constant 0 : index
    %c0_58 = arith.constant 0 : index
    %134 = vector.load %arg7[%c2, %c0_57, %c0_58] : memref<4x8x32xbf16, #tpu.memory_space<vmem>>, vector<1x8x32xbf16>
    %135 = vector.shape_cast %134 : vector<1x8x32xbf16> to vector<8x32xbf16>
    %136 = vector.shape_cast %135 : vector<8x32xbf16> to vector<1x8x32xbf16>
    %c2_59 = arith.constant 2 : index
    %c0_60 = arith.constant 0 : index
    %c0_61 = arith.constant 0 : index
    %137 = vector.load %arg9[%c2_59, %c0_60, %c0_61] : memref<4x8x32xbf16, #tpu.memory_space<vmem>>, vector<1x8x32xbf16>
    %138 = vector.shape_cast %137 : vector<1x8x32xbf16> to vector<8x32xbf16>
    %139 = vector.shape_cast %138 : vector<8x32xbf16> to vector<1x8x32xbf16>
    %cst_62 = arith.constant dense<0.000000e+00> : vector<1x8x16xf32>
    %140 = tpu.matmul %136, %34, %cst_62 {dimension_numbers = #tpu.dot_dimension_numbers<[2], [2], [1], [1], [0, 0, 0, 1, 1, 1], [0], [0]>} : vector<1x8x32xbf16>, vector<1x16x32xbf16>, vector<1x8x16xf32> -> vector<1x8x16xf32>
    %c2_63 = arith.constant 2 : index
    %c0_64 = arith.constant 0 : index
    %c0_65 = arith.constant 0 : index
    %141 = vector.load %arg8[%c2_63, %c0_64, %c0_65] : memref<4x8x1xf32, #tpu.memory_space<vmem>>, vector<1x8x1xf32>
    %142 = vector.shape_cast %141 : vector<1x8x1xf32> to vector<8x1xf32>
    %143 = vector.shape_cast %142 : vector<8x1xf32> to vector<1x8x1xf32>
    %144 = vector.broadcast %143 : vector<1x8x1xf32> to vector<1x8x16xf32>
    %145 = arith.addf %140, %144 : vector<1x8x16xf32>
    %146 = arith.truncf %145 : vector<1x8x16xf32> to vector<1x8x16xbf16>
    %cst_66 = arith.constant dense<0.000000e+00> : vector<1x8x16xf32>
    %147 = tpu.matmul %139, %34, %cst_66 {dimension_numbers = #tpu.dot_dimension_numbers<[2], [2], [1], [1], [0, 0, 0, 1, 1, 1], [0], [0]>} : vector<1x8x32xbf16>, vector<1x16x32xbf16>, vector<1x8x16xf32> -> vector<1x8x16xf32>
    %c2_67 = arith.constant 2 : index
    %c0_68 = arith.constant 0 : index
    %c0_69 = arith.constant 0 : index
    %148 = vector.load %arg10[%c2_67, %c0_68, %c0_69] : memref<4x8x1xf32, #tpu.memory_space<vmem>>, vector<1x8x1xf32>
    %149 = vector.shape_cast %148 : vector<1x8x1xf32> to vector<8x1xf32>
    %150 = vector.shape_cast %149 : vector<8x1xf32> to vector<1x8x1xf32>
    %151 = vector.broadcast %150 : vector<1x8x1xf32> to vector<1x8x16xf32>
    %152 = arith.addf %147, %151 : vector<1x8x16xf32>
    %153 = arith.truncf %152 : vector<1x8x16xf32> to vector<1x8x16xbf16>
    %cst_70 = arith.constant dense<0.000000e+00> : vector<1x8x8xf32>
    %154 = tpu.matmul %146, %131, %cst_70 {dimension_numbers = #tpu.dot_dimension_numbers<[2], [1], [1], [2], [0, 0, 0, 1, 1, 2], [0], [0]>} : vector<1x8x16xbf16>, vector<1x16x8xbf16>, vector<1x8x8xf32> -> vector<1x8x8xf32>
    %155 = arith.truncf %154 : vector<1x8x8xf32> to vector<1x8x8xbf16>
    %cst_71 = arith.constant dense<0.000000e+00> : vector<1x8x8xf32>
    %156 = tpu.matmul %153, %133, %cst_71 {dimension_numbers = #tpu.dot_dimension_numbers<[2], [1], [1], [2], [0, 0, 0, 1, 1, 2], [0], [0]>} : vector<1x8x16xbf16>, vector<1x16x8xbf16>, vector<1x8x8xf32> -> vector<1x8x8xf32>
    %157 = arith.truncf %156 : vector<1x8x8xf32> to vector<1x8x8xbf16>
    %cst_72 = arith.constant dense<0.000000e+00> : vector<1x16x8xf32>
    %158 = tpu.matmul %129, %155, %cst_72 {dimension_numbers = #tpu.dot_dimension_numbers<[2], [2], [1], [1], [0, 0, 0, 1, 1, 1], [0], [0]>} : vector<1x16x8xbf16>, vector<1x8x8xbf16>, vector<1x16x8xf32> -> vector<1x16x8xf32>
    %159 = vector.extract_strided_slice %35 {offsets = [0, 0, 0], sizes = [1, 1, 8], strides = [1, 1, 1]} : vector<1x1x16xf32> to vector<1x1x8xf32>
    %160 = vector.broadcast %159 : vector<1x1x8xf32> to vector<1x16x8xf32>
    %161 = arith.addf %158, %160 : vector<1x16x8xf32>
    %cst_73 = arith.constant dense<0xFF800000> : vector<1x16xf32>
    %162 = vector.multi_reduction <maximumf>, %161, %cst_73 [2] : vector<1x16x8xf32> to vector<1x16xf32>
    %163 = vector.shape_cast %162 : vector<1x16xf32> to vector<1x16x1xf32>
    %164 = vector.broadcast %163 : vector<1x16x1xf32> to vector<1x16x8xf32>
    %165 = arith.subf %161, %164 : vector<1x16x8xf32>
    %166 = math.exp %165 : vector<1x16x8xf32>
    %cst_74 = arith.constant dense<0.000000e+00> : vector<1x16xf32>
    %167 = vector.multi_reduction <add>, %166, %cst_74 [2] : vector<1x16x8xf32> to vector<1x16xf32>
    %168 = vector.shape_cast %167 : vector<1x16xf32> to vector<1x16x1xf32>
    %169 = tpu.reciprocal %168 {approx = true} : vector<1x16x1xf32> -> vector<1x16x1xf32>
    %170 = vector.broadcast %169 : vector<1x16x1xf32> to vector<1x16x8xf32>
    %171 = arith.mulf %166, %170 : vector<1x16x8xf32>
    %172 = arith.truncf %171 : vector<1x16x8xf32> to vector<1x16x8xbf16>
    %cst_75 = arith.constant dense<0.000000e+00> : vector<1x16x8xf32>
    %173 = tpu.matmul %172, %157, %cst_75 {dimension_numbers = #tpu.dot_dimension_numbers<[2], [1], [1], [2], [0, 0, 0, 1, 1, 2], [0], [0]>} : vector<1x16x8xbf16>, vector<1x8x8xbf16>, vector<1x16x8xf32> -> vector<1x16x8xf32>
    %174 = vector.extract_strided_slice %33 {offsets = [0, 0, 24], sizes = [1, 16, 8], strides = [1, 1, 1]} : vector<1x16x96xf32> to vector<1x16x8xf32>
    %175 = arith.truncf %174 : vector<1x16x8xf32> to vector<1x16x8xbf16>
    %176 = vector.extract_strided_slice %33 {offsets = [0, 0, 56], sizes = [1, 16, 8], strides = [1, 1, 1]} : vector<1x16x96xf32> to vector<1x16x8xf32>
    %177 = arith.truncf %176 : vector<1x16x8xf32> to vector<1x16x8xbf16>
    %178 = vector.extract_strided_slice %33 {offsets = [0, 0, 88], sizes = [1, 16, 8], strides = [1, 1, 1]} : vector<1x16x96xf32> to vector<1x16x8xf32>
    %179 = arith.truncf %178 : vector<1x16x8xf32> to vector<1x16x8xbf16>
    %c3 = arith.constant 3 : index
    %c0_76 = arith.constant 0 : index
    %c0_77 = arith.constant 0 : index
    %180 = vector.load %arg7[%c3, %c0_76, %c0_77] : memref<4x8x32xbf16, #tpu.memory_space<vmem>>, vector<1x8x32xbf16>
    %181 = vector.shape_cast %180 : vector<1x8x32xbf16> to vector<8x32xbf16>
    %182 = vector.shape_cast %181 : vector<8x32xbf16> to vector<1x8x32xbf16>
    %c3_78 = arith.constant 3 : index
    %c0_79 = arith.constant 0 : index
    %c0_80 = arith.constant 0 : index
    %183 = vector.load %arg9[%c3_78, %c0_79, %c0_80] : memref<4x8x32xbf16, #tpu.memory_space<vmem>>, vector<1x8x32xbf16>
    %184 = vector.shape_cast %183 : vector<1x8x32xbf16> to vector<8x32xbf16>
    %185 = vector.shape_cast %184 : vector<8x32xbf16> to vector<1x8x32xbf16>
    %cst_81 = arith.constant dense<0.000000e+00> : vector<1x8x16xf32>
    %186 = tpu.matmul %182, %34, %cst_81 {dimension_numbers = #tpu.dot_dimension_numbers<[2], [2], [1], [1], [0, 0, 0, 1, 1, 1], [0], [0]>} : vector<1x8x32xbf16>, vector<1x16x32xbf16>, vector<1x8x16xf32> -> vector<1x8x16xf32>
    %c3_82 = arith.constant 3 : index
    %c0_83 = arith.constant 0 : index
    %c0_84 = arith.constant 0 : index
    %187 = vector.load %arg8[%c3_82, %c0_83, %c0_84] : memref<4x8x1xf32, #tpu.memory_space<vmem>>, vector<1x8x1xf32>
    %188 = vector.shape_cast %187 : vector<1x8x1xf32> to vector<8x1xf32>
    %189 = vector.shape_cast %188 : vector<8x1xf32> to vector<1x8x1xf32>
    %190 = vector.broadcast %189 : vector<1x8x1xf32> to vector<1x8x16xf32>
    %191 = arith.addf %186, %190 : vector<1x8x16xf32>
    %192 = arith.truncf %191 : vector<1x8x16xf32> to vector<1x8x16xbf16>
    %cst_85 = arith.constant dense<0.000000e+00> : vector<1x8x16xf32>
    %193 = tpu.matmul %185, %34, %cst_85 {dimension_numbers = #tpu.dot_dimension_numbers<[2], [2], [1], [1], [0, 0, 0, 1, 1, 1], [0], [0]>} : vector<1x8x32xbf16>, vector<1x16x32xbf16>, vector<1x8x16xf32> -> vector<1x8x16xf32>
    %c3_86 = arith.constant 3 : index
    %c0_87 = arith.constant 0 : index
    %c0_88 = arith.constant 0 : index
    %194 = vector.load %arg10[%c3_86, %c0_87, %c0_88] : memref<4x8x1xf32, #tpu.memory_space<vmem>>, vector<1x8x1xf32>
    %195 = vector.shape_cast %194 : vector<1x8x1xf32> to vector<8x1xf32>
    %196 = vector.shape_cast %195 : vector<8x1xf32> to vector<1x8x1xf32>
    %197 = vector.broadcast %196 : vector<1x8x1xf32> to vector<1x8x16xf32>
    %198 = arith.addf %193, %197 : vector<1x8x16xf32>
    %199 = arith.truncf %198 : vector<1x8x16xf32> to vector<1x8x16xbf16>
    %cst_89 = arith.constant dense<0.000000e+00> : vector<1x8x8xf32>
    %200 = tpu.matmul %192, %177, %cst_89 {dimension_numbers = #tpu.dot_dimension_numbers<[2], [1], [1], [2], [0, 0, 0, 1, 1, 2], [0], [0]>} : vector<1x8x16xbf16>, vector<1x16x8xbf16>, vector<1x8x8xf32> -> vector<1x8x8xf32>
    %201 = arith.truncf %200 : vector<1x8x8xf32> to vector<1x8x8xbf16>
    %cst_90 = arith.constant dense<0.000000e+00> : vector<1x8x8xf32>
    %202 = tpu.matmul %199, %179, %cst_90 {dimension_numbers = #tpu.dot_dimension_numbers<[2], [1], [1], [2], [0, 0, 0, 1, 1, 2], [0], [0]>} : vector<1x8x16xbf16>, vector<1x16x8xbf16>, vector<1x8x8xf32> -> vector<1x8x8xf32>
    %203 = arith.truncf %202 : vector<1x8x8xf32> to vector<1x8x8xbf16>
    %cst_91 = arith.constant dense<0.000000e+00> : vector<1x16x8xf32>
    %204 = tpu.matmul %175, %201, %cst_91 {dimension_numbers = #tpu.dot_dimension_numbers<[2], [2], [1], [1], [0, 0, 0, 1, 1, 1], [0], [0]>} : vector<1x16x8xbf16>, vector<1x8x8xbf16>, vector<1x16x8xf32> -> vector<1x16x8xf32>
    %205 = vector.extract_strided_slice %35 {offsets = [0, 0, 0], sizes = [1, 1, 8], strides = [1, 1, 1]} : vector<1x1x16xf32> to vector<1x1x8xf32>
    %206 = vector.broadcast %205 : vector<1x1x8xf32> to vector<1x16x8xf32>
    %207 = arith.addf %204, %206 : vector<1x16x8xf32>
    %cst_92 = arith.constant dense<0xFF800000> : vector<1x16xf32>
    %208 = vector.multi_reduction <maximumf>, %207, %cst_92 [2] : vector<1x16x8xf32> to vector<1x16xf32>
    %209 = vector.shape_cast %208 : vector<1x16xf32> to vector<1x16x1xf32>
    %210 = vector.broadcast %209 : vector<1x16x1xf32> to vector<1x16x8xf32>
    %211 = arith.subf %207, %210 : vector<1x16x8xf32>
    %212 = math.exp %211 : vector<1x16x8xf32>
    %cst_93 = arith.constant dense<0.000000e+00> : vector<1x16xf32>
    %213 = vector.multi_reduction <add>, %212, %cst_93 [2] : vector<1x16x8xf32> to vector<1x16xf32>
    %214 = vector.shape_cast %213 : vector<1x16xf32> to vector<1x16x1xf32>
    %215 = tpu.reciprocal %214 {approx = true} : vector<1x16x1xf32> -> vector<1x16x1xf32>
    %216 = vector.broadcast %215 : vector<1x16x1xf32> to vector<1x16x8xf32>
    %217 = arith.mulf %212, %216 : vector<1x16x8xf32>
    %218 = arith.truncf %217 : vector<1x16x8xf32> to vector<1x16x8xbf16>
    %cst_94 = arith.constant dense<0.000000e+00> : vector<1x16x8xf32>
    %219 = tpu.matmul %218, %203, %cst_94 {dimension_numbers = #tpu.dot_dimension_numbers<[2], [1], [1], [2], [0, 0, 0, 1, 1, 2], [0], [0]>} : vector<1x16x8xbf16>, vector<1x8x8xbf16>, vector<1x16x8xf32> -> vector<1x16x8xf32>
    %220 = tpu.concatenate %81, %127, %173, %219 in 2 : vector<1x16x8xf32>, vector<1x16x8xf32>, vector<1x16x8xf32>, vector<1x16x8xf32> -> vector<1x16x32xf32>
    %221 = vector.shape_cast %220 : vector<1x16x32xf32> to vector<16x32xf32>
    %222 = arith.truncf %221 : vector<16x32xf32> to vector<16x32xbf16>
    %c0_95 = arith.constant 0 : index
    %c0_96 = arith.constant 0 : index
    %223 = vector.load %arg11[%c0_95, %c0_96] : memref<32x32xbf16, #tpu.memory_space<vmem>>, vector<32x32xbf16>
    %cst_97 = arith.constant dense<0.000000e+00> : vector<16x32xf32>
    %224 = tpu.matmul %222, %223, %cst_97 {dimension_numbers = #tpu.dot_dimension_numbers<[1], [0], [0], [1], [0, 0, 1, 1], [], []>} : vector<16x32xbf16>, vector<32x32xbf16>, vector<16x32xf32> -> vector<16x32xf32>
    %c0_98 = arith.constant 0 : index
    %c0_99 = arith.constant 0 : index
    %225 = vector.load %arg12[%c0_98, %c0_99] : memref<1x32xf32, #tpu.memory_space<vmem>>, vector<1x32xf32>
    %226 = vector.broadcast %225 : vector<1x32xf32> to vector<16x32xf32>
    %227 = arith.addf %224, %226 : vector<16x32xf32>
    %228 = arith.addf %0, %227 : vector<16x32xf32>
    %c0_100 = arith.constant 0 : index
    %c0_101 = arith.constant 0 : index
    %229 = vector.load %arg13[%c0_100, %c0_101] : memref<1x32xf32, #tpu.memory_space<vmem>>, vector<1x32xf32>
    %c0_102 = arith.constant 0 : index
    %c0_103 = arith.constant 0 : index
    %230 = vector.load %arg14[%c0_102, %c0_103] : memref<1x32xf32, #tpu.memory_space<vmem>>, vector<1x32xf32>
    %cst_104 = arith.constant dense<0.000000e+00> : vector<16xf32>
    %231 = vector.multi_reduction <add>, %228, %cst_104 [1] : vector<16x32xf32> to vector<16xf32>
    %232 = vector.shape_cast %231 : vector<16xf32> to vector<16x1xf32>
    %cst_105 = arith.constant 3.200000e+01 : f32
    %233 = vector.broadcast %cst_105 : f32 to vector<16x1xf32>
    %234 = arith.divf %232, %233 : vector<16x1xf32>
    %235 = vector.broadcast %234 : vector<16x1xf32> to vector<16x32xf32>
    %236 = arith.subf %228, %235 : vector<16x32xf32>
    %237 = arith.mulf %236, %236 : vector<16x32xf32>
    %cst_106 = arith.constant dense<0.000000e+00> : vector<16xf32>
    %238 = vector.multi_reduction <add>, %237, %cst_106 [1] : vector<16x32xf32> to vector<16xf32>
    %239 = vector.shape_cast %238 : vector<16xf32> to vector<16x1xf32>
    %cst_107 = arith.constant 3.100000e+01 : f32
    %240 = vector.broadcast %cst_107 : f32 to vector<16x1xf32>
    %241 = arith.divf %239, %240 : vector<16x1xf32>
    %242 = math.sqrt %241 : vector<16x1xf32>
    %cst_108 = arith.constant 9.99999997E-7 : f32
    %243 = vector.broadcast %cst_108 : f32 to vector<16x1xf32>
    %244 = arith.addf %242, %243 : vector<16x1xf32>
    %cst_109 = arith.constant 1.000000e+00 : f32
    %245 = vector.broadcast %cst_109 : f32 to vector<16x1xf32>
    %246 = arith.divf %245, %244 : vector<16x1xf32>
    %247 = vector.broadcast %234 : vector<16x1xf32> to vector<16x32xf32>
    %248 = arith.subf %228, %247 : vector<16x32xf32>
    %249 = vector.broadcast %229 : vector<1x32xf32> to vector<16x32xf32>
    %250 = arith.mulf %249, %248 : vector<16x32xf32>
    %251 = vector.broadcast %246 : vector<16x1xf32> to vector<16x32xf32>
    %252 = arith.mulf %250, %251 : vector<16x32xf32>
    %253 = vector.broadcast %230 : vector<1x32xf32> to vector<16x32xf32>
    %254 = arith.addf %252, %253 : vector<16x32xf32>
    %255 = arith.truncf %254 : vector<16x32xf32> to vector<16x32xbf16>
    %c0_110 = arith.constant 0 : index
    %c0_111 = arith.constant 0 : index
    %256 = vector.load %arg15[%c0_110, %c0_111] : memref<32x64xbf16, #tpu.memory_space<vmem>>, vector<32x64xbf16>
    %cst_112 = arith.constant dense<0.000000e+00> : vector<16x64xf32>
    %257 = tpu.matmul %255, %256, %cst_112 {dimension_numbers = #tpu.dot_dimension_numbers<[1], [0], [0], [1], [0, 0, 1, 1], [], []>} : vector<16x32xbf16>, vector<32x64xbf16>, vector<16x64xf32> -> vector<16x64xf32>
    %c0_113 = arith.constant 0 : index
    %c0_114 = arith.constant 0 : index
    %258 = vector.load %arg16[%c0_113, %c0_114] : memref<1x64xf32, #tpu.memory_space<vmem>>, vector<1x64xf32>
    %259 = vector.broadcast %258 : vector<1x64xf32> to vector<16x64xf32>
    %260 = arith.addf %257, %259 : vector<16x64xf32>
    %cst_115 = arith.constant 0.000000e+00 : f32
    %261 = vector.broadcast %cst_115 : f32 to vector<16x64xf32>
    %262 = arith.maximumf %260, %261 : vector<16x64xf32>
    %263 = arith.truncf %262 : vector<16x64xf32> to vector<16x64xbf16>
    %c0_116 = arith.constant 0 : index
    %c0_117 = arith.constant 0 : index
    %264 = vector.load %arg17[%c0_116, %c0_117] : memref<64x32xbf16, #tpu.memory_space<vmem>>, vector<64x32xbf16>
    %cst_118 = arith.constant dense<0.000000e+00> : vector<16x32xf32>
    %265 = tpu.matmul %263, %264, %cst_118 {dimension_numbers = #tpu.dot_dimension_numbers<[1], [0], [0], [1], [0, 0, 1, 1], [], []>} : vector<16x64xbf16>, vector<64x32xbf16>, vector<16x32xf32> -> vector<16x32xf32>
    %c0_119 = arith.constant 0 : index
    %c0_120 = arith.constant 0 : index
    %266 = vector.load %arg18[%c0_119, %c0_120] : memref<1x32xf32, #tpu.memory_space<vmem>>, vector<1x32xf32>
    %267 = vector.broadcast %266 : vector<1x32xf32> to vector<16x32xf32>
    %268 = arith.addf %265, %267 : vector<16x32xf32>
    %269 = arith.addf %228, %268 : vector<16x32xf32>
    %c0_121 = arith.constant 0 : index
    %c0_122 = arith.constant 0 : index
    %270 = vector.load %arg19[%c0_121, %c0_122] : memref<16x32xf32, #tpu.memory_space<vmem>>, vector<16x32xf32>
    tpu.vector_store %arg19[%c0_121, %c0_122], %269 {strides = array<i32>} : memref<16x32xf32, #tpu.memory_space<vmem>>, vector<16x32xf32>,
    return
  }
  func.func @transform_0(%arg0: i32) -> (i32, i32) {
    %c0_i32 = arith.constant 0 : i32
    %c0_i32_0 = arith.constant 0 : i32
    return %arg0, %c0_i32 : i32, i32
  }
  func.func @transform_1(%arg0: i32) -> (i32, i32, i32) {
    %c0_i32 = arith.constant 0 : i32
    %c0_i32_0 = arith.constant 0 : i32
    %c0_i32_1 = arith.constant 0 : i32
    return %arg0, %c0_i32, %c0_i32_0 : i32, i32, i32
  }
  func.func @transform_2(%arg0: i32) -> (i32, i32) {
    %c0_i32 = arith.constant 0 : i32
    %c0_i32_0 = arith.constant 0 : i32
    %c0_i32_1 = arith.constant 0 : i32
    return %c0_i32, %c0_i32_0 : i32, i32
  }
  func.func @transform_3(%arg0: i32) -> (i32, i32) {
    %c0_i32 = arith.constant 0 : i32
    %c0_i32_0 = arith.constant 0 : i32
    %c0_i32_1 = arith.constant 0 : i32
    return %c0_i32, %c0_i32_0 : i32, i32
  }
  func.func @transform_4(%arg0: i32) -> (i32, i32) {
    %c0_i32 = arith.constant 0 : i32
    %c0_i32_0 = arith.constant 0 : i32
    %c0_i32_1 = arith.constant 0 : i32
    return %c0_i32, %c0_i32_0 : i32, i32
  }
  func.func @transform_5(%arg0: i32) -> (i32, i32) {
    %c0_i32 = arith.constant 0 : i32
    %c0_i32_0 = arith.constant 0 : i32
    %c0_i32_1 = arith.constant 0 : i32
    return %c0_i32, %c0_i32_0 : i32, i32
  }
  func.func @transform_6(%arg0: i32) -> (i32, i32, i32) {
    %c0_i32 = arith.constant 0 : i32
    %c0_i32_0 = arith.constant 0 : i32
    %c0_i32_1 = arith.constant 0 : i32
    %c0_i32_2 = arith.constant 0 : i32
    return %c0_i32, %c0_i32_0, %c0_i32_1 : i32, i32, i32
  }
  func.func @transform_7(%arg0: i32) -> (i32, i32, i32) {
    %c0_i32 = arith.constant 0 : i32
    %c0_i32_0 = arith.constant 0 : i32
    %c0_i32_1 = arith.constant 0 : i32
    %c0_i32_2 = arith.constant 0 : i32
    return %c0_i32, %c0_i32_0, %c0_i32_1 : i32, i32, i32
  }
  func.func @transform_8(%arg0: i32) -> (i32, i32, i32) {
    %c0_i32 = arith.constant 0 : i32
    %c0_i32_0 = arith.constant 0 : i32
    %c0_i32_1 = arith.constant 0 : i32
    %c0_i32_2 = arith.constant 0 : i32
    return %c0_i32, %c0_i32_0, %c0_i32_1 : i32, i32, i32
  }
  func.func @transform_9(%arg0: i32) -> (i32, i32, i32) {
    %c0_i32 = arith.constant 0 : i32
    %c0_i32_0 = arith.constant 0 : i32
    %c0_i32_1 = arith.constant 0 : i32
    %c0_i32_2 = arith.constant 0 : i32
    return %c0_i32, %c0_i32_0, %c0_i32_1 : i32, i32, i32
  }
  func.func @transform_10(%arg0: i32) -> (i32, i32) {
    %c0_i32 = arith.constant 0 : i32
    %c0_i32_0 = arith.constant 0 : i32
    %c0_i32_1 = arith.constant 0 : i32
    return %c0_i32, %c0_i32_0 : i32, i32
  }
  func.func @transform_11(%arg0: i32) -> (i32, i32) {
    %c0_i32 = arith.constant 0 : i32
    %c0_i32_0 = arith.constant 0 : i32
    %c0_i32_1 = arith.constant 0 : i32
    return %c0_i32, %c0_i32_0 : i32, i32
  }
  func.func @transform_12(%arg0: i32) -> (i32, i32) {
    %c0_i32 = arith.constant 0 : i32
    %c0_i32_0 = arith.constant 0 : i32
    %c0_i32_1 = arith.constant 0 : i32
    return %c0_i32, %c0_i32_0 : i32, i32
  }
  func.func @transform_13(%arg0: i32) -> (i32, i32) {
    %c0_i32 = arith.constant 0 : i32
    %c0_i32_0 = arith.constant 0 : i32
    %c0_i32_1 = arith.constant 0 : i32
    return %c0_i32, %c0_i32_0 : i32, i32
  }
  func.func @transform_14(%arg0: i32) -> (i32, i32) {
    %c0_i32 = arith.constant 0 : i32
    %c0_i32_0 = arith.constant 0 : i32
    %c0_i32_1 = arith.constant 0 : i32
    return %c0_i32, %c0_i32_0 : i32, i32
  }
  func.func @transform_15(%arg0: i32) -> (i32, i32) {
    %c0_i32 = arith.constant 0 : i32
    %c0_i32_0 = arith.constant 0 : i32
    %c0_i32_1 = arith.constant 0 : i32
    return %c0_i32, %c0_i32_0 : i32, i32
  }
  func.func @transform_16(%arg0: i32) -> (i32, i32) {
    %c0_i32 = arith.constant 0 : i32
    %c0_i32_0 = arith.constant 0 : i32
    %c0_i32_1 = arith.constant 0 : i32
    return %c0_i32, %c0_i32_0 : i32, i32
  }
  func.func @transform_17(%arg0: i32) -> (i32, i32) {
    %c0_i32 = arith.constant 0 : i32
    %c0_i32_0 = arith.constant 0 : i32
    %c0_i32_1 = arith.constant 0 : i32
    return %c0_i32, %c0_i32_0 : i32, i32
  }
  func.func @transform_18(%arg0: i32) -> (i32, i32) {
    %c0_i32 = arith.constant 0 : i32
    %c0_i32_0 = arith.constant 0 : i32
    return %arg0, %c0_i32 : i32, i32
  }
}

module attributes {stable_mosaic.version = 11 : i64} {
  func.func @encoder_layer_kernel(%arg0: i32, %arg1: memref<16x32xf32, #tpu.memory_space<vmem>>, %arg2: memref<1x1x16xf32, #tpu.memory_space<vmem>>, %arg3: memref<1x32xf32, #tpu.memory_space<vmem>>, %arg4: memref<1x32xf32, #tpu.memory_space<vmem>>, %arg5: memref<32x96xbf16, #tpu.memory_space<vmem>>, %arg6: memref<1x96xf32, #tpu.memory_space<vmem>>, %arg7: memref<4x8x32xbf16, #tpu.memory_space<vmem>>, %arg8: memref<4x8x1xf32, #tpu.memory_space<vmem>>, %arg9: memref<4x8x32xbf16, #tpu.memory_space<vmem>>, %arg10: memref<4x8x1xf32, #tpu.memory_space<vmem>>, %arg11: memref<32x32xbf16, #tpu.memory_space<vmem>>, %arg12: memref<1x32xf32, #tpu.memory_space<vmem>>, %arg13: memref<1x32xf32, #tpu.memory_space<vmem>>, %arg14: memref<1x32xf32, #tpu.memory_space<vmem>>, %arg15: memref<32x64xbf16, #tpu.memory_space<vmem>>, %arg16: memref<1x64xf32, #tpu.memory_space<vmem>>, %arg17: memref<64x32xbf16, #tpu.memory_space<vmem>>, %arg18: memref<1x32xf32, #tpu.memory_space<vmem>>, %arg19: memref<16x32xf32, #tpu.memory_space<vmem>>) attributes {dimension_semantics = [#tpu.dimension_semantics<parallel>], iteration_bounds = array<i64: 2>, scalar_prefetch = 0 : i64, scratch_operands = 0 : i64, tpu.core_type = #tpu.core_type<tc>, window_params = [{transform_indices = @transform_0, window_bounds = array<i64: 16, 32>}, {transform_indices = @transform_1, window_bounds = array<i64: 1, 1, 16>}, {pipeline_mode = #tpu.pipeline_mode<synchronous>, transform_indices = @transform_2, window_bounds = array<i64: 1, 32>}, {pipeline_mode = #tpu.pipeline_mode<synchronous>, transform_indices = @transform_3, window_bounds = array<i64: 1, 32>}, {pipeline_mode = #tpu.pipeline_mode<synchronous>, transform_indices = @transform_4, window_bounds = array<i64: 32, 96>}, {pipeline_mode = #tpu.pipeline_mode<synchronous>, transform_indices = @transform_5, window_bounds = array<i64: 1, 96>}, {pipeline_mode = #tpu.pipeline_mode<synchronous>, transform_indices = @transform_6, window_bounds = array<i64: 4, 8, 32>}, {pipeline_mode = #tpu.pipeline_mode<synchronous>, transform_indices = @transform_7, window_bounds = array<i64: 4, 8, 1>}, {pipeline_mode = #tpu.pipeline_mode<synchronous>, transform_indices = @transform_8, window_bounds = array<i64: 4, 8, 32>}, {pipeline_mode = #tpu.pipeline_mode<synchronous>, transform_indices = @transform_9, window_bounds = array<i64: 4, 8, 1>}, {pipeline_mode = #tpu.pipeline_mode<synchronous>, transform_indices = @transform_10, window_bounds = array<i64: 32, 32>}, {pipeline_mode = #tpu.pipeline_mode<synchronous>, transform_indices = @transform_11, window_bounds = array<i64: 1, 32>}, {pipeline_mode = #tpu.pipeline_mode<synchronous>, transform_indices = @transform_12, window_bounds = array<i64: 1, 32>}, {pipeline_mode = #tpu.pipeline_mode<synchronous>, transform_indices = @transform_13, window_bounds = array<i64: 1, 32>}, {pipeline_mode = #tpu.pipeline_mode<synchronous>, transform_indices = @transform_14, window_bounds = array<i64: 32, 64>}, {pipeline_mode = #tpu.pipeline_mode<synchronous>, transform_indices = @transform_15, window_bounds = array<i64: 1, 64>}, {pipeline_mode = #tpu.pipeline_mode<synchronous>, transform_indices = @transform_16, window_bounds = array<i64: 64, 32>}, {pipeline_mode = #tpu.pipeline_mode<synchronous>, transform_indices = @transform_17, window_bounds = array<i64: 1, 32>}, {transform_indices = @transform_18, window_bounds = array<i64: 16, 32>}]} {
    %c0 = arith.constant 0 : index
    %c0_0 = arith.constant 0 : index
    %0 = vector.load %arg1[%c0, %c0_0] : memref<16x32xf32, #tpu.memory_space<vmem>>, vector<16x32xf32>
    %c0_1 = arith.constant 0 : index
    %c0_2 = arith.constant 0 : index
    %1 = vector.load %arg3[%c0_1, %c0_2] : memref<1x32xf32, #tpu.memory_space<vmem>>, vector<1x32xf32>
    %c0_3 = arith.constant 0 : index
    %c0_4 = arith.constant 0 : index
    %2 = vector.load %arg4[%c0_3, %c0_4] : memref<1x32xf32, #tpu.memory_space<vmem>>, vector<1x32xf32>
    %cst = arith.constant dense<0.000000e+00> : vector<16xf32>
    %3 = vector.multi_reduction <add>, %0, %cst [1] : vector<16x32xf32> to vector<16xf32>
    %4 = vector.shape_cast %3 : vector<16xf32> to vector<16x1xf32>
    %cst_5 = arith.constant 3.200000e+01 : f32
    %5 = vector.broadcast %cst_5 : f32 to vector<16x1xf32>
    %6 = arith.divf %4, %5 : vector<16x1xf32>
    %7 = vector.broadcast %6 : vector<16x1xf32> to vector<16x32xf32>
    %8 = arith.subf %0, %7 : vector<16x32xf32>
    %9 = arith.mulf %8, %8 : vector<16x32xf32>
    %cst_6 = arith.constant dense<0.000000e+00> : vector<16xf32>
    %10 = vector.multi_reduction <add>, %9, %cst_6 [1] : vector<16x32xf32> to vector<16xf32>
    %11 = vector.shape_cast %10 : vector<16xf32> to vector<16x1xf32>
    %cst_7 = arith.constant 3.100000e+01 : f32
    %12 = vector.broadcast %cst_7 : f32 to vector<16x1xf32>
    %13 = arith.divf %11, %12 : vector<16x1xf32>
    %14 = math.sqrt %13 : vector<16x1xf32>
    %cst_8 = arith.constant 9.99999997E-7 : f32
    %15 = vector.broadcast %cst_8 : f32 to vector<16x1xf32>
    %16 = arith.addf %14, %15 : vector<16x1xf32>
    %cst_9 = arith.constant 1.000000e+00 : f32
    %17 = vector.broadcast %cst_9 : f32 to vector<16x1xf32>
    %18 = arith.divf %17, %16 : vector<16x1xf32>
    %19 = vector.broadcast %6 : vector<16x1xf32> to vector<16x32xf32>
    %20 = arith.subf %0, %19 : vector<16x32xf32>
    %21 = vector.broadcast %1 : vector<1x32xf32> to vector<16x32xf32>
    %22 = arith.mulf %21, %20 : vector<16x32xf32>
    %23 = vector.broadcast %18 : vector<16x1xf32> to vector<16x32xf32>
    %24 = arith.mulf %22, %23 : vector<16x32xf32>
    %25 = vector.broadcast %2 : vector<1x32xf32> to vector<16x32xf32>
    %26 = arith.addf %24, %25 : vector<16x32xf32>
    %27 = arith.truncf %26 : vector<16x32xf32> to vector<16x32xbf16>
    %c0_10 = arith.constant 0 : index
    %c0_11 = arith.constant 0 : index
    %28 = vector.load %arg5[%c0_10, %c0_11] : memref<32x96xbf16, #tpu.memory_space<vmem>>, vector<32x96xbf16>
    %cst_12 = arith.constant dense<0.000000e+00> : vector<16x96xf32>
    %29 = tpu.matmul %27, %28, %cst_12 {dimension_numbers = #tpu.dot_dimension_numbers<[1], [0], [0], [1], [0, 0, 1, 1], [], []>} : vector<16x32xbf16>, vector<32x96xbf16>, vector<16x96xf32> -> vector<16x96xf32>
    %c0_13 = arith.constant 0 : index
    %c0_14 = arith.constant 0 : index
    %30 = vector.load %arg6[%c0_13, %c0_14] : memref<1x96xf32, #tpu.memory_space<vmem>>, vector<1x96xf32>
    %31 = vector.broadcast %30 : vector<1x96xf32> to vector<16x96xf32>
    %32 = arith.addf %29, %31 : vector<16x96xf32>
    %33 = vector.shape_cast %32 : vector<16x96xf32> to vector<1x16x96xf32>
    %34 = vector.shape_cast %27 : vector<16x32xbf16> to vector<1x16x32xbf16>
    %c0_15 = arith.constant 0 : index
    %c0_16 = arith.constant 0 : index
    %c0_17 = arith.constant 0 : index
    %35 = vector.load %arg2[%c0_15, %c0_16, %c0_17] : memref<1x1x16xf32, #tpu.memory_space<vmem>>, vector<1x1x16xf32>
    %36 = vector.extract_strided_slice %33 {offsets = [0, 0, 0], sizes = [1, 16, 8], strides = [1, 1, 1]} : vector<1x16x96xf32> to vector<1x16x8xf32>
    %37 = arith.truncf %36 : vector<1x16x8xf32> to vector<1x16x8xbf16>
    %38 = vector.extract_strided_slice %33 {offsets = [0, 0, 32], sizes = [1, 16, 8], strides = [1, 1, 1]} : vector<1x16x96xf32> to vector<1x16x8xf32>
    %39 = arith.truncf %38 : vector<1x16x8xf32> to vector<1x16x8xbf16>
    %40 = vector.extract_strided_slice %33 {offsets = [0, 0, 64], sizes = [1, 16, 8], strides = [1, 1, 1]} : vector<1x16x96xf32> to vector<1x16x8xf32>
    %41 = arith.truncf %40 : vector<1x16x8xf32> to vector<1x16x8xbf16>
    %c0_18 = arith.constant 0 : index
    %c0_19 = arith.constant 0 : index
    %c0_20 = arith.constant 0 : index
    %42 = vector.load %arg7[%c0_18, %c0_19, %c0_20] : memref<4x8x32xbf16, #tpu.memory_space<vmem>>, vector<1x8x32xbf16>
    %43 = vector.shape_cast %42 : vector<1x8x32xbf16> to vector<8x32xbf16>
    %44 = vector.shape_cast %43 : vector<8x32xbf16> to vector<1x8x32xbf16>
    %c0_21 = arith.constant 0 : index
    %c0_22 = arith.constant 0 : index
    %c0_23 = arith.constant 0 : index
    %45 = vector.load %arg9[%c0_21, %c0_22, %c0_23] : memref<4x8x32xbf16, #tpu.memory_space<vmem>>, vector<1x8x32xbf16>
    %46 = vector.shape_cast %45 : vector<1x8x32xbf16> to vector<8x32xbf16>
    %47 = vector.shape_cast %46 : vector<8x32xbf16> to vector<1x8x32xbf16>
    %cst_24 = arith.constant dense<0.000000e+00> : vector<1x8x16xf32>
    %48 = tpu.matmul %44, %34, %cst_24 {dimension_numbers = #tpu.dot_dimension_numbers<[2], [2], [1], [1], [0, 0, 0, 1, 1, 1], [0], [0]>} : vector<1x8x32xbf16>, vector<1x16x32xbf16>, vector<1x8x16xf32> -> vector<1x8x16xf32>
    %c0_25 = arith.constant 0 : index
    %c0_26 = arith.constant 0 : index
    %c0_27 = arith.constant 0 : index
    %49 = vector.load %arg8[%c0_25, %c0_26, %c0_27] : memref<4x8x1xf32, #tpu.memory_space<vmem>>, vector<1x8x1xf32>
    %50 = vector.shape_cast %49 : vector<1x8x1xf32> to vector<8x1xf32>
    %51 = vector.shape_cast %50 : vector<8x1xf32> to vector<1x8x1xf32>
    %52 = vector.broadcast %51 : vector<1x8x1xf32> to vector<1x8x16xf32>
    %53 = arith.addf %48, %52 : vector<1x8x16xf32>
    %54 = arith.truncf %53 : vector<1x8x16xf32> to vector<1x8x16xbf16>
    %cst_28 = arith.constant dense<0.000000e+00> : vector<1x8x16xf32>
    %55 = tpu.matmul %47, %34, %cst_28 {dimension_numbers = #tpu.dot_dimension_numbers<[2], [2], [1], [1], [0, 0, 0, 1, 1, 1], [0], [0]>} : vector<1x8x32xbf16>, vector<1x16x32xbf16>, vector<1x8x16xf32> -> vector<1x8x16xf32>
    %c0_29 = arith.constant 0 : index
    %c0_30 = arith.constant 0 : index
    %c0_31 = arith.constant 0 : index
    %56 = vector.load %arg10[%c0_29, %c0_30, %c0_31] : memref<4x8x1xf32, #tpu.memory_space<vmem>>, vector<1x8x1xf32>
    %57 = vector.shape_cast %56 : vector<1x8x1xf32> to vector<8x1xf32>
    %58 = vector.shape_cast %57 : vector<8x1xf32> to vector<1x8x1xf32>
    %59 = vector.broadcast %58 : vector<1x8x1xf32> to vector<1x8x16xf32>
    %60 = arith.addf %55, %59 : vector<1x8x16xf32>
    %61 = arith.truncf %60 : vector<1x8x16xf32> to vector<1x8x16xbf16>
    %cst_32 = arith.constant dense<0.000000e+00> : vector<1x8x8xf32>
    %62 = tpu.matmul %54, %39, %cst_32 {dimension_numbers = #tpu.dot_dimension_numbers<[2], [1], [1], [2], [0, 0, 0, 1, 1, 2], [0], [0]>} : vector<1x8x16xbf16>, vector<1x16x8xbf16>, vector<1x8x8xf32> -> vector<1x8x8xf32>
    %63 = arith.truncf %62 : vector<1x8x8xf32> to vector<1x8x8xbf16>
    %cst_33 = arith.constant dense<0.000000e+00> : vector<1x8x8xf32>
    %64 = tpu.matmul %61, %41, %cst_33 {dimension_numbers = #tpu.dot_dimension_numbers<[2], [1], [1], [2], [0, 0, 0, 1, 1, 2], [0], [0]>} : vector<1x8x16xbf16>, vector<1x16x8xbf16>, vector<1x8x8xf32> -> vector<1x8x8xf32>
    %65 = arith.truncf %64 : vector<1x8x8xf32> to vector<1x8x8xbf16>
    %cst_34 = arith.constant dense<0.000000e+00> : vector<1x16x8xf32>
    %66 = tpu.matmul %37, %63, %cst_34 {dimension_numbers = #tpu.dot_dimension_numbers<[2], [2], [1], [1], [0, 0, 0, 1, 1, 1], [0], [0]>} : vector<1x16x8xbf16>, vector<1x8x8xbf16>, vector<1x16x8xf32> -> vector<1x16x8xf32>
    %67 = vector.extract_strided_slice %35 {offsets = [0, 0, 0], sizes = [1, 1, 8], strides = [1, 1, 1]} : vector<1x1x16xf32> to vector<1x1x8xf32>
    %68 = vector.broadcast %67 : vector<1x1x8xf32> to vector<1x16x8xf32>
    %69 = arith.addf %66, %68 : vector<1x16x8xf32>
    %cst_35 = arith.constant dense<0xFF800000> : vector<1x16xf32>
    %70 = vector.multi_reduction <maximumf>, %69, %cst_35 [2] : vector<1x16x8xf32> to vector<1x16xf32>
    %71 = vector.shape_cast %70 : vector<1x16xf32> to vector<1x16x1xf32>
    %72 = vector.broadcast %71 : vector<1x16x1xf32> to vector<1x16x8xf32>
    %73 = arith.subf %69, %72 : vector<1x16x8xf32>
    %74 = math.exp %73 : vector<1x16x8xf32>
    %cst_36 = arith.constant dense<0.000000e+00> : vector<1x16xf32>
    %75 = vector.multi_reduction <add>, %74, %cst_36 [2] : vector<1x16x8xf32> to vector<1x16xf32>
    %76 = vector.shape_cast %75 : vector<1x16xf32> to vector<1x16x1xf32>
    %77 = tpu.reciprocal %76 {approx = true} : vector<1x16x1xf32> -> vector<1x16x1xf32>
    %78 = vector.broadcast %77 : vector<1x16x1xf32> to vector<1x16x8xf32>
    %79 = arith.mulf %74, %78 : vector<1x16x8xf32>
    %80 = arith.truncf %79 : vector<1x16x8xf32> to vector<1x16x8xbf16>
    %cst_37 = arith.constant dense<0.000000e+00> : vector<1x16x8xf32>
    %81 = tpu.matmul %80, %65, %cst_37 {dimension_numbers = #tpu.dot_dimension_numbers<[2], [1], [1], [2], [0, 0, 0, 1, 1, 2], [0], [0]>} : vector<1x16x8xbf16>, vector<1x8x8xbf16>, vector<1x16x8xf32> -> vector<1x16x8xf32>
    %82 = vector.extract_strided_slice %33 {offsets = [0, 0, 8], sizes = [1, 16, 8], strides = [1, 1, 1]} : vector<1x16x96xf32> to vector<1x16x8xf32>
    %83 = arith.truncf %82 : vector<1x16x8xf32> to vector<1x16x8xbf16>
    %84 = vector.extract_strided_slice %33 {offsets = [0, 0, 40], sizes = [1, 16, 8], strides = [1, 1, 1]} : vector<1x16x96xf32> to vector<1x16x8xf32>
    %85 = arith.truncf %84 : vector<1x16x8xf32> to vector<1x16x8xbf16>
    %86 = vector.extract_strided_slice %33 {offsets = [0, 0, 72], sizes = [1, 16, 8], strides = [1, 1, 1]} : vector<1x16x96xf32> to vector<1x16x8xf32>
    %87 = arith.truncf %86 : vector<1x16x8xf32> to vector<1x16x8xbf16>
    %c1 = arith.constant 1 : index
    %c0_38 = arith.constant 0 : index
    %c0_39 = arith.constant 0 : index
    %88 = vector.load %arg7[%c1, %c0_38, %c0_39] : memref<4x8x32xbf16, #tpu.memory_space<vmem>>, vector<1x8x32xbf16>
    %89 = vector.shape_cast %88 : vector<1x8x32xbf16> to vector<8x32xbf16>
    %90 = vector.shape_cast %89 : vector<8x32xbf16> to vector<1x8x32xbf16>
    %c1_40 = arith.constant 1 : index
    %c0_41 = arith.constant 0 : index
    %c0_42 = arith.constant 0 : index
    %91 = vector.load %arg9[%c1_40, %c0_41, %c0_42] : memref<4x8x32xbf16, #tpu.memory_space<vmem>>, vector<1x8x32xbf16>
    %92 = vector.shape_cast %91 : vector<1x8x32xbf16> to vector<8x32xbf16>
    %93 = vector.shape_cast %92 : vector<8x32xbf16> to vector<1x8x32xbf16>
    %cst_43 = arith.constant dense<0.000000e+00> : vector<1x8x16xf32>
    %94 = tpu.matmul %90, %34, %cst_43 {dimension_numbers = #tpu.dot_dimension_numbers<[2], [2], [1], [1], [0, 0, 0, 1, 1, 1], [0], [0]>} : vector<1x8x32xbf16>, vector<1x16x32xbf16>, vector<1x8x16xf32> -> vector<1x8x16xf32>
    %c1_44 = arith.constant 1 : index
    %c0_45 = arith.constant 0 : index
    %c0_46 = arith.constant 0 : index
    %95 = vector.load %arg8[%c1_44, %c0_45, %c0_46] : memref<4x8x1xf32, #tpu.memory_space<vmem>>, vector<1x8x1xf32>
    %96 = vector.shape_cast %95 : vector<1x8x1xf32> to vector<8x1xf32>
    %97 = vector.shape_cast %96 : vector<8x1xf32> to vector<1x8x1xf32>
    %98 = vector.broadcast %97 : vector<1x8x1xf32> to vector<1x8x16xf32>
    %99 = arith.addf %94, %98 : vector<1x8x16xf32>
    %100 = arith.truncf %99 : vector<1x8x16xf32> to vector<1x8x16xbf16>
    %cst_47 = arith.constant dense<0.000000e+00> : vector<1x8x16xf32>
    %101 = tpu.matmul %93, %34, %cst_47 {dimension_numbers = #tpu.dot_dimension_numbers<[2], [2], [1], [1], [0, 0, 0, 1, 1, 1], [0], [0]>} : vector<1x8x32xbf16>, vector<1x16x32xbf16>, vector<1x8x16xf32> -> vector<1x8x16xf32>
    %c1_48 = arith.constant 1 : index
    %c0_49 = arith.constant 0 : index
    %c0_50 = arith.constant 0 : index
    %102 = vector.load %arg10[%c1_48, %c0_49, %c0_50] : memref<4x8x1xf32, #tpu.memory_space<vmem>>, vector<1x8x1xf32>
    %103 = vector.shape_cast %102 : vector<1x8x1xf32> to vector<8x1xf32>
    %104 = vector.shape_cast %103 : vector<8x1xf32> to vector<1x8x1xf32>
    %105 = vector.broadcast %104 : vector<1x8x1xf32> to vector<1x8x16xf32>
    %106 = arith.addf %101, %105 : vector<1x8x16xf32>
    %107 = arith.truncf %106 : vector<1x8x16xf32> to vector<1x8x16xbf16>
    %cst_51 = arith.constant dense<0.000000e+00> : vector<1x8x8xf32>
    %108 = tpu.matmul %100, %85, %cst_51 {dimension_numbers = #tpu.dot_dimension_numbers<[2], [1], [1], [2], [0, 0, 0, 1, 1, 2], [0], [0]>} : vector<1x8x16xbf16>, vector<1x16x8xbf16>, vector<1x8x8xf32> -> vector<1x8x8xf32>
    %109 = arith.truncf %108 : vector<1x8x8xf32> to vector<1x8x8xbf16>
    %cst_52 = arith.constant dense<0.000000e+00> : vector<1x8x8xf32>
    %110 = tpu.matmul %107, %87, %cst_52 {dimension_numbers = #tpu.dot_dimension_numbers<[2], [1], [1], [2], [0, 0, 0, 1, 1, 2], [0], [0]>} : vector<1x8x16xbf16>, vector<1x16x8xbf16>, vector<1x8x8xf32> -> vector<1x8x8xf32>
    %111 = arith.truncf %110 : vector<1x8x8xf32> to vector<1x8x8xbf16>
    %cst_53 = arith.constant dense<0.000000e+00> : vector<1x16x8xf32>
    %112 = tpu.matmul %83, %109, %cst_53 {dimension_numbers = #tpu.dot_dimension_numbers<[2], [2], [1], [1], [0, 0, 0, 1, 1, 1], [0], [0]>} : vector<1x16x8xbf16>, vector<1x8x8xbf16>, vector<1x16x8xf32> -> vector<1x16x8xf32>
    %113 = vector.extract_strided_slice %35 {offsets = [0, 0, 0], sizes = [1, 1, 8], strides = [1, 1, 1]} : vector<1x1x16xf32> to vector<1x1x8xf32>
    %114 = vector.broadcast %113 : vector<1x1x8xf32> to vector<1x16x8xf32>
    %115 = arith.addf %112, %114 : vector<1x16x8xf32>
    %cst_54 = arith.constant dense<0xFF800000> : vector<1x16xf32>
    %116 = vector.multi_reduction <maximumf>, %115, %cst_54 [2] : vector<1x16x8xf32> to vector<1x16xf32>
    %117 = vector.shape_cast %116 : vector<1x16xf32> to vector<1x16x1xf32>
    %118 = vector.broadcast %117 : vector<1x16x1xf32> to vector<1x16x8xf32>
    %119 = arith.subf %115, %118 : vector<1x16x8xf32>
    %120 = math.exp %119 : vector<1x16x8xf32>
    %cst_55 = arith.constant dense<0.000000e+00> : vector<1x16xf32>
    %121 = vector.multi_reduction <add>, %120, %cst_55 [2] : vector<1x16x8xf32> to vector<1x16xf32>
    %122 = vector.shape_cast %121 : vector<1x16xf32> to vector<1x16x1xf32>
    %123 = tpu.reciprocal %122 {approx = true} : vector<1x16x1xf32> -> vector<1x16x1xf32>
    %124 = vector.broadcast %123 : vector<1x16x1xf32> to vector<1x16x8xf32>
    %125 = arith.mulf %120, %124 : vector<1x16x8xf32>
    %126 = arith.truncf %125 : vector<1x16x8xf32> to vector<1x16x8xbf16>
    %cst_56 = arith.constant dense<0.000000e+00> : vector<1x16x8xf32>
    %127 = tpu.matmul %126, %111, %cst_56 {dimension_numbers = #tpu.dot_dimension_numbers<[2], [1], [1], [2], [0, 0, 0, 1, 1, 2], [0], [0]>} : vector<1x16x8xbf16>, vector<1x8x8xbf16>, vector<1x16x8xf32> -> vector<1x16x8xf32>
    %128 = vector.extract_strided_slice %33 {offsets = [0, 0, 16], sizes = [1, 16, 8], strides = [1, 1, 1]} : vector<1x16x96xf32> to vector<1x16x8xf32>
    %129 = arith.truncf %128 : vector<1x16x8xf32> to vector<1x16x8xbf16>
    %130 = vector.extract_strided_slice %33 {offsets = [0, 0, 48], sizes = [1, 16, 8], strides = [1, 1, 1]} : vector<1x16x96xf32> to vector<1x16x8xf32>
    %131 = arith.truncf %130 : vector<1x16x8xf32> to vector<1x16x8xbf16>
    %132 = vector.extract_strided_slice %33 {offsets = [0, 0, 80], sizes = [1, 16, 8], strides = [1, 1, 1]} : vector<1x16x96xf32> to vector<1x16x8xf32>
    %133 = arith.truncf %132 : vector<1x16x8xf32> to vector<1x16x8xbf16>
    %c2 = arith.constant 2 : index
    %c0_57 = arith.constant 0 : index
    %c0_58 = arith.constant 0 : index
    %134 = vector.load %arg7[%c2, %c0_57, %c0_58] : memref<4x8x32xbf16, #tpu.memory_space<vmem>>, vector<1x8x32xbf16>
    %135 = vector.shape_cast %134 : vector<1x8x32xbf16> to vector<8x32xbf16>
    %136 = vector.shape_cast %135 : vector<8x32xbf16> to vector<1x8x32xbf16>
    %c2_59 = arith.constant 2 : index
    %c0_60 = arith.constant 0 : index
    %c0_61 = arith.constant 0 : index
    %137 = vector.load %arg9[%c2_59, %c0_60, %c0_61] : memref<4x8x32xbf16, #tpu.memory_space<vmem>>, vector<1x8x32xbf16>
    %138 = vector.shape_cast %137 : vector<1x8x32xbf16> to vector<8x32xbf16>
    %139 = vector.shape_cast %138 : vector<8x32xbf16> to vector<1x8x32xbf16>
    %cst_62 = arith.constant dense<0.000000e+00> : vector<1x8x16xf32>
    %140 = tpu.matmul %136, %34, %cst_62 {dimension_numbers = #tpu.dot_dimension_numbers<[2], [2], [1], [1], [0, 0, 0, 1, 1, 1], [0], [0]>} : vector<1x8x32xbf16>, vector<1x16x32xbf16>, vector<1x8x16xf32> -> vector<1x8x16xf32>
    %c2_63 = arith.constant 2 : index
    %c0_64 = arith.constant 0 : index
    %c0_65 = arith.constant 0 : index
    %141 = vector.load %arg8[%c2_63, %c0_64, %c0_65] : memref<4x8x1xf32, #tpu.memory_space<vmem>>, vector<1x8x1xf32>
    %142 = vector.shape_cast %141 : vector<1x8x1xf32> to vector<8x1xf32>
    %143 = vector.shape_cast %142 : vector<8x1xf32> to vector<1x8x1xf32>
    %144 = vector.broadcast %143 : vector<1x8x1xf32> to vector<1x8x16xf32>
    %145 = arith.addf %140, %144 : vector<1x8x16xf32>
    %146 = arith.truncf %145 : vector<1x8x16xf32> to vector<1x8x16xbf16>
    %cst_66 = arith.constant dense<0.000000e+00> : vector<1x8x16xf32>
    %147 = tpu.matmul %139, %34, %cst_66 {dimension_numbers = #tpu.dot_dimension_numbers<[2], [2], [1], [1], [0, 0, 0, 1, 1, 1], [0], [0]>} : vector<1x8x32xbf16>, vector<1x16x32xbf16>, vector<1x8x16xf32> -> vector<1x8x16xf32>
    %c2_67 = arith.constant 2 : index
    %c0_68 = arith.constant 0 : index
    %c0_69 = arith.constant 0 : index
    %148 = vector.load %arg10[%c2_67, %c0_68, %c0_69] : memref<4x8x1xf32, #tpu.memory_space<vmem>>, vector<1x8x1xf32>
    %149 = vector.shape_cast %148 : vector<1x8x1xf32> to vector<8x1xf32>
    %150 = vector.shape_cast %149 : vector<8x1xf32> to vector<1x8x1xf32>
    %151 = vector.broadcast %150 : vector<1x8x1xf32> to vector<1x8x16xf32>
    %152 = arith.addf %147, %151 : vector<1x8x16xf32>
    %153 = arith.truncf %152 : vector<1x8x16xf32> to vector<1x8x16xbf16>
    %cst_70 = arith.constant dense<0.000000e+00> : vector<1x8x8xf32>
    %154 = tpu.matmul %146, %131, %cst_70 {dimension_numbers = #tpu.dot_dimension_numbers<[2], [1], [1], [2], [0, 0, 0, 1, 1, 2], [0], [0]>} : vector<1x8x16xbf16>, vector<1x16x8xbf16>, vector<1x8x8xf32> -> vector<1x8x8xf32>
    %155 = arith.truncf %154 : vector<1x8x8xf32> to vector<1x8x8xbf16>
    %cst_71 = arith.constant dense<0.000000e+00> : vector<1x8x8xf32>
    %156 = tpu.matmul %153, %133, %cst_71 {dimension_numbers = #tpu.dot_dimension_numbers<[2], [1], [1], [2], [0, 0, 0, 1, 1, 2], [0], [0]>} : vector<1x8x16xbf16>, vector<1x16x8xbf16>, vector<1x8x8xf32> -> vector<1x8x8xf32>
    %157 = arith.truncf %156 : vector<1x8x8xf32> to vector<1x8x8xbf16>
    %cst_72 = arith.constant dense<0.000000e+00> : vector<1x16x8xf32>
    %158 = tpu.matmul %129, %155, %cst_72 {dimension_numbers = #tpu.dot_dimension_numbers<[2], [2], [1], [1], [0, 0, 0, 1, 1, 1], [0], [0]>} : vector<1x16x8xbf16>, vector<1x8x8xbf16>, vector<1x16x8xf32> -> vector<1x16x8xf32>
    %159 = vector.extract_strided_slice %35 {offsets = [0, 0, 0], sizes = [1, 1, 8], strides = [1, 1, 1]} : vector<1x1x16xf32> to vector<1x1x8xf32>
    %160 = vector.broadcast %159 : vector<1x1x8xf32> to vector<1x16x8xf32>
    %161 = arith.addf %158, %160 : vector<1x16x8xf32>
    %cst_73 = arith.constant dense<0xFF800000> : vector<1x16xf32>
    %162 = vector.multi_reduction <maximumf>, %161, %cst_73 [2] : vector<1x16x8xf32> to vector<1x16xf32>
    %163 = vector.shape_cast %162 : vector<1x16xf32> to vector<1x16x1xf32>
    %164 = vector.broadcast %163 : vector<1x16x1xf32> to vector<1x16x8xf32>
    %165 = arith.subf %161, %164 : vector<1x16x8xf32>
    %166 = math.exp %165 : vector<1x16x8xf32>
    %cst_74 = arith.constant dense<0.000000e+00> : vector<1x16xf32>
    %167 = vector.multi_reduction <add>, %166, %cst_74 [2] : vector<1x16x8xf32> to vector<1x16xf32>
    %168 = vector.shape_cast %167 : vector<1x16xf32> to vector<1x16x1xf32>
    %169 = tpu.reciprocal %168 {approx = true} : vector<1x16x1xf32> -> vector<1x16x1xf32>
    %170 = vector.broadcast %169 : vector<1x16x1xf32> to vector<1x16x8xf32>
    %171 = arith.mulf %166, %170 : vector<1x16x8xf32>
    %172 = arith.truncf %171 : vector<1x16x8xf32> to vector<1x16x8xbf16>
    %cst_75 = arith.constant dense<0.000000e+00> : vector<1x16x8xf32>
    %173 = tpu.matmul %172, %157, %cst_75 {dimension_numbers = #tpu.dot_dimension_numbers<[2], [1], [1], [2], [0, 0, 0, 1, 1, 2], [0], [0]>} : vector<1x16x8xbf16>, vector<1x8x8xbf16>, vector<1x16x8xf32> -> vector<1x16x8xf32>
    %174 = vector.extract_strided_slice %33 {offsets = [0, 0, 24], sizes = [1, 16, 8], strides = [1, 1, 1]} : vector<1x16x96xf32> to vector<1x16x8xf32>
    %175 = arith.truncf %174 : vector<1x16x8xf32> to vector<1x16x8xbf16>
    %176 = vector.extract_strided_slice %33 {offsets = [0, 0, 56], sizes = [1, 16, 8], strides = [1, 1, 1]} : vector<1x16x96xf32> to vector<1x16x8xf32>
    %177 = arith.truncf %176 : vector<1x16x8xf32> to vector<1x16x8xbf16>
    %178 = vector.extract_strided_slice %33 {offsets = [0, 0, 88], sizes = [1, 16, 8], strides = [1, 1, 1]} : vector<1x16x96xf32> to vector<1x16x8xf32>
    %179 = arith.truncf %178 : vector<1x16x8xf32> to vector<1x16x8xbf16>
    %c3 = arith.constant 3 : index
    %c0_76 = arith.constant 0 : index
    %c0_77 = arith.constant 0 : index
    %180 = vector.load %arg7[%c3, %c0_76, %c0_77] : memref<4x8x32xbf16, #tpu.memory_space<vmem>>, vector<1x8x32xbf16>
    %181 = vector.shape_cast %180 : vector<1x8x32xbf16> to vector<8x32xbf16>
    %182 = vector.shape_cast %181 : vector<8x32xbf16> to vector<1x8x32xbf16>
    %c3_78 = arith.constant 3 : index
    %c0_79 = arith.constant 0 : index
    %c0_80 = arith.constant 0 : index
    %183 = vector.load %arg9[%c3_78, %c0_79, %c0_80] : memref<4x8x32xbf16, #tpu.memory_space<vmem>>, vector<1x8x32xbf16>
    %184 = vector.shape_cast %183 : vector<1x8x32xbf16> to vector<8x32xbf16>
    %185 = vector.shape_cast %184 : vector<8x32xbf16> to vector<1x8x32xbf16>
    %cst_81 = arith.constant dense<0.000000e+00> : vector<1x8x16xf32>
    %186 = tpu.matmul %182, %34, %cst_81 {dimension_numbers = #tpu.dot_dimension_numbers<[2], [2], [1], [1], [0, 0, 0, 1, 1, 1], [0], [0]>} : vector<1x8x32xbf16>, vector<1x16x32xbf16>, vector<1x8x16xf32> -> vector<1x8x16xf32>
    %c3_82 = arith.constant 3 : index
    %c0_83 = arith.constant 0 : index
    %c0_84 = arith.constant 0 : index
    %187 = vector.load %arg8[%c3_82, %c0_83, %c0_84] : memref<4x8x1xf32, #tpu.memory_space<vmem>>, vector<1x8x1xf32>
    %188 = vector.shape_cast %187 : vector<1x8x1xf32> to vector<8x1xf32>
    %189 = vector.shape_cast %188 : vector<8x1xf32> to vector<1x8x1xf32>
    %190 = vector.broadcast %189 : vector<1x8x1xf32> to vector<1x8x16xf32>
    %191 = arith.addf %186, %190 : vector<1x8x16xf32>
    %192 = arith.truncf %191 : vector<1x8x16xf32> to vector<1x8x16xbf16>
    %cst_85 = arith.constant dense<0.000000e+00> : vector<1x8x16xf32>
    %193 = tpu.matmul %185, %34, %cst_85 {dimension_numbers = #tpu.dot_dimension_numbers<[2], [2], [1], [1], [0, 0, 0, 1, 1, 1], [0], [0]>} : vector<1x8x32xbf16>, vector<1x16x32xbf16>, vector<1x8x16xf32> -> vector<1x8x16xf32>
    %c3_86 = arith.constant 3 : index
    %c0_87 = arith.constant 0 : index
    %c0_88 = arith.constant 0 : index
    %194 = vector.load %arg10[%c3_86, %c0_87, %c0_88] : memref<4x8x1xf32, #tpu.memory_space<vmem>>, vector<1x8x1xf32>
    %195 = vector.shape_cast %194 : vector<1x8x1xf32> to vector<8x1xf32>
    %196 = vector.shape_cast %195 : vector<8x1xf32> to vector<1x8x1xf32>
    %197 = vector.broadcast %196 : vector<1x8x1xf32> to vector<1x8x16xf32>
    %198 = arith.addf %193, %197 : vector<1x8x16xf32>
    %199 = arith.truncf %198 : vector<1x8x16xf32> to vector<1x8x16xbf16>
    %cst_89 = arith.constant dense<0.000000e+00> : vector<1x8x8xf32>
    %200 = tpu.matmul %192, %177, %cst_89 {dimension_numbers = #tpu.dot_dimension_numbers<[2], [1], [1], [2], [0, 0, 0, 1, 1, 2], [0], [0]>} : vector<1x8x16xbf16>, vector<1x16x8xbf16>, vector<1x8x8xf32> -> vector<1x8x8xf32>
    %201 = arith.truncf %200 : vector<1x8x8xf32> to vector<1x8x8xbf16>
    %cst_90 = arith.constant dense<0.000000e+00> : vector<1x8x8xf32>
    %202 = tpu.matmul %199, %179, %cst_90 {dimension_numbers = #tpu.dot_dimension_numbers<[2], [1], [1], [2], [0, 0, 0, 1, 1, 2], [0], [0]>} : vector<1x8x16xbf16>, vector<1x16x8xbf16>, vector<1x8x8xf32> -> vector<1x8x8xf32>
    %203 = arith.truncf %202 : vector<1x8x8xf32> to vector<1x8x8xbf16>
    %cst_91 = arith.constant dense<0.000000e+00> : vector<1x16x8xf32>
    %204 = tpu.matmul %175, %201, %cst_91 {dimension_numbers = #tpu.dot_dimension_numbers<[2], [2], [1], [1], [0, 0, 0, 1, 1, 1], [0], [0]>} : vector<1x16x8xbf16>, vector<1x8x8xbf16>, vector<1x16x8xf32> -> vector<1x16x8xf32>
    %205 = vector.extract_strided_slice %35 {offsets = [0, 0, 0], sizes = [1, 1, 8], strides = [1, 1, 1]} : vector<1x1x16xf32> to vector<1x1x8xf32>
    %206 = vector.broadcast %205 : vector<1x1x8xf32> to vector<1x16x8xf32>
    %207 = arith.addf %204, %206 : vector<1x16x8xf32>
    %cst_92 = arith.constant dense<0xFF800000> : vector<1x16xf32>
    %208 = vector.multi_reduction <maximumf>, %207, %cst_92 [2] : vector<1x16x8xf32> to vector<1x16xf32>
    %209 = vector.shape_cast %208 : vector<1x16xf32> to vector<1x16x1xf32>
    %210 = vector.broadcast %209 : vector<1x16x1xf32> to vector<1x16x8xf32>
    %211 = arith.subf %207, %210 : vector<1x16x8xf32>
    %212 = math.exp %211 : vector<1x16x8xf32>
    %cst_93 = arith.constant dense<0.000000e+00> : vector<1x16xf32>
    %213 = vector.multi_reduction <add>, %212, %cst_93 [2] : vector<1x16x8xf32> to vector<1x16xf32>
    %214 = vector.shape_cast %213 : vector<1x16xf32> to vector<1x16x1xf32>
    %215 = tpu.reciprocal %214 {approx = true} : vector<1x16x1xf32> -> vector<1x16x1xf32>
    %216 = vector.broadcast %215 : vector<1x16x1xf32> to vector<1x16x8xf32>
    %217 = arith.mulf %212, %216 : vector<1x16x8xf32>
    %218 = arith.truncf %217 : vector<1x16x8xf32> to vector<1x16x8xbf16>
    %cst_94 = arith.constant dense<0.000000e+00> : vector<1x16x8xf32>
    %219 = tpu.matmul %218, %203, %cst_94 {dimension_numbers = #tpu.dot_dimension_numbers<[2], [1], [1], [2], [0, 0, 0, 1, 1, 2], [0], [0]>} : vector<1x16x8xbf16>, vector<1x8x8xbf16>, vector<1x16x8xf32> -> vector<1x16x8xf32>
    %220 = tpu.concatenate %81, %127, %173, %219 in 2 : vector<1x16x8xf32>, vector<1x16x8xf32>, vector<1x16x8xf32>, vector<1x16x8xf32> -> vector<1x16x32xf32>
    %221 = vector.shape_cast %220 : vector<1x16x32xf32> to vector<16x32xf32>
    %222 = arith.truncf %221 : vector<16x32xf32> to vector<16x32xbf16>
    %c0_95 = arith.constant 0 : index
    %c0_96 = arith.constant 0 : index
    %223 = vector.load %arg11[%c0_95, %c0_96] : memref<32x32xbf16, #tpu.memory_space<vmem>>, vector<32x32xbf16>
    %cst_97 = arith.constant dense<0.000000e+00> : vector<16x32xf32>
    %224 = tpu.matmul %222, %223, %cst_97 {dimension_numbers = #tpu.dot_dimension_numbers<[1], [0], [0], [1], [0, 0, 1, 1], [], []>} : vector<16x32xbf16>, vector<32x32xbf16>, vector<16x32xf32> -> vector<16x32xf32>
    %c0_98 = arith.constant 0 : index
    %c0_99 = arith.constant 0 : index
    %225 = vector.load %arg12[%c0_98, %c0_99] : memref<1x32xf32, #tpu.memory_space<vmem>>, vector<1x32xf32>
    %226 = vector.broadcast %225 : vector<1x32xf32> to vector<16x32xf32>
    %227 = arith.addf %224, %226 : vector<16x32xf32>
    %228 = arith.addf %0, %227 : vector<16x32xf32>
    %c0_100 = arith.constant 0 : index
    %c0_101 = arith.constant 0 : index
    %229 = vector.load %arg13[%c0_100, %c0_101] : memref<1x32xf32, #tpu.memory_space<vmem>>, vector<1x32xf32>
    %c0_102 = arith.constant 0 : index
    %c0_103 = arith.constant 0 : index
    %230 = vector.load %arg14[%c0_102, %c0_103] : memref<1x32xf32, #tpu.memory_space<vmem>>, vector<1x32xf32>
    %cst_104 = arith.constant dense<0.000000e+00> : vector<16xf32>
    %231 = vector.multi_reduction <add>, %228, %cst_104 [1] : vector<16x32xf32> to vector<16xf32>
    %232 = vector.shape_cast %231 : vector<16xf32> to vector<16x1xf32>
    %cst_105 = arith.constant 3.200000e+01 : f32
    %233 = vector.broadcast %cst_105 : f32 to vector<16x1xf32>
    %234 = arith.divf %232, %233 : vector<16x1xf32>
    %235 = vector.broadcast %234 : vector<16x1xf32> to vector<16x32xf32>
    %236 = arith.subf %228, %235 : vector<16x32xf32>
    %237 = arith.mulf %236, %236 : vector<16x32xf32>
    %cst_106 = arith.constant dense<0.000000e+00> : vector<16xf32>
    %238 = vector.multi_reduction <add>, %237, %cst_106 [1] : vector<16x32xf32> to vector<16xf32>
    %239 = vector.shape_cast %238 : vector<16xf32> to vector<16x1xf32>
    %cst_107 = arith.constant 3.100000e+01 : f32
    %240 = vector.broadcast %cst_107 : f32 to vector<16x1xf32>
    %241 = arith.divf %239, %240 : vector<16x1xf32>
    %242 = math.sqrt %241 : vector<16x1xf32>
    %cst_108 = arith.constant 9.99999997E-7 : f32
    %243 = vector.broadcast %cst_108 : f32 to vector<16x1xf32>
    %244 = arith.addf %242, %243 : vector<16x1xf32>
    %cst_109 = arith.constant 1.000000e+00 : f32
    %245 = vector.broadcast %cst_109 : f32 to vector<16x1xf32>
    %246 = arith.divf %245, %244 : vector<16x1xf32>
    %247 = vector.broadcast %234 : vector<16x1xf32> to vector<16x32xf32>
    %248 = arith.subf %228, %247 : vector<16x32xf32>
    %249 = vector.broadcast %229 : vector<1x32xf32> to vector<16x32xf32>
    %250 = arith.mulf %249, %248 : vector<16x32xf32>
    %251 = vector.broadcast %246 : vector<16x1xf32> to vector<16x32xf32>
    %252 = arith.mulf %250, %251 : vector<16x32xf32>
    %253 = vector.broadcast %230 : vector<1x32xf32> to vector<16x32xf32>
    %254 = arith.addf %252, %253 : vector<16x32xf32>
    %255 = arith.truncf %254 : vector<16x32xf32> to vector<16x32xbf16>
    %c0_110 = arith.constant 0 : index
    %c0_111 = arith.constant 0 : index
    %256 = vector.load %arg15[%c0_110, %c0_111] : memref<32x64xbf16, #tpu.memory_space<vmem>>, vector<32x64xbf16>
    %cst_112 = arith.constant dense<0.000000e+00> : vector<16x64xf32>
    %257 = tpu.matmul %255, %256, %cst_112 {dimension_numbers = #tpu.dot_dimension_numbers<[1], [0], [0], [1], [0, 0, 1, 1], [], []>} : vector<16x32xbf16>, vector<32x64xbf16>, vector<16x64xf32> -> vector<16x64xf32>
    %c0_113 = arith.constant 0 : index
    %c0_114 = arith.constant 0 : index
    %258 = vector.load %arg16[%c0_113, %c0_114] : memref<1x64xf32, #tpu.memory_space<vmem>>, vector<1x64xf32>
    %259 = vector.broadcast %258 : vector<1x64xf32> to vector<16x64xf32>
    %260 = arith.addf %257, %259 : vector<16x64xf32>
    %cst_115 = arith.constant 0.000000e+00 : f32
    %261 = vector.broadcast %cst_115 : f32 to vector<16x64xf32>
    %262 = arith.maximumf %260, %261 : vector<16x64xf32>
    %263 = arith.truncf %262 : vector<16x64xf32> to vector<16x64xbf16>
    %c0_116 = arith.constant 0 : index
    %c0_117 = arith.constant 0 : index
    %264 = vector.load %arg17[%c0_116, %c0_117] : memref<64x32xbf16, #tpu.memory_space<vmem>>, vector<64x32xbf16>
    %cst_118 = arith.constant dense<0.000000e+00> : vector<16x32xf32>
    %265 = tpu.matmul %263, %264, %cst_118 {dimension_numbers = #tpu.dot_dimension_numbers<[1], [0], [0], [1], [0, 0, 1, 1], [], []>} : vector<16x64xbf16>, vector<64x32xbf16>, vector<16x32xf32> -> vector<16x32xf32>
    %c0_119 = arith.constant 0 : index
    %c0_120 = arith.constant 0 : index
    %266 = vector.load %arg18[%c0_119, %c0_120] : memref<1x32xf32, #tpu.memory_space<vmem>>, vector<1x32xf32>
    %267 = vector.broadcast %266 : vector<1x32xf32> to vector<16x32xf32>
    %268 = arith.addf %265, %267 : vector<16x32xf32>
    %269 = arith.addf %228, %268 : vector<16x32xf32>
    %c0_121 = arith.constant 0 : index
    %c0_122 = arith.constant 0 : index
    %270 = vector.load %arg19[%c0_121, %c0_122] : memref<16x32xf32, #tpu.memory_space<vmem>>, vector<16x32xf32>
    tpu.vector_store %arg19[%c0_121, %c0_122], %269 {strides = array<i32>} : memref<16x32xf32, #tpu.memory_space<vmem>>, vector<16x32xf32>,
    return
  }
  func.func @transform_0(%arg0: i32) -> (i32, i32) {
    %c0_i32 = arith.constant 0 : i32
    %c0_i32_0 = arith.constant 0 : i32
    return %arg0, %c0_i32 : i32, i32
  }
  func.func @transform_1(%arg0: i32) -> (i32, i32, i32) {
    %c0_i32 = arith.constant 0 : i32
    %c0_i32_0 = arith.constant 0 : i32
    %c0_i32_1 = arith.constant 0 : i32
    return %arg0, %c0_i32, %c0_i32_0 : i32, i32, i32
  }
  func.func @transform_2(%arg0: i32) -> (i32, i32) {
    %c0_i32 = arith.constant 0 : i32
    %c0_i32_0 = arith.constant 0 : i32
    %c0_i32_1 = arith.constant 0 : i32
    return %c0_i32, %c0_i32_0 : i32, i32
  }
  func.func @transform_3(%arg0: i32) -> (i32, i32) {
    %c0_i32 = arith.constant 0 : i32
    %c0_i32_0 = arith.constant 0 : i32
    %c0_i32_1 = arith.constant 0 : i32
    return %c0_i32, %c0_i32_0 : i32, i32
  }
  func.func @transform_4(%arg0: i32) -> (i32, i32) {
    %c0_i32 = arith.constant 0 : i32
    %c0_i32_0 = arith.constant 0 : i32
    %c0_i32_1 = arith.constant 0 : i32
    return %c0_i32, %c0_i32_0 : i32, i32
  }
  func.func @transform_5(%arg0: i32) -> (i32, i32) {
    %c0_i32 = arith.constant 0 : i32
    %c0_i32_0 = arith.constant 0 : i32
    %c0_i32_1 = arith.constant 0 : i32
    return %c0_i32, %c0_i32_0 : i32, i32
  }
  func.func @transform_6(%arg0: i32) -> (i32, i32, i32) {
    %c0_i32 = arith.constant 0 : i32
    %c0_i32_0 = arith.constant 0 : i32
    %c0_i32_1 = arith.constant 0 : i32
    %c0_i32_2 = arith.constant 0 : i32
    return %c0_i32, %c0_i32_0, %c0_i32_1 : i32, i32, i32
  }
  func.func @transform_7(%arg0: i32) -> (i32, i32, i32) {
    %c0_i32 = arith.constant 0 : i32
    %c0_i32_0 = arith.constant 0 : i32
    %c0_i32_1 = arith.constant 0 : i32
    %c0_i32_2 = arith.constant 0 : i32
    return %c0_i32, %c0_i32_0, %c0_i32_1 : i32, i32, i32
  }
  func.func @transform_8(%arg0: i32) -> (i32, i32, i32) {
    %c0_i32 = arith.constant 0 : i32
    %c0_i32_0 = arith.constant 0 : i32
    %c0_i32_1 = arith.constant 0 : i32
    %c0_i32_2 = arith.constant 0 : i32
    return %c0_i32, %c0_i32_0, %c0_i32_1 : i32, i32, i32
  }
  func.func @transform_9(%arg0: i32) -> (i32, i32, i32) {
    %c0_i32 = arith.constant 0 : i32
    %c0_i32_0 = arith.constant 0 : i32
    %c0_i32_1 = arith.constant 0 : i32
    %c0_i32_2 = arith.constant 0 : i32
    return %c0_i32, %c0_i32_0, %c0_i32_1 : i32, i32, i32
  }
  func.func @transform_10(%arg0: i32) -> (i32, i32) {
    %c0_i32 = arith.constant 0 : i32
    %c0_i32_0 = arith.constant 0 : i32
    %c0_i32_1 = arith.constant 0 : i32
    return %c0_i32, %c0_i32_0 : i32, i32
  }
  func.func @transform_11(%arg0: i32) -> (i32, i32) {
    %c0_i32 = arith.constant 0 : i32
    %c0_i32_0 = arith.constant 0 : i32
    %c0_i32_1 = arith.constant 0 : i32
    return %c0_i32, %c0_i32_0 : i32, i32
  }
  func.func @transform_12(%arg0: i32) -> (i32, i32) {
    %c0_i32 = arith.constant 0 : i32
    %c0_i32_0 = arith.constant 0 : i32
    %c0_i32_1 = arith.constant 0 : i32
    return %c0_i32, %c0_i32_0 : i32, i32
  }
  func.func @transform_13(%arg0: i32) -> (i32, i32) {
    %c0_i32 = arith.constant 0 : i32
    %c0_i32_0 = arith.constant 0 : i32
    %c0_i32_1 = arith.constant 0 : i32
    return %c0_i32, %c0_i32_0 : i32, i32
  }
  func.func @transform_14(%arg0: i32) -> (i32, i32) {
    %c0_i32 = arith.constant 0 : i32
    %c0_i32_0 = arith.constant 0 : i32
    %c0_i32_1 = arith.constant 0 : i32
    return %c0_i32, %c0_i32_0 : i32, i32
  }
  func.func @transform_15(%arg0: i32) -> (i32, i32) {
    %c0_i32 = arith.constant 0 : i32
    %c0_i32_0 = arith.constant 0 : i32
    %c0_i32_1 = arith.constant 0 : i32
    return %c0_i32, %c0_i32_0 : i32, i32
  }
  func.func @transform_16(%arg0: i32) -> (i32, i32) {
    %c0_i32 = arith.constant 0 : i32
    %c0_i32_0 = arith.constant 0 : i32
    %c0_i32_1 = arith.constant 0 : i32
    return %c0_i32, %c0_i32_0 : i32, i32
  }
  func.func @transform_17(%arg0: i32) -> (i32, i32) {
    %c0_i32 = arith.constant 0 : i32
    %c0_i32_0 = arith.constant 0 : i32
    %c0_i32_1 = arith.constant 0 : i32
    return %c0_i32, %c0_i32_0 : i32, i32
  }
  func.func @transform_18(%arg0: i32) -> (i32, i32) {
    %c0_i32 = arith.constant 0 : i32
    %c0_i32_0 = arith.constant 0 : i32
    return %arg0, %c0_i32 : i32, i32
  }
}

</mosaic_0001>

<bundles_post_ra>
// kernel: tpu_custom_call.1
= control target key start
LH: loop header
LB: loop body
LE: loop exit
PB: predicated region body
PF: predicated region fallthrough
CT: control target
= control target key end

     0   :  { %s3823_s0 = inlined_call_operand.vmem [shape: f32[32,32], index: 0, kind: input, shape index: {}]   ;;  %s3824_s1 = inlined_call_operand.hbm [shape: f32[2,1,16], index: 1, kind: input, shape index: {}]   ;;  %s3825_s2 = inlined_call_operand.hbm [shape: f32[1,32], index: 2, kind: input, shape index: {}]   ;;  %s3826_s3 = inlined_call_operand.hbm [shape: f32[1,32], index: 3, kind: input, shape index: {}]   ;;  %s3827_s4 = inlined_call_operand.vmem [shape: bf16[32,96], index: 4, kind: input, shape index: {}]   ;;  %s3828_s5 = inlined_call_operand.hbm [shape: f32[1,96], index: 5, kind: input, shape index: {}]   ;;  %s3829_s6 = inlined_call_operand.vmem [shape: bf16[4,8,32], index: 6, kind: input, shape index: {}]   ;;  %s3830_s7 = inlined_call_operand.vmem [shape: f32[4,8,1], index: 7, kind: input, shape index: {}]   ;;  %s3831_s8 = inlined_call_operand.vmem [shape: bf16[4,8,32], index: 8, kind: input, shape index: {}]   ;;  %s3832_s9 = inlined_call_operand.vmem [shape: f32[4,8,1], index: 9, kind: input, shape index: {}]   ;;  %s3833_s10 = inlined_call_operand.vmem [shape: bf16[32,32], index: 10, kind: input, shape index: {}]   ;;  %s3834_s11 = inlined_call_operand.vmem [shape: f32[1,32], index: 11, kind: input, shape index: {}]   ;;  %s3835_s12 = inlined_call_operand.vmem [shape: f32[1,32], index: 12, kind: input, shape index: {}]   ;;  %s3836_s13 = inlined_call_operand.vmem [shape: f32[1,32], index: 13, kind: input, shape index: {}]   ;;  %s3837_s14 = inlined_call_operand.vmem [shape: bf16[32,64], index: 14, kind: input, shape index: {}]   ;;  %s3838_s15 = inlined_call_operand.vmem [shape: f32[1,64], index: 15, kind: input, shape index: {}]   ;;  %s3839_s16 = inlined_call_operand.vmem [shape: bf16[64,32], index: 16, kind: input, shape index: {}]   ;;  %s3840_s17 = inlined_call_operand.vmem [shape: f32[1,32], index: 17, kind: input, shape index: {}]   ;;  %s3841_s18 = inlined_call_operand.hbm [shape: f32[32,32], index: 18, kind: output, shape index: {}]  }
   0x1   :  { %3856 = sst [smem:[#allocation22_spill]] %s3823_s0 }
   0x2   :  { %3857 = sst [smem:[#allocation23_spill]] %s3824_s1 }
   0x3   :  { %3858 = sst [smem:[#allocation24_spill]] %s3825_s2 }
   0x4   :  { %3859 = sst [smem:[#allocation25_spill]] %s3826_s3 }
   0x5   :  { %3860 = sst [smem:[#allocation26_spill]] %s3828_s5 }
   0x6   :  { %3861 = sst [smem:[#allocation27_spill]] %s3840_s17 }
   0x7   :  { %3862 = sst [smem:[#allocation28_spill]] %s3841_s18 }
   0x8   :  { %23 = vsyncpa [#allocation3], 0 }
   0x9   :  { %25 = vsyncpa [#allocation3 + $0x1], 0 }
   0xa   :  { %26 = vsyncpa [#allocation6], 0 }
   0xb   :  { %27 = vsyncpa [#allocation9], 0 }
   0xc   :  { %28 = vsyncpa [#allocation4], 0 }
   0xd   :  { %30 = vsyncpa [#allocation4 + $0x1], 0  ;;  %s3301_s27 = smov 0   ;;  %s3303_s28 = smov 0  }
   0xe   :  { %s3305_s29 = smov 0   ;;  %s3307_s30 = smov 0  }
   0xf LB: > { %3863 = sst [smem:[#allocation15_spill]] %s3169_s27  ;;  %s3322_s0 = sadd.s32 4294967295, %s3181_s30   ;;  %s3181_s30 = sphi %s3307_s30, %s3897_s30   ;;  %s3177_s29 = sphi %s3305_s29, %s3899_s29   ;;  %s3173_s28 = sphi %s3303_s28, %s3901_s28   ;;  %s3169_s27 = sphi %s3301_s27, %s3900_s27  }
  0x10   : > { %3864 = sst [smem:[#allocation16_spill]] %s3177_s29  ;;  %s2510_s19 = sadd.s32 4294967294, %s3181_s30  }
  0x11   : > { %3865 = sst [smem:[#allocation17_spill]] %s3181_s30  ;;  %p82_p0 = scmp.ne.s32.totalorder %s3173_s28, %s3169_s27 }
  0x12   : > { %p3846_p1 = scmp.eq.s32.totalorder %s3322_s0, 0  ;;  %p448_p3 = scmp.eq.s32.totalorder %s2510_s19, 1 }
  0x13   : > { %p2511_p5 = scmp.ge.s32.totalorder %s3181_s30, 1  ;;  %p455_p7 = scmp.lt.s32.totalorder %s3181_s30, 3 }
  0x14   : > { %p3331_p4 = por %p3846_p1, %p82_p0  ;;  %p3336_p6 = por %p448_p3, %p82_p0 }
  0x15   : > { %p3341_p8 = pnand %p2511_p5, %p455_p7  ;;  %s3183_s22 = smov [#allocation5]  }
  0x16   : > { %s3866_s1 = scalar_select %p3331_p4, 1, 0 }
  0x17   : > { %s3867_s20 = scalar_select %p3336_p6, 1, 0 }
  0x18   : > { %s3869_s21 = scalar_select %p3341_p8, 1, 0 }
  0x19   : > { %3868 = sst [smem:[#allocation18_spill]] %s3867_s20  ;;  %s468_s2 = sshll.u32 %s3183_s22, 4  ;;  %s469_s2 = int_to_ptr.vmem [resolvable:$true] %s468_s2 }
  0x1a   : > { %p2847_p10 = pneg %p3341_p8  ;;  %s3184_s23 = smov [#allocation7]  }
  0x1b   : > { %s479_s24 = sshll.u32 %s3184_s23, 4  ;;  %s3185_s26 = smov [#allocation8]   ;;  %s480_s24 = int_to_ptr.vmem [resolvable:$true] %s479_s24 }
  0x1c   : > { %p3350_p11 = pnand %p2847_p10, %p3846_p1  ;;  %s493_s19 = sshll.u32 %s3185_s26, 4  ;;  %s3354_s19 = int_to_ptr.vmem [resolvable:$true] %s493_s19 }
  0x1d   : > { %s3014_s22 = scalar_lea.vmem %s469_s2, 16  ;;  %s3021_s23 = scalar_lea.vmem %s469_s2, 32 }
  0x1e   : > { %p3005_p12 = pneg %p3350_p11  ;;  %p3015_p13 = scmp.ne.s32.totalorder %s469_s2, %s3014_s22 }
  0x1f   : > { %p3022_p5 = scmp.lt.s32.totalorder %s469_s2, %s469_s2  ;;  %p3023_p7 = scmp.lt.s32.totalorder %s3021_s23, %s3014_s22 }
  0x20   : > { %p3017_p0 = pnand %p3015_p13, %p3005_p12 }
  0x21   : > { %p3024_p10 = por %p3023_p7, %p3022_p5 }
  0x22   : > { %p3018_p3 = pneg %p3017_p0 }
  0x24   : > { %p3025_p9 = pnand %p3024_p10, %p3018_p3 }
  0x26   : > { %3028 = shalt.err (!%p3025_p9)
}
  0x27   : > { %s3871_s27 = sld [smem:[#allocation24_spill]]  ;;  %s3040_s18 = scalar_lea.vmem %s480_s24, 16 }
  0x28   : > { %p3041_p1 = scmp.ne.s32.totalorder %s480_s24, %s3040_s18  ;;  %s3047_s17 = scalar_lea.vmem %s480_s24, 32 }
  0x29   : > { %p3048_p0 = scmp.lt.s32.totalorder %s480_s24, %s480_s24  ;;  %p3049_p6 = scmp.lt.s32.totalorder %s3047_s17, %s3040_s18 }
  0x2a   : > { %p3043_p2 = pnand %p3041_p1, %p3005_p12 }
  0x2b   : > { %p3050_p4 = por %p3049_p6, %p3048_p0 }
  0x2c   : > { %p3044_p13 = pneg %p3043_p2 }
  0x2d   : > { %2850 = dma.hbm_to_vmem [thread:$0]  (!%p3350_p11), %s3871_s27, 16, %s469_s2, [#allocation6]  }
  0x2e   : > { %p3051_p5 = pnand %p3050_p4, %p3044_p13 }
  0x30   : > { %3054 = shalt.err (!%p3051_p5)
}
  0x31   : > { %s3872_s3 = sld [smem:[#allocation25_spill]]  ;;  %s3066_s27 = scalar_lea.vmem %s3354_s19, 16 }
  0x32   : > { %p3067_p1 = scmp.ne.s32.totalorder %s3354_s19, %s3066_s27  ;;  %s3073_s17 = scalar_lea.vmem %s3354_s19, 32 }
  0x33   : > { %p3074_p4 = scmp.lt.s32.totalorder %s3354_s19, %s3354_s19  ;;  %p3075_p6 = scmp.lt.s32.totalorder %s3073_s17, %s3066_s27 }
  0x34   : > { %p3069_p2 = pnand %p3067_p1, %p3005_p12 }
  0x35   : > { %p3076_p3 = por %p3075_p6, %p3074_p4 }
  0x36   : > { %p3070_p9 = pneg %p3069_p2 }
  0x37   : > { %2853 = dma.hbm_to_vmem [thread:$0]  (!%p3350_p11), %s3872_s3, 16, %s480_s24, [#allocation6]  }
  0x38   : > { %p3077_p7 = pnand %p3076_p3, %p3070_p9 }
  0x3a   : > { %3080 = shalt.err (!%p3077_p7)
}
  0x3b   : > { %s3873_s5 = sld [smem:[#allocation26_spill]]  ;;  %s3389_s2 = sadd.s32 1, %s3181_s30  }
  0x3c   : > { %3874 = sst [smem:[#allocation19_spill]] %s3389_s2  ;;  %s66_s24 = ssub.s32 %s3181_s30, %s3389_s2 }
  0x3d   : > { %s69_s25 = sadd.s32 1, %s3177_s29  ;;  %p67_p12 = scmp.eq.s32.totalorder %s66_s24, 0 }
  0x3e   : > { %p76_p10 = scmp.ne.s32.totalorder %s3177_s29, %s3173_s28  ;;  %p77_p13 = scmp.eq.s32.totalorder %s3181_s30, 0 }
  0x3f   : > { %p2868_p0 = scmp.lt.s32.totalorder %s3181_s30, 2  ;;  %p3876_p1 = scmp.eq.s32.totalorder %s3322_s0, 1 }
  0x40   : > { %s3399_s26 = scalar_select %p67_p12, %s3177_s29, %s69_s25  }
  0x41   : > { %2856 = dma.hbm_to_vmem [thread:$0]  (!%p3350_p11), %s3873_s5, 16, %s3354_s19, [#allocation9]  }
  0x42   : > { %3875 = sst [smem:[#allocation20_spill]] %s3399_s26  ;;  %p78_p5 = por %p77_p13, %p76_p10 }
  0x43   : > { %p3403_p2 = por %p3876_p1, %p76_p10  ;;  %s549_s23 = sand.u32 1, %s3177_s29  }
  0x44   : > { %s2516_s27 = sshll.u32 %s3181_s30, 4  ;;  %s3879_s18 = sld [smem:[#allocation23_spill]] }
  0x45   : > { %s3877_s22 = scalar_select %p3403_p2, 1, 0 }
  0x46   : > { %s552_s24 = scalar_lea.vmem [#allocation2], %s549_s23  ;;  %p3414_p11 = pnand %p2868_p0, %p78_p5 }
  0x47   : > { %3878 = sst [smem:[#allocation21_spill]] %s3877_s22  ;;  %s559_s3 = sshll.u32 %s552_s24, 4  ;;  %s560_s3 = int_to_ptr.vmem [resolvable:$true] %s559_s3 }
  0x48   : > { %s550_s5 = scalar_lea.sflag [#allocation3], %s549_s23  ;;  %p3083_p4 = pneg %p3414_p11 }
  0x4a   : > { %s3412_s20 = scalar_lea.hbm %s3879_s18, %s2516_s27  ;;  %s3086_s17 = scalar_lea.hbm %s3879_s18, 32 }
  0x4b   : > { %s3081_s26 = scalar_lea.hbm %s3412_s20, 16  ;;  %p3087_p7 = scmp.lt.s32.totalorder %s3412_s20, %s3879_s18 }
  0x4c   : > { %p3082_p9 = scmp.ne.s32.totalorder %s3412_s20, %s3081_s26  ;;  %p3088_p12 = scmp.lt.s32.totalorder %s3086_s17, %s3081_s26 }
  0x4e   : > { %p3084_p6 = pnand %p3083_p4, %p3082_p9  ;;  %p3089_p10 = por %p3088_p12, %p3087_p7 }
  0x50   : > { %p3085_p3 = pneg %p3084_p6 }
  0x52   : > { %p3090_p13 = pnand %p3089_p10, %p3085_p3 }
  0x54   : > { %3093 = shalt.err (!%p3090_p13)
}
  0x55   : > { %s3094_s24 = scalar_lea.vmem %s560_s3, 16  ;;  %s3186_s23 = smov [#allocation2]  }
  0x56   : > { %p3095_p0 = scmp.ne.s32.totalorder %s560_s3, %s3094_s24  ;;  %s3099_s30 = sshll.u32 %s3186_s23, 4  ;;  %s3100_s30 = int_to_ptr.vmem [resolvable:$false] %s3099_s30 }
  0x57   : > { %s3101_s22 = scalar_lea.vmem %s3100_s30, 32  ;;  %p3102_p9 = scmp.lt.s32.totalorder %s560_s3, %s3100_s30 }
  0x58   : > { %p3097_p5 = pnand %p3095_p0, %p3083_p4  ;;  %p3103_p6 = scmp.lt.s32.totalorder %s3101_s22, %s3094_s24 }
  0x5a   : > { %p3098_p1 = pneg %p3097_p5  ;;  %p3104_p2 = por %p3103_p6, %p3102_p9 }
  0x5c   : > { %p3105_p8 = pnand %p3104_p2, %p3098_p1 }
  0x5e   : > { %3108 = shalt.err (!%p3105_p8)
}
  0x5f   : > { %2860 = dma.hbm_to_vmem [thread:$0]  (!%p3414_p11), %s3412_s20, 16, %s560_s3, %s550_s5  }
  0x60   : > { %p3881_p3 = scmp.ne.s32.totalorder %s3869_s21, 0 }
  0x61   : > { %s3435_s29 = sand.u32 (!%p3881_p3), 1, %s3173_s28   ;;  %p3882_p4 = scmp.ne.s32.totalorder (!%p3881_p3), %s3866_s1, 0 }
  0x62   : > { %568 = sbr.rel (%p3881_p3) target bundleno = 4059 (0xfdb), region = 92  ;;  %s571_s2 = scalar_lea.sflag (!%p3881_p3), [#allocation3], %s3435_s29 }
  0x63   : > { %s573_s26 = scalar_lea.vmem (!%p3881_p3), [#allocation2], %s3435_s29 }
  0x67   : > { %3152 = dma.done.wait (%p3882_p4), %s571_s2, 16  }
  0x68   : > { %3154 = vsyncadd (%p3882_p4), %s571_s2, 4294967280  ;;  %p3883_p8 = scmp.eq.s32.totalorder %s3322_s0, 0 }
  0x6a   : > { %3156 = dma.done.wait (%p3883_p8), [#allocation6], 32   ;;  %p3884_p2 = pmov %p3883_p8 }
  0x6c   : > { %3158 = vsyncadd (%p3884_p2), [#allocation6], 4294967264  ;;  %p3885_p11 = pmov %p3884_p2 }
  0x6d   : > { %p3886_p7 = pmov %p3884_p2 }
  0x6e   : > { %3160 = dma.done.wait (%p3885_p11), [#allocation9], 16  }
  0x6f   : > { %3162 = vsyncadd (%p3886_p7), [#allocation9], 4294967280  ;;  %s2522_s3 = sshll.u32 %s3322_s0, 1  ;;  %vm654_vm0 = vcmask 261120   ;;  %s3887_s21 = sld [smem:[#allocation22_spill]]  ;;  %v2943_v14 = vld [vmem:[%s3827_s4 + $0x8] sm:$0xff]  }
  0x70   : > { %p643_p12 = scmp.lt.s32.totalorder %s2522_s3, 3  ;;  %v3187_v15 = vmov 0.0   ;;  %vm3188_vm1 = vmmov 0   ;;  %v2944_v16 = vld [vmem:[%s3827_s4] sm:$0xff]   ;;  %v3189_v18 = vmov 0   ;;  %s3191_s20 = smov 64  }
  0x71   : > { %2651 = vmatprep.subr.bf16.mxu0 %v3187_v15  ;;  %2655 = vmatprep.mubr.msk.bf16.mxu0 %vm3188_vm1, %v3187_v15  ;;  %v787_v17 = vld [vmem:[%s3830_s7] sm:$0xff]  ;;  %v2539_v62 = vld [vmem:[%s3830_s7 + $0x8] sm:$0xff]  ;;  %s3192_s19 = smov 88   ;;  %vm891_vm6 = vcmask 130048   ;;  %vm989_vm7 = vcmask 64512   ;;  %vm1063_vm8 = vcmask 1043456  }
  0x72   : > { %s3903_s3 = smov (!%p643_p12, %s2522_s3), 3  ;;  %2652 = vmatpush3.bf16.msra.mxu0 %v2943_v14  ;;  %2659 = vmatprep.subr.bf16.mxu1 %v3187_v15  ;;  %v2524_v35 = vld [vmem:[#allocation5] ss:$0 sm:$0xff]  ;;  %v2525_v41 = vld [vmem:[#allocation7] ss:$0 sm:$0xff]  ;;  %s3194_s30 = smov 56  }
  0x73   : > { %s2523_s5 = sshll.u32 %s3903_s3, 3  ;;  %2653 = vmatprep.subr.bf16.mxu0 %v3187_v15  ;;  %2661 = vmatprep.mubr.msk.bf16.mxu1 %vm3188_vm1, %v3187_v15  ;;  %v785_v47 = vld [vmem:[%s3829_s6] sm:$0xf]  ;;  %v2526_v49 = vld [vmem:[#allocation8] ss:$0 sm:$0xff]  ;;  %s3190_s3 = smov 96  }
  0x74   : > { %2926 = vset.pattern.permute.xlu0 %v3189_v18  ;;  %2927 = vset.pattern.permute.xlu1 %v3189_v18  ;;  %v837_v57 = vld [vmem:[%s3832_s9] sm:$0xff]  ;;  %s3195_s1 = smov 80   ;;  %s3197_s17 = smov 48   ;;  %vm2093_vm9 = vcmask 195584   ;;  %vm2336_vm14 = vcmask 523264  }
  0x75   : > { %s3455_s22 = scalar_lea.vmem %s3887_s21, %s2523_s5  ;;  %v786_v60 = vld [vmem:[%s3831_s8] sm:$0xf]  ;;  %s3199_s27 = smov 104  }
  0x76   : > { %v650_v0 = vld [vmem:[%s3455_s22] sm:$0xff]  ;;  %v651_v1 = vld [vmem:[%s3455_s22 + $0x8] sm:$0xff]  ;;  %2654 = vmatpush3.bf16.msra.mxu0 %v2944_v16  ;;  %s3202_s23 = smov 16   ;;  %s2521_s2 = sshll.u32 %s3435_s29, 4 }
  0x77   : > { %v655_v2 = vsel %vm654_vm0, %v650_v0, 0.0  ;;  %v658_v3 = vsel %vm654_vm0, %v651_v1, 0.0  ;;  %2665 = vmatprep.subr.bf16.mxu0 %v3187_v15  ;;  %s2588_s5 = sshll.u32 %s3322_s0, 8  ;;  %s2386_s0 = scalar_lea.sflag [#allocation4], %s3435_s29 }
  0x78   : > { %656 = vadd.xlane.f32.xlu0 %v655_v2 }
  0x7c   : > { %659 = vadd.xlane.f32.xlu0 %v658_v3 }
  0x92   : > { %790 = vperm.xlu0 %2926, %v787_v17  }
 0x101   : > { %v657_v4 = vpop.xlane.xlu0 %656 }
 0x102   : > { %v662_v5 = vmul.f32 0.03125, %v657_v4 }
 0x104   : > { %v664_v6 = vsub.f32 %v650_v0, %v662_v5 }
 0x105   : > { %v660_v7 = vpop.xlane.xlu0 %659 }
 0x106   : > { %v663_v8 = vmul.f32 0.03125, %v660_v7  ;;  %v666_v9 = vmul.f32 %v664_v6, %v664_v6  ;;  %v703_v37 = vmul.f32 %v2524_v35, %v664_v6 }
 0x108   : > { %v665_v10 = vsub.f32 %v651_v1, %v663_v8  ;;  %v668_v11 = vsel %vm654_vm0, %v666_v9, 0.0 }
 0x109   : > { %669 = vadd.xlane.f32.xlu1 %v668_v11 }
 0x10a   : > { %v667_v12 = vmul.f32 %v665_v10, %v665_v10  ;;  %v704_v38 = vmul.f32 %v2524_v35, %v665_v10 }
 0x10c   : > { %v671_v13 = vsel %vm654_vm0, %v667_v12, 0.0 }
 0x10d   : > { %672 = vadd.xlane.f32.xlu1 %v671_v13  ;;  %v791_v63 = vpop.permute.xlu0 %790 }
 0x192   : > { %v670_v19 = vpop.xlane.xlu1 %669 }
 0x193   : > { %v675_v20 = vmul.f32 0.032258064, %v670_v19  ;;  %v2537_v19 = vld [vmem:[%s3829_s6 + $0x4] sm:$0xf] }
 0x195   : > { %2953 = vrsqrt.f32 %v675_v20  ;;  %vm679_vm2 = vcmp.eq.f32.partialorder %v675_v20, inf  ;;  %v682_v25 = vand.u32 2147483648, %v675_v20  ;;  %vm681_vm3 = vcmp.eq.f32.partialorder %v675_v20, 0.0 }
 0x196   : > { %v673_v21 = vpop.xlane.xlu1 %672 }
 0x197   : > { %v676_v22 = vmul.f32 0.032258064, %v673_v21  ;;  %v3538_v21 = vld [vmem:[%s573_s26] ss:$0 sm:$0xff]  ;;  %s3193_s26 = smov 120  }
 0x199   : > { %2955 = vrsqrt.f32 %v676_v22  ;;  %vm686_vm4 = vcmp.eq.f32.partialorder %v676_v22, inf  ;;  %v689_v31 = vand.u32 2147483648, %v676_v22  ;;  %vm688_vm5 = vcmp.eq.f32.partialorder %v676_v22, 0.0 }
 0x1a2   : > { %v2954_v23 = vpop.eup %2953 }
 0x1a3   : > { %v678_v24 = vmul.f32 %v2954_v23, %v675_v20 }
 0x1a5   : > { %v680_v26 = vsel %vm679_vm2, %v675_v20, %v678_v24 }
 0x1a6   : > { %v2956_v27 = vpop.eup %2955  ;;  %v683_v28 = vsel %vm681_vm3, %v682_v25, %v680_v26 }
 0x1a7   : > { %v691_v29 = vadd.f32 1e-06, %v683_v28  ;;  %v685_v30 = vmul.f32 %v2956_v27, %v676_v22 }
 0x1a9   : > { %2957 = vrcp.f32 %v691_v29  ;;  %v687_v32 = vsel %vm686_vm4, %v676_v22, %v685_v30 }
 0x1aa   : > { %v690_v33 = vsel %vm688_vm5, %v689_v31, %v687_v32 }
 0x1ab   : > { %v692_v34 = vadd.f32 1e-06, %v690_v33 }
 0x1ad   : > { %2959 = vrcp.f32 %v692_v34 }
 0x1b6   : > { %v2958_v36 = vpop.eup %2957 }
 0x1b7   : > { %v705_v39 = vmul.f32 %v2958_v36, %v703_v37  ;;  %v2549_v36 = vld [vmem:[%s3830_s7 + $0x10] sm:$0xff] }
 0x1b9   : > { %v713_v43 = vadd.f32 %v2525_v41, %v705_v39 }
 0x1ba   : > { %v2960_v40 = vpop.eup %2959 }
 0x1bb   : > { %v706_v42 = vmul.f32 %v2960_v40, %v704_v38 }
 0x1bd   : > { %v714_v44 = vadd.f32 %v2525_v41, %v706_v42 }
 0x1bf   : > { %v715_v45 = vpack.c.bf16 %v714_v44, %v713_v43 }
 0x1c1   : > { %v3481_v46 = vsel %vm654_vm0, %v715_v45, 0  ;;  %2656 = vmatmul.mubr.msk.bf16.vlgmr.msra.gmra.mxu0 %vm654_vm0, %v715_v45 }
 0x1c2   : > { %2660 = vmatpush3.bf16.xpose.msra.mxu1 %v3481_v46  ;;  %2666 = vmatpush3.bf16.xpose.msra.mxu0 %v3481_v46 }
 0x1c3   : > { %2671 = vmatprep.subr.bf16.mxu1 %v3187_v15  ;;  %2667 = vmatprep.mubr.msk.bf16.mxu0 %vm3188_vm1, %v3187_v15 }
 0x1c4   : > { %2677 = vmatprep.subr.bf16.mxu0 %v3187_v15 }
 0x1c9   : > { %2662 = vmatmul.mubr.msk.bf16.vlgmr.msra.gmra.mxu1 %vm654_vm0, %v785_v47  ;;  %2668 = vmatmul.mubr.msk.bf16.vlgmr.msra.gmra.mxu0 %vm654_vm0, %v786_v60 }
 0x1ca   : > { %2673 = vmatprep.mubr.msk.bf16.mxu1 %vm3188_vm1, %v3187_v15  ;;  %2679 = vmatprep.mubr.msk.bf16.mxu0 %vm3188_vm1, %v3187_v15 }
 0x281   : > { %v776_v48 = vpop.f32.mrf.mxu0 }
 0x282   : > { %v777_v52 = vadd.f32 %v2526_v49, %v776_v48 }
 0x283   : > { %v2657_v50 = vpop.f32.mrf.mxu0 }
 0x285   : > { %v779_v51 = vpop.f32.mrf.mxu0 }
 0x286   : > { %v780_v53 = vadd.f32 %v2526_v49, %v779_v51 }
 0x287   : > { %v2658_v54 = vpop.f32.mrf.mxu0 }
 0x288   : > { %v3496_v55 = vpack.c.bf16 %v780_v53, %v777_v52  ;;  %v2541_v54 = vld [vmem:[%s3832_s9 + $0x8] sm:$0xff] }
 0x289   : > { %v830_v56 = vpop.f32.mrf.mxu1  ;;  %v880_v5 = vpop.f32.mrf.mxu0 }
 0x28a   : > { %888 = vrot.lane.b32.xlu1 %v3496_v55, %s3190_s3  ;;  %v831_v0 = vadd.f32 %v830_v56, %v791_v63  ;;  %v2547_v63 = vld [vmem:[%s3829_s6 + $0x8] sm:$0xf]  ;;  %s3198_s3 = smov 72  }
 0x28b   : > { %v2663_v58 = vpop.f32.mrf.mxu1  ;;  %v2669_v7 = vpop.f32.mrf.mxu0 }
 0x28c   : > { %v836_v1 = vpack.c.bf16 %v831_v0, %v831_v0 }
 0x28d   : > { %v833_v59 = vpop.f32.mrf.mxu1  ;;  %v883_v9 = vpop.f32.mrf.mxu0 }
 0x28e   : > { %840 = vperm.xlu1 %2927, %v837_v57  }
 0x28f   : > { %v2664_v61 = vpop.f32.mrf.mxu1  ;;  %v2670_v10 = vpop.f32.mrf.mxu0 }
 0x290   : > { %v2538_v10 = vld [vmem:[%s3831_s8 + $0x4] sm:$0xf] }
 0x292   : > { %936 = vrot.lane.b32.xlu1 %v3496_v55, %s3191_s20 }
 0x296   : > { %1116 = vperm.xlu1 %2927, %v2539_v62  }
 0x29a   : > { %1214 = vrot.lane.b32.xlu1 %v3496_v55, %s3192_s19  ;;  %s3196_s19 = smov 112  }
 0x2fc   : > { %v889_v2 = vpop.permute.xlu1 %888 }
 0x2fd   : > { %2672 = vmatpush3.bf16.msra.mxu1 %v889_v2 }
 0x2fe   : > { %2683 = vmatprep.subr.bf16.mxu1 %v3187_v15 }
 0x300   : > { %2674 = vmatmul.mubr.msk.bf16.vlgmr.msra.gmra.mxu1 %vm891_vm6, %v836_v1 }
 0x301   : > { %2685 = vmatprep.mubr.msk.bf16.mxu1 %vm3188_vm1, %v3187_v15 }
 0x309   : > { %v841_v3 = vpop.permute.xlu1 %840 }
 0x30a   : > { %v881_v6 = vadd.f32 %v880_v5, %v841_v3 }
 0x30c   : > { %v886_v8 = vpack.c.bf16 %v881_v6, %v881_v6 }
 0x30d   : > { %v937_v4 = vpop.permute.xlu1 %936 }
 0x30e   : > { %2678 = vmatpush3.bf16.msra.mxu0 %v937_v4 }
 0x30f   : > { %2689 = vmatprep.subr.bf16.mxu0 %v3187_v15 }
 0x311   : > { %2680 = vmatmul.mubr.msk.bf16.vlgmr.msra.gmra.mxu0 %vm891_vm6, %v886_v8  ;;  %v1117_v18 = vpop.permute.xlu1 %1116 }
 0x312   : > { %2691 = vmatprep.mubr.msk.bf16.mxu0 %vm3188_vm1, %v3187_v15 }
 0x315   : > { %v1215_v20 = vpop.permute.xlu1 %1214 }
 0x3c0   : > { %v929_v11 = vpop.f32.mrf.mxu1 }
 0x3c1   : > { %v935_v12 = vpack.c.bf16 %v929_v11, %v929_v11 }
 0x3c2   : > { %v2675_v13 = vpop.f32.mrf.mxu1 }
 0x3c3   : > { %v994_v14 = vsel %vm989_vm7, %v935_v12, 0 }
 0x3c4   : > { %v932_v16 = vpop.f32.mrf.mxu1  ;;  %2684 = vmatpush3.bf16.xpose.msra.mxu1 %v994_v14 }
 0x3c5   : > { %2695 = vmatprep.subr.bf16.mxu1 %v3187_v15 }
 0x3c6   : > { %v2676_v17 = vpop.f32.mrf.mxu1 }
 0x3cb   : > { %2686 = vmatmul.mubr.msk.bf16.vlgmr.msra.gmra.mxu1 %vm989_vm7, %v3496_v55 }
 0x3cc   : > { %2696 = vmatpush3.bf16.xpose.msra.mxu1 %v3481_v46  ;;  %2697 = vmatprep.mubr.msk.bf16.mxu1 %vm3188_vm1, %v3187_v15 }
 0x3cd   : > { %2707 = vmatprep.subr.bf16.mxu1 %v3187_v15 }
 0x3d1   : > { %v976_v37 = vpop.f32.mrf.mxu0 }
 0x3d2   : > { %v982_v38 = vpack.c.bf16 %v976_v37, %v976_v37 }
 0x3d3   : > { %2698 = vmatmul.mubr.msk.bf16.vlgmr.msra.gmra.mxu1 %vm654_vm0, %v2537_v19  ;;  %v2681_v39 = vpop.f32.mrf.mxu0 }
 0x3d4   : > { %2708 = vmatpush3.bf16.msra.mxu1 %v1215_v20  ;;  %2709 = vmatprep.mubr.msk.bf16.mxu1 %vm3188_vm1, %v3187_v15  ;;  %v1065_v40 = vsel %vm1063_vm8, %v982_v38, 0 }
 0x3d5   : > { %2719 = vmatprep.subr.bf16.mxu1 %v3187_v15  ;;  %v979_v41 = vpop.f32.mrf.mxu0  ;;  %2690 = vmatpush3.bf16.msra.mxu0 %v1065_v40 }
 0x3d6   : > { %2701 = vmatprep.subr.bf16.mxu0 %v3187_v15 }
 0x3d7   : > { %v2682_v42 = vpop.f32.mrf.mxu0 }
 0x48b   : > { %v1030_v22 = vpop.f32.mrf.mxu1 }
 0x48c   : > { %v1031_v23 = vadd.f32 %v3538_v21, %v1030_v22 }
 0x48d   : > { %v2687_v24 = vpop.f32.mrf.mxu1 }
 0x48e   : > { %v1037_v25 = vsel %vm989_vm7, %v1031_v23, -inf }
 0x48f   : > { %1038 = vmax.xlane.f32.xlu1 %v1037_v25  ;;  %v1033_v26 = vpop.f32.mrf.mxu1 }
 0x490   : > { %v1034_v27 = vadd.f32 %v3538_v21, %v1033_v26 }
 0x491   : > { %v2688_v28 = vpop.f32.mrf.mxu1 }
 0x492   : > { %v1040_v29 = vsel %vm989_vm7, %v1034_v27, -inf  ;;  %v2559_v28 = vld [vmem:[%s3830_s7 + $0x18] sm:$0xff] }
 0x493   : > { %1041 = vmax.xlane.f32.xlu0 %v1040_v29  ;;  %v1156_v30 = vpop.f32.mrf.mxu1 }
 0x494   : > { %v1157_v31 = vadd.f32 %v1156_v30, %v1117_v18 }
 0x495   : > { %v2699_v32 = vpop.f32.mrf.mxu1 }
 0x496   : > { %v1162_v33 = vpack.c.bf16 %v1157_v31, %v1157_v31 }
 0x497   : > { %v1159_v34 = vpop.f32.mrf.mxu1 }
 0x498   : > { %2710 = vmatmul.mubr.msk.bf16.vlgmr.msra.gmra.mxu1 %vm891_vm6, %v1162_v33 }
 0x499   : > { %v2700_v35 = vpop.f32.mrf.mxu1  ;;  %2721 = vmatprep.mubr.msk.bf16.mxu1 %vm3188_vm1, %v3187_v15 }
 0x4a9   : > { %1308 = vrot.lane.b32.xlu0 %v3496_v55, %s3193_s26  ;;  %s3201_s26 = smov 8  }
 0x4ad   : > { %1435 = vperm.xlu0 %2926, %v2549_v36  }
 0x518   : > { %v1039_v43 = vpop.xlane.xlu1 %1038 }
 0x519   : > { %v1043_v44 = vsub.f32 %v1031_v23, %v1039_v43 }
 0x51b   : > { %v1045_v45 = vmul.f32 1.442695, %v1043_v44 }
 0x51c   : > { %v1042_v47 = vpop.xlane.xlu0 %1041 }
 0x51d   : > { %2961 = vpow2.f32 %v1045_v45  ;;  %v1044_v48 = vsub.f32 %v1034_v27, %v1042_v47 }
 0x51f   : > { %v1047_v49 = vmul.f32 1.442695, %v1044_v48 }
 0x520   : > { %v1309_v62 = vpop.permute.xlu0 %1308 }
 0x521   : > { %2963 = vpow2.f32 %v1047_v49 }
 0x528   : > { %v1436_v20 = vpop.permute.xlu0 %1435 }
 0x52a   : > { %v2962_v50 = vpop.eup %2961 }
 0x52b   : > { %v1049_v51 = vsel %vm989_vm7, %v2962_v50, 0.0 }
 0x52c   : > { %1050 = vadd.xlane.f32.xlu1 %v1049_v51 }
 0x52e   : > { %v2964_v52 = vpop.eup %2963 }
 0x52f   : > { %v1052_v53 = vsel %vm989_vm7, %v2964_v52, 0.0 }
 0x530   : > { %1053 = vadd.xlane.f32.xlu1 %v1052_v53 }
 0x541   : > { %1167 = vperm.xlu1 %2927, %v2541_v54  }
 0x545   : > { %1261 = vrot.lane.b32.xlu1 %v3496_v55, %s3194_s30  ;;  %s641_s30 = scalar_lea.vmem [#allocation10], %s2521_s2 }
 0x549   : > { %1533 = vrot.lane.b32.xlu1 %v3496_v55, %s3195_s1  ;;  %s3203_s1 = smov 24  }
 0x558   : > { %v1254_v56 = vpop.f32.mrf.mxu1 }
 0x559   : > { %v1260_v57 = vpack.c.bf16 %v1254_v56, %v1254_v56 }
 0x55a   : > { %v2711_v58 = vpop.f32.mrf.mxu1 }
 0x55b   : > { %v1314_v59 = vsel %vm989_vm7, %v1260_v57, 0 }
 0x55c   : > { %v1257_v60 = vpop.f32.mrf.mxu1  ;;  %2720 = vmatpush3.bf16.xpose.msra.mxu1 %v1314_v59  ;;  %v2557_v59 = vld [vmem:[%s3829_s6 + $0xc] sm:$0xf] }
 0x55d   : > { %2731 = vmatprep.subr.bf16.mxu1 %v3187_v15 }
 0x55e   : > { %v2712_v61 = vpop.f32.mrf.mxu1 }
 0x563   : > { %2722 = vmatmul.mubr.msk.bf16.vlgmr.msra.gmra.mxu1 %vm989_vm7, %v1309_v62 }
 0x564   : > { %2732 = vmatpush3.bf16.xpose.msra.mxu1 %v3481_v46  ;;  %2733 = vmatprep.mubr.msk.bf16.mxu1 %vm3188_vm1, %v3187_v15 }
 0x565   : > { %2743 = vmatprep.subr.bf16.mxu1 %v3187_v15 }
 0x56b   : > { %2734 = vmatmul.mubr.msk.bf16.vlgmr.msra.gmra.mxu1 %vm654_vm0, %v2547_v63 }
 0x56c   : > { %2745 = vmatprep.mubr.msk.bf16.mxu1 %vm3188_vm1, %v3187_v15 }
 0x5b5   : > { %v1051_v0 = vpop.xlane.xlu1 %1050 }
 0x5b6   : > { %2965 = vrcp.f32 %v1051_v0 }
 0x5b9   : > { %v1054_v1 = vpop.xlane.xlu1 %1053 }
 0x5ba   : > { %2967 = vrcp.f32 %v1054_v1 }
 0x5bd   : > { %v1168_v2 = vpop.permute.xlu1 %1167 }
 0x5c1   : > { %v1262_v3 = vpop.permute.xlu1 %1261 }
 0x5c3   : > { %v2966_v4 = vpop.eup %2965 }
 0x5c4   : > { %v1057_v7 = vmul.f32 %v2966_v4, %v2962_v50  ;;  %v2551_v50 = vld [vmem:[%s3832_s9 + $0x10] sm:$0xff] }
 0x5c5   : > { %v1534_v5 = vpop.permute.xlu1 %1533 }
 0x5c6   : > { %2744 = vmatpush3.bf16.msra.mxu1 %v1534_v5 }
 0x5c7   : > { %v2968_v6 = vpop.eup %2967  ;;  %2755 = vmatprep.subr.bf16.mxu1 %v3187_v15 }
 0x5c8   : > { %v1058_v8 = vmul.f32 %v2968_v6, %v2964_v52 }
 0x5ca   : > { %v1059_v9 = vpack.c.bf16 %v1058_v8, %v1057_v7 }
 0x5cc   : > { %2692 = vmatmul.mubr.msk.bf16.vlgmr.msra.gmra.mxu0 %vm989_vm7, %v1059_v9 }
 0x5cd   : > { %2702 = vmatpush3.bf16.xpose.msra.mxu0 %v3481_v46  ;;  %2703 = vmatprep.mubr.msk.bf16.mxu0 %vm3188_vm1, %v3187_v15 }
 0x5ce   : > { %2713 = vmatprep.subr.bf16.mxu0 %v3187_v15 }
 0x5d4   : > { %2704 = vmatmul.mubr.msk.bf16.vlgmr.msra.gmra.mxu0 %vm654_vm0, %v2538_v10 }
 0x5d5   : > { %2714 = vmatpush3.bf16.msra.mxu0 %v1262_v3  ;;  %2715 = vmatprep.mubr.msk.bf16.mxu0 %vm3188_vm1, %v3187_v15 }
 0x5d6   : > { %2725 = vmatprep.subr.bf16.mxu0 %v3187_v15 }
 0x623   : > { %v1350_v11 = vpop.f32.mrf.mxu1 }
 0x624   : > { %v1351_v12 = vadd.f32 %v3538_v21, %v1350_v11  ;;  %v2548_v11 = vld [vmem:[%s3831_s8 + $0x8] sm:$0xf] }
 0x625   : > { %v2723_v13 = vpop.f32.mrf.mxu1 }
 0x626   : > { %v1357_v14 = vsel %vm989_vm7, %v1351_v12, -inf }
 0x627   : > { %1358 = vmax.xlane.f32.xlu0 %v1357_v14  ;;  %v1353_v16 = vpop.f32.mrf.mxu1 }
 0x628   : > { %v1354_v17 = vadd.f32 %v3538_v21, %v1353_v16 }
 0x629   : > { %v2724_v18 = vpop.f32.mrf.mxu1 }
 0x62a   : > { %v1360_v19 = vsel %vm989_vm7, %v1354_v17, -inf }
 0x62b   : > { %1361 = vmax.xlane.f32.xlu1 %v1360_v19  ;;  %v1475_v22 = vpop.f32.mrf.mxu1 }
 0x62c   : > { %v1476_v23 = vadd.f32 %v1475_v22, %v1436_v20 }
 0x62d   : > { %v2735_v24 = vpop.f32.mrf.mxu1 }
 0x62e   : > { %v1481_v25 = vpack.c.bf16 %v1476_v23, %v1476_v23 }
 0x62f   : > { %v1478_v26 = vpop.f32.mrf.mxu1 }
 0x630   : > { %2746 = vmatmul.mubr.msk.bf16.vlgmr.msra.gmra.mxu1 %vm891_vm6, %v1481_v25 }
 0x631   : > { %v2736_v27 = vpop.f32.mrf.mxu1  ;;  %2757 = vmatprep.mubr.msk.bf16.mxu1 %vm3188_vm1, %v3187_v15 }
 0x63c   : > { %1627 = vrot.lane.b32.xlu1 %v3496_v55, %s3196_s19  ;;  %s3200_s19 = smov 40  }
 0x640   : > { %1580 = vrot.lane.b32.xlu1 %v3496_v55, %s3197_s17 }
 0x644   : > { %1754 = vperm.xlu1 %2927, %v2559_v28  }
 0x68c   : > { %v3598_v29 = vpop.f32.mrf.mxu0 }
 0x68e   : > { %v2693_v30 = vpop.f32.mrf.mxu0 }
 0x690   : > { %v3600_v31 = vpop.f32.mrf.mxu0 }
 0x692   : > { %v2694_v32 = vpop.f32.mrf.mxu0 }
 0x694   : > { %v1207_v33 = vpop.f32.mrf.mxu0 }
 0x695   : > { %v1208_v34 = vadd.f32 %v1207_v33, %v1168_v2 }
 0x696   : > { %v2705_v35 = vpop.f32.mrf.mxu0 }
 0x697   : > { %v1213_v36 = vpack.c.bf16 %v1208_v34, %v1208_v34 }
 0x698   : > { %v1210_v37 = vpop.f32.mrf.mxu0 }
 0x699   : > { %2716 = vmatmul.mubr.msk.bf16.vlgmr.msra.gmra.mxu0 %vm891_vm6, %v1213_v36 }
 0x69a   : > { %v2706_v38 = vpop.f32.mrf.mxu0  ;;  %2727 = vmatprep.mubr.msk.bf16.mxu0 %vm3188_vm1, %v3187_v15 }
 0x6b0   : > { %v1359_v39 = vpop.xlane.xlu0 %1358 }
 0x6b1   : > { %v1363_v40 = vsub.f32 %v1351_v12, %v1359_v39 }
 0x6b3   : > { %v1365_v41 = vmul.f32 1.442695, %v1363_v40 }
 0x6b4   : > { %v1362_v42 = vpop.xlane.xlu1 %1361 }
 0x6b5   : > { %2969 = vpow2.f32 %v1365_v41  ;;  %v1364_v43 = vsub.f32 %v1354_v17, %v1362_v42 }
 0x6b7   : > { %v1367_v44 = vmul.f32 1.442695, %v1364_v43 }
 0x6b8   : > { %v1628_v58 = vpop.permute.xlu1 %1627 }
 0x6b9   : > { %2971 = vpow2.f32 %v1367_v44 }
 0x6bc   : > { %v1581_v12 = vpop.permute.xlu1 %1580 }
 0x6c0   : > { %v1755_v23 = vpop.permute.xlu1 %1754 }
 0x6c2   : > { %v2970_v45 = vpop.eup %2969 }
 0x6c3   : > { %v1369_v47 = vsel %vm989_vm7, %v2970_v45, 0.0 }
 0x6c4   : > { %1370 = vadd.xlane.f32.xlu0 %v1369_v47 }
 0x6c6   : > { %v2972_v48 = vpop.eup %2971 }
 0x6c7   : > { %v1372_v49 = vsel %vm989_vm7, %v2972_v48, 0.0 }
 0x6c8   : > { %1373 = vadd.xlane.f32.xlu0 %v1372_v49 }
 0x6de   : > { %1486 = vperm.xlu0 %2926, %v2551_v50  }
 0x6e2   : > { %1852 = vrot.lane.b32.xlu0 %v3496_v55, %s3198_s3  ;;  %s3889_s3 = sld [smem:[#allocation21_spill]] }
 0x6e8   : > { %p3891_p13 = scmp.ne.s32.totalorder %s3889_s3, 0 }
 0x6f0   : > { %v1573_v51 = vpop.f32.mrf.mxu1 }
 0x6f1   : > { %v1579_v52 = vpack.c.bf16 %v1573_v51, %v1573_v51 }
 0x6f2   : > { %v2747_v53 = vpop.f32.mrf.mxu1 }
 0x6f3   : > { %v1633_v54 = vsel %vm989_vm7, %v1579_v52, 0 }
 0x6f4   : > { %v1576_v56 = vpop.f32.mrf.mxu1  ;;  %2756 = vmatpush3.bf16.xpose.msra.mxu1 %v1633_v54  ;;  %v2561_v54 = vld [vmem:[%s3832_s9 + $0x18] sm:$0xff] }
 0x6f5   : > { %2767 = vmatprep.subr.bf16.mxu1 %v3187_v15 }
 0x6f6   : > { %v2748_v57 = vpop.f32.mrf.mxu1 }
 0x6fb   : > { %2758 = vmatmul.mubr.msk.bf16.vlgmr.msra.gmra.mxu1 %vm989_vm7, %v1628_v58 }
 0x6fc   : > { %2768 = vmatpush3.bf16.xpose.msra.mxu1 %v3481_v46  ;;  %2769 = vmatprep.mubr.msk.bf16.mxu1 %vm3188_vm1, %v3187_v15 }
 0x6fd   : > { %2779 = vmatprep.subr.bf16.mxu1 %v3187_v15 }
 0x703   : > { %2770 = vmatmul.mubr.msk.bf16.vlgmr.msra.gmra.mxu1 %vm654_vm0, %v2557_v59 }
 0x704   : > { %2781 = vmatprep.mubr.msk.bf16.mxu1 %vm3188_vm1, %v3187_v15 }
 0x74d   : > { %v1371_v60 = vpop.xlane.xlu0 %1370 }
 0x74e   : > { %2973 = vrcp.f32 %v1371_v60 }
 0x751   : > { %v1374_v61 = vpop.xlane.xlu0 %1373 }
 0x752   : > { %2975 = vrcp.f32 %v1374_v61 }
 0x759   : > { %v1301_v62 = vpop.f32.mrf.mxu0  ;;  %v1487_v63 = vpop.permute.xlu0 %1486 }
 0x75a   : > { %v1307_v0 = vpack.c.bf16 %v1301_v62, %v1301_v62 }
 0x75b   : > { %v2717_v1 = vpop.f32.mrf.mxu0  ;;  %v2974_v3 = vpop.eup %2973 }
 0x75c   : > { %v1384_v2 = vsel %vm1063_vm8, %v1307_v0, 0  ;;  %v1377_v8 = vmul.f32 %v2974_v3, %v2970_v45 }
 0x75d   : > { %v1304_v4 = vpop.f32.mrf.mxu0  ;;  %2726 = vmatpush3.bf16.msra.mxu0 %v1384_v2  ;;  %v1853_v5 = vpop.permute.xlu0 %1852 }
 0x75e   : > { %2780 = vmatpush3.bf16.msra.mxu1 %v1853_v5  ;;  %2737 = vmatprep.subr.bf16.mxu0 %v3187_v15 }
 0x75f   : > { %v2976_v6 = vpop.eup %2975  ;;  %v2718_v7 = vpop.f32.mrf.mxu0  ;;  %2791 = vmatprep.subr.bf16.mxu1 %v3187_v15 }
 0x760   : > { %v1378_v9 = vmul.f32 %v2976_v6, %v2972_v48 }
 0x762   : > { %v1379_v10 = vpack.c.bf16 %v1378_v9, %v1377_v8 }
 0x764   : > { %2728 = vmatmul.mubr.msk.bf16.vlgmr.msra.gmra.mxu0 %vm989_vm7, %v1379_v10 }
 0x765   : > { %2738 = vmatpush3.bf16.xpose.msra.mxu0 %v3481_v46  ;;  %2739 = vmatprep.mubr.msk.bf16.mxu0 %vm3188_vm1, %v3187_v15 }
 0x766   : > { %2749 = vmatprep.subr.bf16.mxu0 %v3187_v15 }
 0x76c   : > { %2740 = vmatmul.mubr.msk.bf16.vlgmr.msra.gmra.mxu0 %vm654_vm0, %v2548_v11 }
 0x76d   : > { %2750 = vmatpush3.bf16.msra.mxu0 %v1581_v12  ;;  %2751 = vmatprep.mubr.msk.bf16.mxu0 %vm3188_vm1, %v3187_v15  ;;  %v2558_v12 = vld [vmem:[%s3831_s8 + $0xc] sm:$0xf] }
 0x76e   : > { %2761 = vmatprep.subr.bf16.mxu0 %v3187_v15 }
 0x7bb   : > { %v1669_v13 = vpop.f32.mrf.mxu1 }
 0x7bc   : > { %v1670_v14 = vadd.f32 %v3538_v21, %v1669_v13 }
 0x7bd   : > { %v2759_v16 = vpop.f32.mrf.mxu1 }
 0x7be   : > { %v1676_v17 = vsel %vm989_vm7, %v1670_v14, -inf }
 0x7bf   : > { %1677 = vmax.xlane.f32.xlu1 %v1676_v17  ;;  %v1672_v18 = vpop.f32.mrf.mxu1 }
 0x7c0   : > { %v1673_v19 = vadd.f32 %v3538_v21, %v1672_v18 }
 0x7c1   : > { %v2760_v20 = vpop.f32.mrf.mxu1 }
 0x7c2   : > { %v1679_v22 = vsel %vm989_vm7, %v1673_v19, -inf }
 0x7c3   : > { %1680 = vmax.xlane.f32.xlu0 %v1679_v22  ;;  %v1794_v24 = vpop.f32.mrf.mxu1 }
 0x7c4   : > { %v1795_v25 = vadd.f32 %v1794_v24, %v1755_v23 }
 0x7c5   : > { %v2771_v26 = vpop.f32.mrf.mxu1 }
 0x7c6   : > { %v1800_v27 = vpack.c.bf16 %v1795_v25, %v1795_v25 }
 0x7c7   : > { %v1797_v28 = vpop.f32.mrf.mxu1 }
 0x7c8   : > { %2782 = vmatmul.mubr.msk.bf16.vlgmr.msra.gmra.mxu1 %vm891_vm6, %v1800_v27 }
 0x7c9   : > { %v2772_v30 = vpop.f32.mrf.mxu1  ;;  %2793 = vmatprep.mubr.msk.bf16.mxu1 %vm3188_vm1, %v3187_v15 }
 0x824   : > { %v3646_v32 = vpop.f32.mrf.mxu0 }
 0x826   : > { %v2729_v33 = vpop.f32.mrf.mxu0 }
 0x828   : > { %v3648_v34 = vpop.f32.mrf.mxu0 }
 0x829   : > { %v2928_v35 = vpack.i.bf16 %v3648_v34, %v3646_v32 }
 0x82a   : > { %v2730_v36 = vpop.f32.mrf.mxu0 }
 0x82c   : > { %v1526_v37 = vpop.f32.mrf.mxu0 }
 0x82d   : > { %v1527_v38 = vadd.f32 %v1526_v37, %v1487_v63 }
 0x82e   : > { %v2741_v39 = vpop.f32.mrf.mxu0 }
 0x82f   : > { %v1532_v40 = vpack.c.bf16 %v1527_v38, %v1527_v38 }
 0x830   : > { %v1529_v41 = vpop.f32.mrf.mxu0 }
 0x831   : > { %2752 = vmatmul.mubr.msk.bf16.vlgmr.msra.gmra.mxu0 %vm891_vm6, %v1532_v40 }
 0x832   : > { %v2742_v42 = vpop.f32.mrf.mxu0  ;;  %2763 = vmatprep.mubr.msk.bf16.mxu0 %vm3188_vm1, %v3187_v15 }
 0x848   : > { %v1678_v43 = vpop.xlane.xlu1 %1677 }
 0x849   : > { %v1682_v44 = vsub.f32 %v1670_v14, %v1678_v43 }
 0x84b   : > { %v1684_v45 = vmul.f32 1.442695, %v1682_v44 }
 0x84c   : > { %v1681_v47 = vpop.xlane.xlu0 %1680 }
 0x84d   : > { %2977 = vpow2.f32 %v1684_v45  ;;  %v1683_v48 = vsub.f32 %v1673_v19, %v1681_v47 }
 0x84f   : > { %v1686_v49 = vmul.f32 1.442695, %v1683_v48 }
 0x851   : > { %2979 = vpow2.f32 %v1686_v49 }
 0x85a   : > { %v2978_v50 = vpop.eup %2977 }
 0x85b   : > { %v1688_v51 = vsel %vm989_vm7, %v2978_v50, 0.0 }
 0x85c   : > { %1689 = vadd.xlane.f32.xlu0 %v1688_v51 }
 0x85e   : > { %v2980_v52 = vpop.eup %2979 }
 0x85f   : > { %v1691_v53 = vsel %vm989_vm7, %v2980_v52, 0.0 }
 0x860   : > { %1692 = vadd.xlane.f32.xlu1 %v1691_v53 }
 0x871   : > { %1805 = vperm.xlu1 %2927, %v2561_v54  }
 0x872   : > { %1946 = vrot.lane.b32.xlu0 %v3496_v55, %s3199_s27 }
 0x875   : > { %1899 = vrot.lane.b32.xlu1 %v3496_v55, %s3200_s19  ;;  %s3204_s19 = smov [#allocation10]  }
 0x876   : > { %s3113_s17 = sshll.u32 %s3204_s19, 4  ;;  %s3114_s17 = int_to_ptr.vmem [resolvable:$false] %s3113_s17 }
 0x877   : > { %s3115_s24 = scalar_lea.vmem %s3114_s17, 512 }
 0x888   : > { %v1892_v56 = vpop.f32.mrf.mxu1 }
 0x889   : > { %v1898_v57 = vpack.c.bf16 %v1892_v56, %v1892_v56 }
 0x88a   : > { %v2783_v58 = vpop.f32.mrf.mxu1 }
 0x88b   : > { %v1952_v59 = vsel %vm989_vm7, %v1898_v57, 0 }
 0x88c   : > { %v1895_v60 = vpop.f32.mrf.mxu1  ;;  %2792 = vmatpush3.bf16.xpose.msra.mxu1 %v1952_v59 }
 0x88d   : > { %2803 = vmatprep.subr.bf16.mxu1 %v3187_v15  ;;  %v2945_v60 = vld [vmem:[%s3833_s10 + $0x8] sm:$0xff]  }
 0x88e   : > { %v2784_v61 = vpop.f32.mrf.mxu1 }
 0x88f   : > { %v2946_v61 = vld [vmem:[%s3833_s10] sm:$0xff]  }
 0x8e5   : > { %v1690_v62 = vpop.xlane.xlu0 %1689 }
 0x8e6   : > { %2981 = vrcp.f32 %v1690_v62 }
 0x8e9   : > { %v1693_v63 = vpop.xlane.xlu1 %1692  ;;  %v1947_v0 = vpop.permute.xlu0 %1946 }
 0x8ea   : > { %2983 = vrcp.f32 %v1693_v63  ;;  %2794 = vmatmul.mubr.msk.bf16.vlgmr.msra.gmra.mxu1 %vm989_vm7, %v1947_v0 }
 0x8eb   : > { %2807 = vmatprep.mubr.msk.bf16.mxu1 %vm3188_vm1, %v3187_v15  ;;  %2804 = vmatpush3.bf16.msra.mxu1 %v2945_v60 }
 0x8ec   : > { %2805 = vmatprep.subr.bf16.mxu1 %v3187_v15 }
 0x8ed   : > { %v1806_v11 = vpop.permute.xlu1 %1805 }
 0x8ef   : > { %2806 = vmatpush3.bf16.msra.mxu1 %v2946_v61 }
 0x8f0   : > { %2819 = vmatprep.subr.bf16.mxu1 %v3187_v15 }
 0x8f1   : > { %v1620_v55 = vpop.f32.mrf.mxu0  ;;  %v1900_v13 = vpop.permute.xlu1 %1899 }
 0x8f2   : > { %v1626_v1 = vpack.c.bf16 %v1620_v55, %v1620_v55 }
 0x8f3   : > { %v2753_v2 = vpop.f32.mrf.mxu0  ;;  %v2982_v4 = vpop.eup %2981 }
 0x8f4   : > { %v1703_v3 = vsel %vm1063_vm8, %v1626_v1, 0  ;;  %v1696_v8 = vmul.f32 %v2982_v4, %v2978_v50 }
 0x8f5   : > { %v1623_v5 = vpop.f32.mrf.mxu0  ;;  %2762 = vmatpush3.bf16.msra.mxu0 %v1703_v3 }
 0x8f6   : > { %2773 = vmatprep.subr.bf16.mxu0 %v3187_v15 }
 0x8f7   : > { %v2984_v6 = vpop.eup %2983  ;;  %v2754_v7 = vpop.f32.mrf.mxu0 }
 0x8f8   : > { %v1697_v9 = vmul.f32 %v2984_v6, %v2980_v52 }
 0x8fa   : > { %v1698_v10 = vpack.c.bf16 %v1697_v9, %v1696_v8 }
 0x8fc   : > { %2764 = vmatmul.mubr.msk.bf16.vlgmr.msra.gmra.mxu0 %vm989_vm7, %v1698_v10 }
 0x8fd   : > { %2774 = vmatpush3.bf16.xpose.msra.mxu0 %v3481_v46  ;;  %2775 = vmatprep.mubr.msk.bf16.mxu0 %vm3188_vm1, %v3187_v15 }
 0x8fe   : > { %2785 = vmatprep.subr.bf16.mxu0 %v3187_v15 }
 0x904   : > { %2776 = vmatmul.mubr.msk.bf16.vlgmr.msra.gmra.mxu0 %vm654_vm0, %v2558_v12 }
 0x905   : > { %2786 = vmatpush3.bf16.msra.mxu0 %v1900_v13  ;;  %2787 = vmatprep.mubr.msk.bf16.mxu0 %vm3188_vm1, %v3187_v15 }
 0x906   : > { %2797 = vmatprep.subr.bf16.mxu0 %v3187_v15 }
 0x9aa   : > { %v1988_v46 = vpop.f32.mrf.mxu1 }
 0x9ab   : > { %v1989_v14 = vadd.f32 %v3538_v21, %v1988_v46 }
 0x9ac   : > { %v2795_v16 = vpop.f32.mrf.mxu1 }
 0x9ad   : > { %v1995_v17 = vsel %vm989_vm7, %v1989_v14, -inf }
 0x9ae   : > { %1996 = vmax.xlane.f32.xlu0 %v1995_v17  ;;  %v1991_v18 = vpop.f32.mrf.mxu1 }
 0x9af   : > { %v1992_v19 = vadd.f32 %v3538_v21, %v1991_v18 }
 0x9b0   : > { %v2796_v20 = vpop.f32.mrf.mxu1 }
 0x9b1   : > { %v1998_v22 = vsel %vm989_vm7, %v1992_v19, -inf  ;;  %v3001_v20 = vld [vmem:[%s3455_s22] sm:$0xff] }
 0x9b2   : > { %1999 = vmax.xlane.f32.xlu1 %v1998_v22 }
 0x9bc   : > { %v1739_v23 = vpop.f32.mrf.mxu0 }
 0x9be   : > { %v2765_v24 = vpop.f32.mrf.mxu0 }
 0x9c0   : > { %v1742_v25 = vpop.f32.mrf.mxu0 }
 0x9c1   : > { %v2933_v26 = vpack.i.bf16 %v1742_v25, %v1739_v23 }
 0x9c2   : > { %v2766_v27 = vpop.f32.mrf.mxu0 }
 0x9c3   : > { %2929 = vrot.lane.b32.xlu1 %v2928_v35, %s3201_s26  ;;  %v3002_v27 = vld [vmem:[%s3455_s22 + $0x8] sm:$0xff]  ;;  %s3890_s22 = sld [smem:[#allocation28_spill]] }
 0x9c4   : > { %v1845_v28 = vpop.f32.mrf.mxu0 }
 0x9c5   : > { %v1846_v30 = vadd.f32 %v1845_v28, %v1806_v11 }
 0x9c6   : > { %v2777_v33 = vpop.f32.mrf.mxu0 }
 0x9c7   : > { %v1851_v36 = vpack.c.bf16 %v1846_v30, %v1846_v30 }
 0x9c8   : > { %v1848_v21 = vpop.f32.mrf.mxu0 }
 0x9c9   : > { %2788 = vmatmul.mubr.msk.bf16.vlgmr.msra.gmra.mxu0 %vm891_vm6, %v1851_v36  ;;  %s3775_s25 = scalar_lea.hbm %s3890_s22, %s2588_s5 }
 0x9ca   : > { %v2778_v37 = vpop.f32.mrf.mxu0  ;;  %2799 = vmatprep.mubr.msk.bf16.mxu0 %vm3188_vm1, %v3187_v15 }
 0xa37   : > { %v1997_v38 = vpop.xlane.xlu0 %1996 }
 0xa38   : > { %v2001_v39 = vsub.f32 %v1989_v14, %v1997_v38 }
 0xa3a   : > { %v2003_v40 = vmul.f32 1.442695, %v2001_v39 }
 0xa3b   : > { %v2000_v41 = vpop.xlane.xlu1 %1999 }
 0xa3c   : > { %2985 = vpow2.f32 %v2003_v40  ;;  %v2002_v42 = vsub.f32 %v1992_v19, %v2000_v41 }
 0xa3e   : > { %v2005_v43 = vmul.f32 1.442695, %v2002_v42 }
 0xa3f   : > { %v2930_v2 = vpop.permute.xlu1 %2929 }
 0xa40   : > { %2987 = vpow2.f32 %v2005_v43  ;;  %v2932_v4 = vunpack.i.h.bf16 %v2930_v2  ;;  %v2931_v5 = vunpack.i.l.bf16 %v2930_v2 }
 0xa42   : > { %v2090_v9 = vsel %vm989_vm7, %v3600_v31, %v2932_v4  ;;  %v2089_v10 = vsel %vm989_vm7, %v3598_v29, %v2931_v5  ;;  %v2567_v31 = vld [vmem:[%s3834_s11] ss:$0 sm:$0xff] }
 0xa49   : > { %v2986_v32 = vpop.eup %2985 }
 0xa4a   : > { %v2007_v34 = vsel %vm989_vm7, %v2986_v32, 0.0 }
 0xa4b   : > { %2008 = vadd.xlane.f32.xlu0 %v2007_v34  ;;  %v2948_v34 = vld [vmem:[%s3837_s14] sm:$0xff]  }
 0xa4d   : > { %v2988_v35 = vpop.eup %2987 }
 0xa4e   : > { %v2010_v44 = vsel %vm989_vm7, %v2988_v35, 0.0 }
 0xa4f   : > { %2011 = vadd.xlane.f32.xlu0 %v2010_v44 }
 0xa65   : > { %2934 = vrot.lane.b32.xlu0 %v2933_v26, %s3202_s23  ;;  %s3888_s23 = sld [smem:[#allocation27_spill]] }
 0xa89   : > { %v1939_v45 = vpop.f32.mrf.mxu0 }
 0xa8a   : > { %v1945_v47 = vpack.c.bf16 %v1939_v45, %v1939_v45 }
 0xa8b   : > { %v2789_v48 = vpop.f32.mrf.mxu0 }
 0xa8c   : > { %v2022_v49 = vsel %vm1063_vm8, %v1945_v47, 0 }
 0xa8d   : > { %v1942_v50 = vpop.f32.mrf.mxu0  ;;  %2798 = vmatpush3.bf16.msra.mxu0 %v2022_v49 }
 0xa8e   : > { %2811 = vmatprep.subr.bf16.mxu0 %v3187_v15 }
 0xa8f   : > { %v2790_v51 = vpop.f32.mrf.mxu0 }
 0xad4   : > { %v2009_v52 = vpop.xlane.xlu0 %2008 }
 0xad5   : > { %2989 = vrcp.f32 %v2009_v52 }
 0xad8   : > { %v2012_v53 = vpop.xlane.xlu0 %2011 }
 0xad9   : > { %2991 = vrcp.f32 %v2012_v53 }
 0xadc   : > { %v2935_v3 = vpop.permute.xlu0 %2934 }
 0xadd   : > { %v2937_v6 = vunpack.i.h.bf16 %v2935_v3  ;;  %v2936_v7 = vunpack.i.l.bf16 %v2935_v3  ;;  %v2572_v3 = vld [vmem:[%s3836_s13] ss:$0 sm:$0xff] }
 0xadf   : > { %v2091_v13 = vsel %vm891_vm6, %v2089_v10, %v2936_v7  ;;  %v2092_v46 = vsel %vm891_vm6, %v2090_v9, %v2937_v6  ;;  %v2951_v9 = vld [vmem:[%s3839_s16 + $0x8] sm:$0xff]   ;;  %v2952_v10 = vld [vmem:[%s3839_s16] sm:$0xff]  }
 0xae2   : > { %v2990_v54 = vpop.eup %2989 }
 0xae3   : > { %v2015_v57 = vmul.f32 %v2990_v54, %v2986_v32  ;;  %v2947_v32 = vld [vmem:[%s3837_s14 + $0x8] sm:$0xff]  }
 0xae6   : > { %v2992_v56 = vpop.eup %2991 }
 0xae7   : > { %v2016_v58 = vmul.f32 %v2992_v56, %v2988_v35  ;;  %v2949_v35 = vld [vmem:[%s3839_s16 + $0x18] sm:$0xff]  }
 0xae9   : > { %v2017_v59 = vpack.c.bf16 %v2016_v58, %v2015_v57 }
 0xaeb   : > { %2800 = vmatmul.mubr.msk.bf16.vlgmr.msra.gmra.mxu0 %vm989_vm7, %v2017_v59 }
 0xaec   : > { %2815 = vmatprep.mubr.msk.bf16.mxu0 %vm3188_vm1, %v3187_v15  ;;  %2812 = vmatpush3.bf16.msra.mxu0 %v2947_v32 }
 0xaed   : > { %2813 = vmatprep.subr.bf16.mxu0 %v3187_v15 }
 0xaf0   : > { %2814 = vmatpush3.bf16.msra.mxu0 %v2948_v34 }
 0xbab   : > { %v2058_v62 = vpop.f32.mrf.mxu0 }
 0xbad   : > { %v2801_v63 = vpop.f32.mrf.mxu0 }
 0xbaf   : > { %v2061_v0 = vpop.f32.mrf.mxu0 }
 0xbb0   : > { %v2938_v55 = vpack.i.bf16 %v2061_v0, %v2058_v62  ;;  %v2571_v62 = vld [vmem:[%s3835_s12] ss:$0 sm:$0xff] }
 0xbb1   : > { %v2802_v1 = vpop.f32.mrf.mxu0 }
 0xbb2   : > { %2939 = vrot.lane.b32.xlu1 %v2938_v55, %s3203_s1  ;;  %s2399_s1 = sshll.u32 %s641_s30, 4  ;;  %s3778_s1 = int_to_ptr.vmem [resolvable:$true] %s2399_s1 }
 0xbb3   : > { %s3109_s27 = scalar_lea.vmem %s3778_s1, 256  ;;  %p3116_p1 = scmp.lt.s32.totalorder %s3778_s1, %s3114_s17 }
 0xbb4   : > { %p3110_p10 = scmp.ne.s32.totalorder %s3778_s1, %s3109_s27  ;;  %p3117_p9 = scmp.lt.s32.totalorder %s3115_s24, %s3109_s27 }
 0xbb6   : > { %p3111_p0 = pnand %p3110_p10, %p3891_p13  ;;  %p3118_p6 = por %p3117_p9, %p3116_p1 }
 0xbb8   : > { %p3112_p5 = pneg %p3111_p0 }
 0xbba   : > { %p3119_p3 = pnand %p3118_p6, %p3112_p5 }
 0xc24   : > { %v2940_v8 = vpop.permute.xlu1 %2939 }
 0xc25   : > { %v2942_v11 = vunpack.i.h.bf16 %v2940_v8  ;;  %v2941_v12 = vunpack.i.l.bf16 %v2940_v8  ;;  %v2950_v8 = vld [vmem:[%s3839_s16 + $0x10] sm:$0xff]  }
 0xc27   : > { %v2094_v14 = vsel %vm2093_vm9, %v2091_v13, %v2941_v12  ;;  %v2095_v16 = vsel %vm2093_vm9, %v2092_v46, %v2942_v11  ;;  %v2573_v11 = vld [vmem:[%s3838_s15] ss:$0 sm:$0xff] }
 0xc28   : > { %v2096_v17 = vpack.c.bf16 %v2095_v16, %v2094_v14 }
 0xc2a   : > { %2808 = vmatmul.mubr.msk.bf16.vlgmr.msra.gmra.mxu1 %vm654_vm0, %v2096_v17 }
 0xc2b   : > { %2827 = vmatprep.mubr.msk.bf16.mxu1 %vm3188_vm1, %v3187_v15  ;;  %2820 = vmatpush3.bf16.msra.mxu1 %v2949_v35 }
 0xc2c   : > { %2821 = vmatprep.subr.bf16.mxu1 %v3187_v15 }
 0xc2f   : > { %2822 = vmatpush3.bf16.msra.mxu1 %v2950_v8 }
 0xc30   : > { %2823 = vmatprep.subr.bf16.mxu1 %v3187_v15 }
 0xc33   : > { %2824 = vmatpush3.bf16.msra.mxu1 %v2951_v9 }
 0xc34   : > { %2825 = vmatprep.subr.bf16.mxu1 %v3187_v15 }
 0xc37   : > { %2826 = vmatpush3.bf16.msra.mxu1 %v2952_v10 }
 0xcea   : > { %v2157_v29 = vpop.f32.mrf.mxu1 }
 0xceb   : > { %v2158_v18 = vadd.f32 %v2567_v31, %v2157_v29 }
 0xcec   : > { %v2809_v19 = vpop.f32.mrf.mxu1 }
 0xced   : > { %v3720_v22 = vadd.f32 %v3001_v20, %v2158_v18  ;;  %v2577_v18 = vld [vmem:[%s3888_s23] ss:$0 sm:$0xff] }
 0xcee   : > { %v2160_v23 = vpop.f32.mrf.mxu1 }
 0xcef   : > { %v2161_v24 = vadd.f32 %v2567_v31, %v2160_v23  ;;  %v2168_v25 = vsel %vm654_vm0, %v3720_v22, 0.0 }
 0xcf0   : > { %2169 = vadd.xlane.f32.xlu1 %v2168_v25  ;;  %v2810_v26 = vpop.f32.mrf.mxu1 }
 0xcf1   : > { %v3725_v28 = vadd.f32 %v3002_v27, %v2161_v24 }
 0xcf3   : > { %v2171_v30 = vsel %vm654_vm0, %v3725_v28, 0.0 }
 0xcf4   : > { %2172 = vadd.xlane.f32.xlu0 %v2171_v30 }
 0xd79   : > { %v2170_v33 = vpop.xlane.xlu1 %2169 }
 0xd7a   : > { %v2174_v36 = vmul.f32 0.03125, %v2170_v33 }
 0xd7c   : > { %v2176_v21 = vsub.f32 %v3720_v22, %v2174_v36 }
 0xd7d   : > { %v2173_v37 = vpop.xlane.xlu0 %2172 }
 0xd7e   : > { %v2175_v38 = vmul.f32 0.03125, %v2173_v37  ;;  %v2178_v39 = vmul.f32 %v2176_v21, %v2176_v21  ;;  %v2214_v0 = vmul.f32 %v2571_v62, %v2176_v21 }
 0xd80   : > { %v2177_v40 = vsub.f32 %v3725_v28, %v2175_v38  ;;  %v2180_v41 = vsel %vm654_vm0, %v2178_v39, 0.0 }
 0xd81   : > { %2181 = vadd.xlane.f32.xlu0 %v2180_v41 }
 0xd82   : > { %v2179_v42 = vmul.f32 %v2177_v40, %v2177_v40  ;;  %v2215_v55 = vmul.f32 %v2571_v62, %v2177_v40 }
 0xd84   : > { %v2183_v43 = vsel %vm654_vm0, %v2179_v42, 0.0 }
 0xd85   : > { %2184 = vadd.xlane.f32.xlu1 %v2183_v43 }
 0xe0a   : > { %v2182_v44 = vpop.xlane.xlu0 %2181 }
 0xe0b   : > { %v2186_v45 = vmul.f32 0.032258064, %v2182_v44 }
 0xe0d   : > { %2993 = vrsqrt.f32 %v2186_v45  ;;  %vm2190_vm10 = vcmp.eq.f32.partialorder %v2186_v45, inf  ;;  %v2193_v51 = vand.u32 2147483648, %v2186_v45  ;;  %vm2192_vm11 = vcmp.eq.f32.partialorder %v2186_v45, 0.0 }
 0xe0e   : > { %v2185_v47 = vpop.xlane.xlu1 %2184 }
 0xe0f   : > { %v2187_v48 = vmul.f32 0.032258064, %v2185_v47 }
 0xe11   : > { %2995 = vrsqrt.f32 %v2187_v48  ;;  %vm2197_vm12 = vcmp.eq.f32.partialorder %v2187_v48, inf  ;;  %v2200_v58 = vand.u32 2147483648, %v2187_v48  ;;  %vm2199_vm13 = vcmp.eq.f32.partialorder %v2187_v48, 0.0 }
 0xe1a   : > { %v2994_v49 = vpop.eup %2993 }
 0xe1b   : > { %v2189_v50 = vmul.f32 %v2994_v49, %v2186_v45 }
 0xe1d   : > { %v2191_v52 = vsel %vm2190_vm10, %v2186_v45, %v2189_v50 }
 0xe1e   : > { %v2996_v53 = vpop.eup %2995  ;;  %v2194_v54 = vsel %vm2192_vm11, %v2193_v51, %v2191_v52 }
 0xe1f   : > { %v2202_v56 = vadd.f32 1e-06, %v2194_v54  ;;  %v2196_v57 = vmul.f32 %v2996_v53, %v2187_v48 }
 0xe21   : > { %2997 = vrcp.f32 %v2202_v56  ;;  %v2198_v59 = vsel %vm2197_vm12, %v2187_v48, %v2196_v57 }
 0xe22   : > { %v2201_v60 = vsel %vm2199_vm13, %v2200_v58, %v2198_v59 }
 0xe23   : > { %v2203_v61 = vadd.f32 1e-06, %v2201_v60 }
 0xe25   : > { %2999 = vrcp.f32 %v2203_v61 }
 0xe2e   : > { %v2998_v63 = vpop.eup %2997 }
 0xe2f   : > { %v2216_v1 = vmul.f32 %v2998_v63, %v2214_v0 }
 0xe31   : > { %v2224_v5 = vadd.f32 %v2572_v3, %v2216_v1 }
 0xe32   : > { %v3000_v2 = vpop.eup %2999 }
 0xe33   : > { %v2217_v4 = vmul.f32 %v3000_v2, %v2215_v55 }
 0xe35   : > { %v2225_v6 = vadd.f32 %v2572_v3, %v2217_v4 }
 0xe37   : > { %v2226_v7 = vpack.c.bf16 %v2225_v6, %v2224_v5 }
 0xe39   : > { %2816 = vmatmul.mubr.msk.bf16.vlgmr.msra.gmra.mxu0 %vm654_vm0, %v2226_v7 }
 0xef9   : > { %v2287_v12 = vpop.f32.mrf.mxu0 }
 0xefa   : > { %v2288_v46 = vadd.f32 %v2573_v11, %v2287_v12 }
 0xefb   : > { %v2817_v13 = vpop.f32.mrf.mxu0 }
 0xefc   : > { %v2294_v31 = vmax.f32 %v2288_v46, 0.0 }
 0xefd   : > { %v2290_v14 = vpop.f32.mrf.mxu0 }
 0xefe   : > { %v2291_v16 = vadd.f32 %v2573_v11, %v2290_v14 }
 0xeff   : > { %v2818_v17 = vpop.f32.mrf.mxu0 }
 0xf00   : > { %v2295_v29 = vmax.f32 %v2291_v16, 0.0 }
 0xf02   : > { %v2296_v15 = vpack.c.bf16 %v2295_v29, %v2294_v31 }
 0xf04   : > { %2828 = vmatmul.mubr.msk.bf16.vlgmr.msra.gmra.mxu1 %vm2336_vm14, %v2296_v15 }
 0xfc4   : > { %v2374_v19 = vpop.f32.mrf.mxu1 }
 0xfc5   : > { %v2375_v20 = vadd.f32 %v2577_v18, %v2374_v19 }
 0xfc6   : > { %v2829_v23 = vpop.f32.mrf.mxu1 }
 0xfc7   : > { %v2381_v24 = vadd.f32 %v2375_v20, %v3720_v22 }
 0xfc8   : > { %v2377_v25 = vpop.f32.mrf.mxu1 }
 0xfc9   : > { %2383 = vst.msk [vmem:[%s641_s30] sm:$0xff] %vm654_vm0, %v2381_v24  ;;  %v2378_v26 = vadd.f32 %v2577_v18, %v2377_v25 }
 0xfca   : > { %v2830_v27 = vpop.f32.mrf.mxu1 }
 0xfcb   : > { %v2382_v30 = vadd.f32 %v2378_v26, %v3725_v28 }
 0xfcd   : > { %2384 = vst.msk [vmem:[%s641_s30 + $0x8] sm:$0xff] %vm654_vm0, %v2382_v30 }
 0xfce   : > { %3122 = shalt.err (!%p3119_p3)
}
 0xfcf   : > { %s3123_s23 = scalar_lea.hbm %s3775_s25, 256  ;;  %s3127_s30 = scalar_lea.hbm %s3890_s22, 512 }
 0xfd0   : > { %p3124_p4 = scmp.ne.s32.totalorder %s3775_s25, %s3123_s23  ;;  %p3128_p11 = scmp.lt.s32.totalorder %s3775_s25, %s3890_s22 }
 0xfd1   : > { %p3129_p7 = scmp.lt.s32.totalorder %s3127_s30, %s3123_s23 }
 0xfd2   : > { %p3125_p8 = pnand %p3124_p4, %p3891_p13 }
 0xfd3   : > { %p3130_p12 = por %p3129_p7, %p3128_p11 }
 0xfd4   : > { %p3126_p2 = pneg %p3125_p8 }
 0xfd6   : > { %p3131_p10 = pnand %p3130_p12, %p3126_p2 }
 0xfd8   : > { %3134 = shalt.err (!%p3131_p10)
}
 0xfd9   : > { %s3205_s27 = smov 128  }
 0xfda   : > { %2845 = dma.vmem_to_hbm [thread:$0]  (%p3891_p13), %s3778_s1, 256, %s3775_s25, %s2386_s0, %s3205_s27, %s3205_s27, %s3201_s26  }
 0xfdb PF: > { %s3892_s19 = sld [smem:[#allocation15_spill]] }
 0xfdc   : > { %s3893_s17 = sld [smem:[#allocation18_spill]] }
 0xfdd   : > { %s3894_s24 = sld [smem:[#allocation17_spill]] }
 0xfe1   : > { %s2414_s2 = sand.u32 1, %s3892_s19  }
 0xfe2   : > { %p3895_p0 = scmp.ne.s32.totalorder %s3893_s17, 0  ;;  %s2415_s23 = scalar_lea.sflag [#allocation4], %s2414_s2 }
 0xfe3   : > { %p3896_p5 = scmp.ge.s32.totalorder %s3894_s24, 2 }
 0xfe5   : > { %p2862_p1 = pnand %p3896_p5, %p3895_p0 }
 0xfe7   : > { %p2863_p9 = pneg %p2862_p1 }
 0xfe9   : > { %3164 = dma.done.wait (%p2863_p9), %s2415_s23, 256  }
 0xfea   : > { %3166 = vsyncadd (%p2863_p9), %s2415_s23, 4294967040  ;;  %s3897_s30 = sld [smem:[#allocation19_spill]]  ;;  %s3900_s27 = smov %s3173_s28 }
 0xfeb   : > { %s3898_s3 = sld [smem:[#allocation16_spill]] }
 0xfec   : > { %s3899_s29 = sld [smem:[#allocation20_spill]] }
 0xff0   : > { %p33_p6 = scmp.ge.s32.totalorder %s3897_s30, 4  }
 0xff1   : > { %s3901_s28 = smov %s3898_s3 }
 0xff2   :  { %35 = sbr.rel (!%p33_p6) target bundleno = 15 (0xf), region = 164 }
 0xff7   :  { %2420 = vsyncpa [#allocation3], 1 }
 0xff8   :  { %2422 = vsyncpa [#allocation3 + $0x1], 1 }
 0xff9   :  { %2423 = vsyncpa [#allocation6], 1 }
 0xffa   :  { %2424 = vsyncpa [#allocation9], 1 }
 0xffb   :  { %2425 = vsyncpa [#allocation4], 1 }
 0xffc   :  { %2427 = vsyncpa [#allocation4 + $0x1], 1 }

// kernel: tpu_custom_call.1
= control target key start
LH: loop header
LB: loop body
LE: loop exit
PB: predicated region body
PF: predicated region fallthrough
CT: control target
= control target key end

     0   :  { %s3823_s0 = inlined_call_operand.vmem [shape: f32[32,32], index: 0, kind: input, shape index: {}]   ;;  %s3824_s1 = inlined_call_operand.hbm [shape: f32[2,1,16], index: 1, kind: input, shape index: {}]   ;;  %s3825_s2 = inlined_call_operand.hbm [shape: f32[1,32], index: 2, kind: input, shape index: {}]   ;;  %s3826_s3 = inlined_call_operand.hbm [shape: f32[1,32], index: 3, kind: input, shape index: {}]   ;;  %s3827_s4 = inlined_call_operand.vmem [shape: bf16[32,96], index: 4, kind: input, shape index: {}]   ;;  %s3828_s5 = inlined_call_operand.hbm [shape: f32[1,96], index: 5, kind: input, shape index: {}]   ;;  %s3829_s6 = inlined_call_operand.vmem [shape: bf16[4,8,32], index: 6, kind: input, shape index: {}]   ;;  %s3830_s7 = inlined_call_operand.vmem [shape: f32[4,8,1], index: 7, kind: input, shape index: {}]   ;;  %s3831_s8 = inlined_call_operand.vmem [shape: bf16[4,8,32], index: 8, kind: input, shape index: {}]   ;;  %s3832_s9 = inlined_call_operand.vmem [shape: f32[4,8,1], index: 9, kind: input, shape index: {}]   ;;  %s3833_s10 = inlined_call_operand.vmem [shape: bf16[32,32], index: 10, kind: input, shape index: {}]   ;;  %s3834_s11 = inlined_call_operand.vmem [shape: f32[1,32], index: 11, kind: input, shape index: {}]   ;;  %s3835_s12 = inlined_call_operand.vmem [shape: f32[1,32], index: 12, kind: input, shape index: {}]   ;;  %s3836_s13 = inlined_call_operand.vmem [shape: f32[1,32], index: 13, kind: input, shape index: {}]   ;;  %s3837_s14 = inlined_call_operand.vmem [shape: bf16[32,64], index: 14, kind: input, shape index: {}]   ;;  %s3838_s15 = inlined_call_operand.vmem [shape: f32[1,64], index: 15, kind: input, shape index: {}]   ;;  %s3839_s16 = inlined_call_operand.vmem [shape: bf16[64,32], index: 16, kind: input, shape index: {}]   ;;  %s3840_s17 = inlined_call_operand.vmem [shape: f32[1,32], index: 17, kind: input, shape index: {}]   ;;  %s3841_s18 = inlined_call_operand.hbm [shape: f32[32,32], index: 18, kind: output, shape index: {}]  }
   0x1   :  { %3856 = sst [smem:[#allocation22_spill]] %s3823_s0 }
   0x2   :  { %3857 = sst [smem:[#allocation23_spill]] %s3824_s1 }
   0x3   :  { %3858 = sst [smem:[#allocation24_spill]] %s3825_s2 }
   0x4   :  { %3859 = sst [smem:[#allocation25_spill]] %s3826_s3 }
   0x5   :  { %3860 = sst [smem:[#allocation26_spill]] %s3828_s5 }
   0x6   :  { %3861 = sst [smem:[#allocation27_spill]] %s3840_s17 }
   0x7   :  { %3862 = sst [smem:[#allocation28_spill]] %s3841_s18 }
   0x8   :  { %23 = vsyncpa [#allocation3], 0 }
   0x9   :  { %25 = vsyncpa [#allocation3 + $0x1], 0 }
   0xa   :  { %26 = vsyncpa [#allocation6], 0 }
   0xb   :  { %27 = vsyncpa [#allocation9], 0 }
   0xc   :  { %28 = vsyncpa [#allocation4], 0 }
   0xd   :  { %30 = vsyncpa [#allocation4 + $0x1], 0  ;;  %s3301_s27 = smov 0   ;;  %s3303_s28 = smov 0  }
   0xe   :  { %s3305_s29 = smov 0   ;;  %s3307_s30 = smov 0  }
   0xf LB: > { %3863 = sst [smem:[#allocation15_spill]] %s3169_s27  ;;  %s3322_s0 = sadd.s32 4294967295, %s3181_s30   ;;  %s3181_s30 = sphi %s3307_s30, %s3897_s30   ;;  %s3177_s29 = sphi %s3305_s29, %s3899_s29   ;;  %s3173_s28 = sphi %s3303_s28, %s3901_s28   ;;  %s3169_s27 = sphi %s3301_s27, %s3900_s27  }
  0x10   : > { %3864 = sst [smem:[#allocation16_spill]] %s3177_s29  ;;  %s2510_s19 = sadd.s32 4294967294, %s3181_s30  }
  0x11   : > { %3865 = sst [smem:[#allocation17_spill]] %s3181_s30  ;;  %p82_p0 = scmp.ne.s32.totalorder %s3173_s28, %s3169_s27 }
  0x12   : > { %p3846_p1 = scmp.eq.s32.totalorder %s3322_s0, 0  ;;  %p448_p3 = scmp.eq.s32.totalorder %s2510_s19, 1 }
  0x13   : > { %p2511_p5 = scmp.ge.s32.totalorder %s3181_s30, 1  ;;  %p455_p7 = scmp.lt.s32.totalorder %s3181_s30, 3 }
  0x14   : > { %p3331_p4 = por %p3846_p1, %p82_p0  ;;  %p3336_p6 = por %p448_p3, %p82_p0 }
  0x15   : > { %p3341_p8 = pnand %p2511_p5, %p455_p7  ;;  %s3183_s22 = smov [#allocation5]  }
  0x16   : > { %s3866_s1 = scalar_select %p3331_p4, 1, 0 }
  0x17   : > { %s3867_s20 = scalar_select %p3336_p6, 1, 0 }
  0x18   : > { %s3869_s21 = scalar_select %p3341_p8, 1, 0 }
  0x19   : > { %3868 = sst [smem:[#allocation18_spill]] %s3867_s20  ;;  %s468_s2 = sshll.u32 %s3183_s22, 4  ;;  %s469_s2 = int_to_ptr.vmem [resolvable:$true] %s468_s2 }
  0x1a   : > { %p2847_p10 = pneg %p3341_p8  ;;  %s3184_s23 = smov [#allocation7]  }
  0x1b   : > { %s479_s24 = sshll.u32 %s3184_s23, 4  ;;  %s3185_s26 = smov [#allocation8]   ;;  %s480_s24 = int_to_ptr.vmem [resolvable:$true] %s479_s24 }
  0x1c   : > { %p3350_p11 = pnand %p2847_p10, %p3846_p1  ;;  %s493_s19 = sshll.u32 %s3185_s26, 4  ;;  %s3354_s19 = int_to_ptr.vmem [resolvable:$true] %s493_s19 }
  0x1d   : > { %s3014_s22 = scalar_lea.vmem %s469_s2, 16  ;;  %s3021_s23 = scalar_lea.vmem %s469_s2, 32 }
  0x1e   : > { %p3005_p12 = pneg %p3350_p11  ;;  %p3015_p13 = scmp.ne.s32.totalorder %s469_s2, %s3014_s22 }
  0x1f   : > { %p3022_p5 = scmp.lt.s32.totalorder %s469_s2, %s469_s2  ;;  %p3023_p7 = scmp.lt.s32.totalorder %s3021_s23, %s3014_s22 }
  0x20   : > { %p3017_p0 = pnand %p3015_p13, %p3005_p12 }
  0x21   : > { %p3024_p10 = por %p3023_p7, %p3022_p5 }
  0x22   : > { %p3018_p3 = pneg %p3017_p0 }
  0x24   : > { %p3025_p9 = pnand %p3024_p10, %p3018_p3 }
  0x26   : > { %3028 = shalt.err (!%p3025_p9)
}
  0x27   : > { %s3871_s27 = sld [smem:[#allocation24_spill]]  ;;  %s3040_s18 = scalar_lea.vmem %s480_s24, 16 }
  0x28   : > { %p3041_p1 = scmp.ne.s32.totalorder %s480_s24, %s3040_s18  ;;  %s3047_s17 = scalar_lea.vmem %s480_s24, 32 }
  0x29   : > { %p3048_p0 = scmp.lt.s32.totalorder %s480_s24, %s480_s24  ;;  %p3049_p6 = scmp.lt.s32.totalorder %s3047_s17, %s3040_s18 }
  0x2a   : > { %p3043_p2 = pnand %p3041_p1, %p3005_p12 }
  0x2b   : > { %p3050_p4 = por %p3049_p6, %p3048_p0 }
  0x2c   : > { %p3044_p13 = pneg %p3043_p2 }
  0x2d   : > { %2850 = dma.hbm_to_vmem [thread:$0]  (!%p3350_p11), %s3871_s27, 16, %s469_s2, [#allocation6]  }
  0x2e   : > { %p3051_p5 = pnand %p3050_p4, %p3044_p13 }
  0x30   : > { %3054 = shalt.err (!%p3051_p5)
}
  0x31   : > { %s3872_s3 = sld [smem:[#allocation25_spill]]  ;;  %s3066_s27 = scalar_lea.vmem %s3354_s19, 16 }
  0x32   : > { %p3067_p1 = scmp.ne.s32.totalorder %s3354_s19, %s3066_s27  ;;  %s3073_s17 = scalar_lea.vmem %s3354_s19, 32 }
  0x33   : > { %p3074_p4 = scmp.lt.s32.totalorder %s3354_s19, %s3354_s19  ;;  %p3075_p6 = scmp.lt.s32.totalorder %s3073_s17, %s3066_s27 }
  0x34   : > { %p3069_p2 = pnand %p3067_p1, %p3005_p12 }
  0x35   : > { %p3076_p3 = por %p3075_p6, %p3074_p4 }
  0x36   : > { %p3070_p9 = pneg %p3069_p2 }
  0x37   : > { %2853 = dma.hbm_to_vmem [thread:$0]  (!%p3350_p11), %s3872_s3, 16, %s480_s24, [#allocation6]  }
  0x38   : > { %p3077_p7 = pnand %p3076_p3, %p3070_p9 }
  0x3a   : > { %3080 = shalt.err (!%p3077_p7)
}
  0x3b   : > { %s3873_s5 = sld [smem:[#allocation26_spill]]  ;;  %s3389_s2 = sadd.s32 1, %s3181_s30  }
  0x3c   : > { %3874 = sst [smem:[#allocation19_spill]] %s3389_s2  ;;  %s66_s24 = ssub.s32 %s3181_s30, %s3389_s2 }
  0x3d   : > { %s69_s25 = sadd.s32 1, %s3177_s29  ;;  %p67_p12 = scmp.eq.s32.totalorder %s66_s24, 0 }
  0x3e   : > { %p76_p10 = scmp.ne.s32.totalorder %s3177_s29, %s3173_s28  ;;  %p77_p13 = scmp.eq.s32.totalorder %s3181_s30, 0 }
  0x3f   : > { %p2868_p0 = scmp.lt.s32.totalorder %s3181_s30, 2  ;;  %p3876_p1 = scmp.eq.s32.totalorder %s3322_s0, 1 }
  0x40   : > { %s3399_s26 = scalar_select %p67_p12, %s3177_s29, %s69_s25  }
  0x41   : > { %2856 = dma.hbm_to_vmem [thread:$0]  (!%p3350_p11), %s3873_s5, 16, %s3354_s19, [#allocation9]  }
  0x42   : > { %3875 = sst [smem:[#allocation20_spill]] %s3399_s26  ;;  %p78_p5 = por %p77_p13, %p76_p10 }
  0x43   : > { %p3403_p2 = por %p3876_p1, %p76_p10  ;;  %s549_s23 = sand.u32 1, %s3177_s29  }
  0x44   : > { %s2516_s27 = sshll.u32 %s3181_s30, 4  ;;  %s3879_s18 = sld [smem:[#allocation23_spill]] }
  0x45   : > { %s3877_s22 = scalar_select %p3403_p2, 1, 0 }
  0x46   : > { %s552_s24 = scalar_lea.vmem [#allocation2], %s549_s23  ;;  %p3414_p11 = pnand %p2868_p0, %p78_p5 }
  0x47   : > { %3878 = sst [smem:[#allocation21_spill]] %s3877_s22  ;;  %s559_s3 = sshll.u32 %s552_s24, 4  ;;  %s560_s3 = int_to_ptr.vmem [resolvable:$true] %s559_s3 }
  0x48   : > { %s550_s5 = scalar_lea.sflag [#allocation3], %s549_s23  ;;  %p3083_p4 = pneg %p3414_p11 }
  0x4a   : > { %s3412_s20 = scalar_lea.hbm %s3879_s18, %s2516_s27  ;;  %s3086_s17 = scalar_lea.hbm %s3879_s18, 32 }
  0x4b   : > { %s3081_s26 = scalar_lea.hbm %s3412_s20, 16  ;;  %p3087_p7 = scmp.lt.s32.totalorder %s3412_s20, %s3879_s18 }
  0x4c   : > { %p3082_p9 = scmp.ne.s32.totalorder %s3412_s20, %s3081_s26  ;;  %p3088_p12 = scmp.lt.s32.totalorder %s3086_s17, %s3081_s26 }
  0x4e   : > { %p3084_p6 = pnand %p3083_p4, %p3082_p9  ;;  %p3089_p10 = por %p3088_p12, %p3087_p7 }
  0x50   : > { %p3085_p3 = pneg %p3084_p6 }
  0x52   : > { %p3090_p13 = pnand %p3089_p10, %p3085_p3 }
  0x54   : > { %3093 = shalt.err (!%p3090_p13)
}
  0x55   : > { %s3094_s24 = scalar_lea.vmem %s560_s3, 16  ;;  %s3186_s23 = smov [#allocation2]  }
  0x56   : > { %p3095_p0 = scmp.ne.s32.totalorder %s560_s3, %s3094_s24  ;;  %s3099_s30 = sshll.u32 %s3186_s23, 4  ;;  %s3100_s30 = int_to_ptr.vmem [resolvable:$false] %s3099_s30 }
  0x57   : > { %s3101_s22 = scalar_lea.vmem %s3100_s30, 32  ;;  %p3102_p9 = scmp.lt.s32.totalorder %s560_s3, %s3100_s30 }
  0x58   : > { %p3097_p5 = pnand %p3095_p0, %p3083_p4  ;;  %p3103_p6 = scmp.lt.s32.totalorder %s3101_s22, %s3094_s24 }
  0x5a   : > { %p3098_p1 = pneg %p3097_p5  ;;  %p3104_p2 = por %p3103_p6, %p3102_p9 }
  0x5c   : > { %p3105_p8 = pnand %p3104_p2, %p3098_p1 }
  0x5e   : > { %3108 = shalt.err (!%p3105_p8)
}
  0x5f   : > { %2860 = dma.hbm_to_vmem [thread:$0]  (!%p3414_p11), %s3412_s20, 16, %s560_s3, %s550_s5  }
  0x60   : > { %p3881_p3 = scmp.ne.s32.totalorder %s3869_s21, 0 }
  0x61   : > { %s3435_s29 = sand.u32 (!%p3881_p3), 1, %s3173_s28   ;;  %p3882_p4 = scmp.ne.s32.totalorder (!%p3881_p3), %s3866_s1, 0 }
  0x62   : > { %568 = sbr.rel (%p3881_p3) target bundleno = 4059 (0xfdb), region = 92  ;;  %s571_s2 = scalar_lea.sflag (!%p3881_p3), [#allocation3], %s3435_s29 }
  0x63   : > { %s573_s26 = scalar_lea.vmem (!%p3881_p3), [#allocation2], %s3435_s29 }
  0x67   : > { %3152 = dma.done.wait (%p3882_p4), %s571_s2, 16  }
  0x68   : > { %3154 = vsyncadd (%p3882_p4), %s571_s2, 4294967280  ;;  %p3883_p8 = scmp.eq.s32.totalorder %s3322_s0, 0 }
  0x6a   : > { %3156 = dma.done.wait (%p3883_p8), [#allocation6], 32   ;;  %p3884_p2 = pmov %p3883_p8 }
  0x6c   : > { %3158 = vsyncadd (%p3884_p2), [#allocation6], 4294967264  ;;  %p3885_p11 = pmov %p3884_p2 }
  0x6d   : > { %p3886_p7 = pmov %p3884_p2 }
  0x6e   : > { %3160 = dma.done.wait (%p3885_p11), [#allocation9], 16  }
  0x6f   : > { %3162 = vsyncadd (%p3886_p7), [#allocation9], 4294967280  ;;  %s2522_s3 = sshll.u32 %s3322_s0, 1  ;;  %vm654_vm0 = vcmask 261120   ;;  %s3887_s21 = sld [smem:[#allocation22_spill]]  ;;  %v2943_v14 = vld [vmem:[%s3827_s4 + $0x8] sm:$0xff]  }
  0x70   : > { %p643_p12 = scmp.lt.s32.totalorder %s2522_s3, 3  ;;  %v3187_v15 = vmov 0.0   ;;  %vm3188_vm1 = vmmov 0   ;;  %v2944_v16 = vld [vmem:[%s3827_s4] sm:$0xff]   ;;  %v3189_v18 = vmov 0   ;;  %s3191_s20 = smov 64  }
  0x71   : > { %2651 = vmatprep.subr.bf16.mxu0 %v3187_v15  ;;  %2655 = vmatprep.mubr.msk.bf16.mxu0 %vm3188_vm1, %v3187_v15  ;;  %v787_v17 = vld [vmem:[%s3830_s7] sm:$0xff]  ;;  %v2539_v62 = vld [vmem:[%s3830_s7 + $0x8] sm:$0xff]  ;;  %s3192_s19 = smov 88   ;;  %vm891_vm6 = vcmask 130048   ;;  %vm989_vm7 = vcmask 64512   ;;  %vm1063_vm8 = vcmask 1043456  }
  0x72   : > { %s3903_s3 = smov (!%p643_p12, %s2522_s3), 3  ;;  %2652 = vmatpush3.bf16.msra.mxu0 %v2943_v14  ;;  %2659 = vmatprep.subr.bf16.mxu1 %v3187_v15  ;;  %v2524_v35 = vld [vmem:[#allocation5] ss:$0 sm:$0xff]  ;;  %v2525_v41 = vld [vmem:[#allocation7] ss:$0 sm:$0xff]  ;;  %s3194_s30 = smov 56  }
  0x73   : > { %s2523_s5 = sshll.u32 %s3903_s3, 3  ;;  %2653 = vmatprep.subr.bf16.mxu0 %v3187_v15  ;;  %2661 = vmatprep.mubr.msk.bf16.mxu1 %vm3188_vm1, %v3187_v15  ;;  %v785_v47 = vld [vmem:[%s3829_s6] sm:$0xf]  ;;  %v2526_v49 = vld [vmem:[#allocation8] ss:$0 sm:$0xff]  ;;  %s3190_s3 = smov 96  }
  0x74   : > { %2926 = vset.pattern.permute.xlu0 %v3189_v18  ;;  %2927 = vset.pattern.permute.xlu1 %v3189_v18  ;;  %v837_v57 = vld [vmem:[%s3832_s9] sm:$0xff]  ;;  %s3195_s1 = smov 80   ;;  %s3197_s17 = smov 48   ;;  %vm2093_vm9 = vcmask 195584   ;;  %vm2336_vm14 = vcmask 523264  }
  0x75   : > { %s3455_s22 = scalar_lea.vmem %s3887_s21, %s2523_s5  ;;  %v786_v60 = vld [vmem:[%s3831_s8] sm:$0xf]  ;;  %s3199_s27 = smov 104  }
  0x76   : > { %v650_v0 = vld [vmem:[%s3455_s22] sm:$0xff]  ;;  %v651_v1 = vld [vmem:[%s3455_s22 + $0x8] sm:$0xff]  ;;  %2654 = vmatpush3.bf16.msra.mxu0 %v2944_v16  ;;  %s3202_s23 = smov 16   ;;  %s2521_s2 = sshll.u32 %s3435_s29, 4 }
  0x77   : > { %v655_v2 = vsel %vm654_vm0, %v650_v0, 0.0  ;;  %v658_v3 = vsel %vm654_vm0, %v651_v1, 0.0  ;;  %2665 = vmatprep.subr.bf16.mxu0 %v3187_v15  ;;  %s2588_s5 = sshll.u32 %s3322_s0, 8  ;;  %s2386_s0 = scalar_lea.sflag [#allocation4], %s3435_s29 }
  0x78   : > { %656 = vadd.xlane.f32.xlu0 %v655_v2 }
  0x7c   : > { %659 = vadd.xlane.f32.xlu0 %v658_v3 }
  0x92   : > { %790 = vperm.xlu0 %2926, %v787_v17  }
 0x101   : > { %v657_v4 = vpop.xlane.xlu0 %656 }
 0x102   : > { %v662_v5 = vmul.f32 0.03125, %v657_v4 }
 0x104   : > { %v664_v6 = vsub.f32 %v650_v0, %v662_v5 }
 0x105   : > { %v660_v7 = vpop.xlane.xlu0 %659 }
 0x106   : > { %v663_v8 = vmul.f32 0.03125, %v660_v7  ;;  %v666_v9 = vmul.f32 %v664_v6, %v664_v6  ;;  %v703_v37 = vmul.f32 %v2524_v35, %v664_v6 }
 0x108   : > { %v665_v10 = vsub.f32 %v651_v1, %v663_v8  ;;  %v668_v11 = vsel %vm654_vm0, %v666_v9, 0.0 }
 0x109   : > { %669 = vadd.xlane.f32.xlu1 %v668_v11 }
 0x10a   : > { %v667_v12 = vmul.f32 %v665_v10, %v665_v10  ;;  %v704_v38 = vmul.f32 %v2524_v35, %v665_v10 }
 0x10c   : > { %v671_v13 = vsel %vm654_vm0, %v667_v12, 0.0 }
 0x10d   : > { %672 = vadd.xlane.f32.xlu1 %v671_v13  ;;  %v791_v63 = vpop.permute.xlu0 %790 }
 0x192   : > { %v670_v19 = vpop.xlane.xlu1 %669 }
 0x193   : > { %v675_v20 = vmul.f32 0.032258064, %v670_v19  ;;  %v2537_v19 = vld [vmem:[%s3829_s6 + $0x4] sm:$0xf] }
 0x195   : > { %2953 = vrsqrt.f32 %v675_v20  ;;  %vm679_vm2 = vcmp.eq.f32.partialorder %v675_v20, inf  ;;  %v682_v25 = vand.u32 2147483648, %v675_v20  ;;  %vm681_vm3 = vcmp.eq.f32.partialorder %v675_v20, 0.0 }
 0x196   : > { %v673_v21 = vpop.xlane.xlu1 %672 }
 0x197   : > { %v676_v22 = vmul.f32 0.032258064, %v673_v21  ;;  %v3538_v21 = vld [vmem:[%s573_s26] ss:$0 sm:$0xff]  ;;  %s3193_s26 = smov 120  }
 0x199   : > { %2955 = vrsqrt.f32 %v676_v22  ;;  %vm686_vm4 = vcmp.eq.f32.partialorder %v676_v22, inf  ;;  %v689_v31 = vand.u32 2147483648, %v676_v22  ;;  %vm688_vm5 = vcmp.eq.f32.partialorder %v676_v22, 0.0 }
 0x1a2   : > { %v2954_v23 = vpop.eup %2953 }
 0x1a3   : > { %v678_v24 = vmul.f32 %v2954_v23, %v675_v20 }
 0x1a5   : > { %v680_v26 = vsel %vm679_vm2, %v675_v20, %v678_v24 }
 0x1a6   : > { %v2956_v27 = vpop.eup %2955  ;;  %v683_v28 = vsel %vm681_vm3, %v682_v25, %v680_v26 }
 0x1a7   : > { %v691_v29 = vadd.f32 1e-06, %v683_v28  ;;  %v685_v30 = vmul.f32 %v2956_v27, %v676_v22 }
 0x1a9   : > { %2957 = vrcp.f32 %v691_v29  ;;  %v687_v32 = vsel %vm686_vm4, %v676_v22, %v685_v30 }
 0x1aa   : > { %v690_v33 = vsel %vm688_vm5, %v689_v31, %v687_v32 }
 0x1ab   : > { %v692_v34 = vadd.f32 1e-06, %v690_v33 }
 0x1ad   : > { %2959 = vrcp.f32 %v692_v34 }
 0x1b6   : > { %v2958_v36 = vpop.eup %2957 }
 0x1b7   : > { %v705_v39 = vmul.f32 %v2958_v36, %v703_v37  ;;  %v2549_v36 = vld [vmem:[%s3830_s7 + $0x10] sm:$0xff] }
 0x1b9   : > { %v713_v43 = vadd.f32 %v2525_v41, %v705_v39 }
 0x1ba   : > { %v2960_v40 = vpop.eup %2959 }
 0x1bb   : > { %v706_v42 = vmul.f32 %v2960_v40, %v704_v38 }
 0x1bd   : > { %v714_v44 = vadd.f32 %v2525_v41, %v706_v42 }
 0x1bf   : > { %v715_v45 = vpack.c.bf16 %v714_v44, %v713_v43 }
 0x1c1   : > { %v3481_v46 = vsel %vm654_vm0, %v715_v45, 0  ;;  %2656 = vmatmul.mubr.msk.bf16.vlgmr.msra.gmra.mxu0 %vm654_vm0, %v715_v45 }
 0x1c2   : > { %2660 = vmatpush3.bf16.xpose.msra.mxu1 %v3481_v46  ;;  %2666 = vmatpush3.bf16.xpose.msra.mxu0 %v3481_v46 }
 0x1c3   : > { %2671 = vmatprep.subr.bf16.mxu1 %v3187_v15  ;;  %2667 = vmatprep.mubr.msk.bf16.mxu0 %vm3188_vm1, %v3187_v15 }
 0x1c4   : > { %2677 = vmatprep.subr.bf16.mxu0 %v3187_v15 }
 0x1c9   : > { %2662 = vmatmul.mubr.msk.bf16.vlgmr.msra.gmra.mxu1 %vm654_vm0, %v785_v47  ;;  %2668 = vmatmul.mubr.msk.bf16.vlgmr.msra.gmra.mxu0 %vm654_vm0, %v786_v60 }
 0x1ca   : > { %2673 = vmatprep.mubr.msk.bf16.mxu1 %vm3188_vm1, %v3187_v15  ;;  %2679 = vmatprep.mubr.msk.bf16.mxu0 %vm3188_vm1, %v3187_v15 }
 0x281   : > { %v776_v48 = vpop.f32.mrf.mxu0 }
 0x282   : > { %v777_v52 = vadd.f32 %v2526_v49, %v776_v48 }
 0x283   : > { %v2657_v50 = vpop.f32.mrf.mxu0 }
 0x285   : > { %v779_v51 = vpop.f32.mrf.mxu0 }
 0x286   : > { %v780_v53 = vadd.f32 %v2526_v49, %v779_v51 }
 0x287   : > { %v2658_v54 = vpop.f32.mrf.mxu0 }
 0x288   : > { %v3496_v55 = vpack.c.bf16 %v780_v53, %v777_v52  ;;  %v2541_v54 = vld [vmem:[%s3832_s9 + $0x8] sm:$0xff] }
 0x289   : > { %v830_v56 = vpop.f32.mrf.mxu1  ;;  %v880_v5 = vpop.f32.mrf.mxu0 }
 0x28a   : > { %888 = vrot.lane.b32.xlu1 %v3496_v55, %s3190_s3  ;;  %v831_v0 = vadd.f32 %v830_v56, %v791_v63  ;;  %v2547_v63 = vld [vmem:[%s3829_s6 + $0x8] sm:$0xf]  ;;  %s3198_s3 = smov 72  }
 0x28b   : > { %v2663_v58 = vpop.f32.mrf.mxu1  ;;  %v2669_v7 = vpop.f32.mrf.mxu0 }
 0x28c   : > { %v836_v1 = vpack.c.bf16 %v831_v0, %v831_v0 }
 0x28d   : > { %v833_v59 = vpop.f32.mrf.mxu1  ;;  %v883_v9 = vpop.f32.mrf.mxu0 }
 0x28e   : > { %840 = vperm.xlu1 %2927, %v837_v57  }
 0x28f   : > { %v2664_v61 = vpop.f32.mrf.mxu1  ;;  %v2670_v10 = vpop.f32.mrf.mxu0 }
 0x290   : > { %v2538_v10 = vld [vmem:[%s3831_s8 + $0x4] sm:$0xf] }
 0x292   : > { %936 = vrot.lane.b32.xlu1 %v3496_v55, %s3191_s20 }
 0x296   : > { %1116 = vperm.xlu1 %2927, %v2539_v62  }
 0x29a   : > { %1214 = vrot.lane.b32.xlu1 %v3496_v55, %s3192_s19  ;;  %s3196_s19 = smov 112  }
 0x2fc   : > { %v889_v2 = vpop.permute.xlu1 %888 }
 0x2fd   : > { %2672 = vmatpush3.bf16.msra.mxu1 %v889_v2 }
 0x2fe   : > { %2683 = vmatprep.subr.bf16.mxu1 %v3187_v15 }
 0x300   : > { %2674 = vmatmul.mubr.msk.bf16.vlgmr.msra.gmra.mxu1 %vm891_vm6, %v836_v1 }
 0x301   : > { %2685 = vmatprep.mubr.msk.bf16.mxu1 %vm3188_vm1, %v3187_v15 }
 0x309   : > { %v841_v3 = vpop.permute.xlu1 %840 }
 0x30a   : > { %v881_v6 = vadd.f32 %v880_v5, %v841_v3 }
 0x30c   : > { %v886_v8 = vpack.c.bf16 %v881_v6, %v881_v6 }
 0x30d   : > { %v937_v4 = vpop.permute.xlu1 %936 }
 0x30e   : > { %2678 = vmatpush3.bf16.msra.mxu0 %v937_v4 }
 0x30f   : > { %2689 = vmatprep.subr.bf16.mxu0 %v3187_v15 }
 0x311   : > { %2680 = vmatmul.mubr.msk.bf16.vlgmr.msra.gmra.mxu0 %vm891_vm6, %v886_v8  ;;  %v1117_v18 = vpop.permute.xlu1 %1116 }
 0x312   : > { %2691 = vmatprep.mubr.msk.bf16.mxu0 %vm3188_vm1, %v3187_v15 }
 0x315   : > { %v1215_v20 = vpop.permute.xlu1 %1214 }
 0x3c0   : > { %v929_v11 = vpop.f32.mrf.mxu1 }
 0x3c1   : > { %v935_v12 = vpack.c.bf16 %v929_v11, %v929_v11 }
 0x3c2   : > { %v2675_v13 = vpop.f32.mrf.mxu1 }
 0x3c3   : > { %v994_v14 = vsel %vm989_vm7, %v935_v12, 0 }
 0x3c4   : > { %v932_v16 = vpop.f32.mrf.mxu1  ;;  %2684 = vmatpush3.bf16.xpose.msra.mxu1 %v994_v14 }
 0x3c5   : > { %2695 = vmatprep.subr.bf16.mxu1 %v3187_v15 }
 0x3c6   : > { %v2676_v17 = vpop.f32.mrf.mxu1 }
 0x3cb   : > { %2686 = vmatmul.mubr.msk.bf16.vlgmr.msra.gmra.mxu1 %vm989_vm7, %v3496_v55 }
 0x3cc   : > { %2696 = vmatpush3.bf16.xpose.msra.mxu1 %v3481_v46  ;;  %2697 = vmatprep.mubr.msk.bf16.mxu1 %vm3188_vm1, %v3187_v15 }
 0x3cd   : > { %2707 = vmatprep.subr.bf16.mxu1 %v3187_v15 }
 0x3d1   : > { %v976_v37 = vpop.f32.mrf.mxu0 }
 0x3d2   : > { %v982_v38 = vpack.c.bf16 %v976_v37, %v976_v37 }
 0x3d3   : > { %2698 = vmatmul.mubr.msk.bf16.vlgmr.msra.gmra.mxu1 %vm654_vm0, %v2537_v19  ;;  %v2681_v39 = vpop.f32.mrf.mxu0 }
 0x3d4   : > { %2708 = vmatpush3.bf16.msra.mxu1 %v1215_v20  ;;  %2709 = vmatprep.mubr.msk.bf16.mxu1 %vm3188_vm1, %v3187_v15  ;;  %v1065_v40 = vsel %vm1063_vm8, %v982_v38, 0 }
 0x3d5   : > { %2719 = vmatprep.subr.bf16.mxu1 %v3187_v15  ;;  %v979_v41 = vpop.f32.mrf.mxu0  ;;  %2690 = vmatpush3.bf16.msra.mxu0 %v1065_v40 }
 0x3d6   : > { %2701 = vmatprep.subr.bf16.mxu0 %v3187_v15 }
 0x3d7   : > { %v2682_v42 = vpop.f32.mrf.mxu0 }
 0x48b   : > { %v1030_v22 = vpop.f32.mrf.mxu1 }
 0x48c   : > { %v1031_v23 = vadd.f32 %v3538_v21, %v1030_v22 }
 0x48d   : > { %v2687_v24 = vpop.f32.mrf.mxu1 }
 0x48e   : > { %v1037_v25 = vsel %vm989_vm7, %v1031_v23, -inf }
 0x48f   : > { %1038 = vmax.xlane.f32.xlu1 %v1037_v25  ;;  %v1033_v26 = vpop.f32.mrf.mxu1 }
 0x490   : > { %v1034_v27 = vadd.f32 %v3538_v21, %v1033_v26 }
 0x491   : > { %v2688_v28 = vpop.f32.mrf.mxu1 }
 0x492   : > { %v1040_v29 = vsel %vm989_vm7, %v1034_v27, -inf  ;;  %v2559_v28 = vld [vmem:[%s3830_s7 + $0x18] sm:$0xff] }
 0x493   : > { %1041 = vmax.xlane.f32.xlu0 %v1040_v29  ;;  %v1156_v30 = vpop.f32.mrf.mxu1 }
 0x494   : > { %v1157_v31 = vadd.f32 %v1156_v30, %v1117_v18 }
 0x495   : > { %v2699_v32 = vpop.f32.mrf.mxu1 }
 0x496   : > { %v1162_v33 = vpack.c.bf16 %v1157_v31, %v1157_v31 }
 0x497   : > { %v1159_v34 = vpop.f32.mrf.mxu1 }
 0x498   : > { %2710 = vmatmul.mubr.msk.bf16.vlgmr.msra.gmra.mxu1 %vm891_vm6, %v1162_v33 }
 0x499   : > { %v2700_v35 = vpop.f32.mrf.mxu1  ;;  %2721 = vmatprep.mubr.msk.bf16.mxu1 %vm3188_vm1, %v3187_v15 }
 0x4a9   : > { %1308 = vrot.lane.b32.xlu0 %v3496_v55, %s3193_s26  ;;  %s3201_s26 = smov 8  }
 0x4ad   : > { %1435 = vperm.xlu0 %2926, %v2549_v36  }
 0x518   : > { %v1039_v43 = vpop.xlane.xlu1 %1038 }
 0x519   : > { %v1043_v44 = vsub.f32 %v1031_v23, %v1039_v43 }
 0x51b   : > { %v1045_v45 = vmul.f32 1.442695, %v1043_v44 }
 0x51c   : > { %v1042_v47 = vpop.xlane.xlu0 %1041 }
 0x51d   : > { %2961 = vpow2.f32 %v1045_v45  ;;  %v1044_v48 = vsub.f32 %v1034_v27, %v1042_v47 }
 0x51f   : > { %v1047_v49 = vmul.f32 1.442695, %v1044_v48 }
 0x520   : > { %v1309_v62 = vpop.permute.xlu0 %1308 }
 0x521   : > { %2963 = vpow2.f32 %v1047_v49 }
 0x528   : > { %v1436_v20 = vpop.permute.xlu0 %1435 }
 0x52a   : > { %v2962_v50 = vpop.eup %2961 }
 0x52b   : > { %v1049_v51 = vsel %vm989_vm7, %v2962_v50, 0.0 }
 0x52c   : > { %1050 = vadd.xlane.f32.xlu1 %v1049_v51 }
 0x52e   : > { %v2964_v52 = vpop.eup %2963 }
 0x52f   : > { %v1052_v53 = vsel %vm989_vm7, %v2964_v52, 0.0 }
 0x530   : > { %1053 = vadd.xlane.f32.xlu1 %v1052_v53 }
 0x541   : > { %1167 = vperm.xlu1 %2927, %v2541_v54  }
 0x545   : > { %1261 = vrot.lane.b32.xlu1 %v3496_v55, %s3194_s30  ;;  %s641_s30 = scalar_lea.vmem [#allocation10], %s2521_s2 }
 0x549   : > { %1533 = vrot.lane.b32.xlu1 %v3496_v55, %s3195_s1  ;;  %s3203_s1 = smov 24  }
 0x558   : > { %v1254_v56 = vpop.f32.mrf.mxu1 }
 0x559   : > { %v1260_v57 = vpack.c.bf16 %v1254_v56, %v1254_v56 }
 0x55a   : > { %v2711_v58 = vpop.f32.mrf.mxu1 }
 0x55b   : > { %v1314_v59 = vsel %vm989_vm7, %v1260_v57, 0 }
 0x55c   : > { %v1257_v60 = vpop.f32.mrf.mxu1  ;;  %2720 = vmatpush3.bf16.xpose.msra.mxu1 %v1314_v59  ;;  %v2557_v59 = vld [vmem:[%s3829_s6 + $0xc] sm:$0xf] }
 0x55d   : > { %2731 = vmatprep.subr.bf16.mxu1 %v3187_v15 }
 0x55e   : > { %v2712_v61 = vpop.f32.mrf.mxu1 }
 0x563   : > { %2722 = vmatmul.mubr.msk.bf16.vlgmr.msra.gmra.mxu1 %vm989_vm7, %v1309_v62 }
 0x564   : > { %2732 = vmatpush3.bf16.xpose.msra.mxu1 %v3481_v46  ;;  %2733 = vmatprep.mubr.msk.bf16.mxu1 %vm3188_vm1, %v3187_v15 }
 0x565   : > { %2743 = vmatprep.subr.bf16.mxu1 %v3187_v15 }
 0x56b   : > { %2734 = vmatmul.mubr.msk.bf16.vlgmr.msra.gmra.mxu1 %vm654_vm0, %v2547_v63 }
 0x56c   : > { %2745 = vmatprep.mubr.msk.bf16.mxu1 %vm3188_vm1, %v3187_v15 }
 0x5b5   : > { %v1051_v0 = vpop.xlane.xlu1 %1050 }
 0x5b6   : > { %2965 = vrcp.f32 %v1051_v0 }
 0x5b9   : > { %v1054_v1 = vpop.xlane.xlu1 %1053 }
 0x5ba   : > { %2967 = vrcp.f32 %v1054_v1 }
 0x5bd   : > { %v1168_v2 = vpop.permute.xlu1 %1167 }
 0x5c1   : > { %v1262_v3 = vpop.permute.xlu1 %1261 }
 0x5c3   : > { %v2966_v4 = vpop.eup %2965 }
 0x5c4   : > { %v1057_v7 = vmul.f32 %v2966_v4, %v2962_v50  ;;  %v2551_v50 = vld [vmem:[%s3832_s9 + $0x10] sm:$0xff] }
 0x5c5   : > { %v1534_v5 = vpop.permute.xlu1 %1533 }
 0x5c6   : > { %2744 = vmatpush3.bf16.msra.mxu1 %v1534_v5 }
 0x5c7   : > { %v2968_v6 = vpop.eup %2967  ;;  %2755 = vmatprep.subr.bf16.mxu1 %v3187_v15 }
 0x5c8   : > { %v1058_v8 = vmul.f32 %v2968_v6, %v2964_v52 }
 0x5ca   : > { %v1059_v9 = vpack.c.bf16 %v1058_v8, %v1057_v7 }
 0x5cc   : > { %2692 = vmatmul.mubr.msk.bf16.vlgmr.msra.gmra.mxu0 %vm989_vm7, %v1059_v9 }
 0x5cd   : > { %2702 = vmatpush3.bf16.xpose.msra.mxu0 %v3481_v46  ;;  %2703 = vmatprep.mubr.msk.bf16.mxu0 %vm3188_vm1, %v3187_v15 }
 0x5ce   : > { %2713 = vmatprep.subr.bf16.mxu0 %v3187_v15 }
 0x5d4   : > { %2704 = vmatmul.mubr.msk.bf16.vlgmr.msra.gmra.mxu0 %vm654_vm0, %v2538_v10 }
 0x5d5   : > { %2714 = vmatpush3.bf16.msra.mxu0 %v1262_v3  ;;  %2715 = vmatprep.mubr.msk.bf16.mxu0 %vm3188_vm1, %v3187_v15 }
 0x5d6   : > { %2725 = vmatprep.subr.bf16.mxu0 %v3187_v15 }
 0x623   : > { %v1350_v11 = vpop.f32.mrf.mxu1 }
 0x624   : > { %v1351_v12 = vadd.f32 %v3538_v21, %v1350_v11  ;;  %v2548_v11 = vld [vmem:[%s3831_s8 + $0x8] sm:$0xf] }
 0x625   : > { %v2723_v13 = vpop.f32.mrf.mxu1 }
 0x626   : > { %v1357_v14 = vsel %vm989_vm7, %v1351_v12, -inf }
 0x627   : > { %1358 = vmax.xlane.f32.xlu0 %v1357_v14  ;;  %v1353_v16 = vpop.f32.mrf.mxu1 }
 0x628   : > { %v1354_v17 = vadd.f32 %v3538_v21, %v1353_v16 }
 0x629   : > { %v2724_v18 = vpop.f32.mrf.mxu1 }
 0x62a   : > { %v1360_v19 = vsel %vm989_vm7, %v1354_v17, -inf }
 0x62b   : > { %1361 = vmax.xlane.f32.xlu1 %v1360_v19  ;;  %v1475_v22 = vpop.f32.mrf.mxu1 }
 0x62c   : > { %v1476_v23 = vadd.f32 %v1475_v22, %v1436_v20 }
 0x62d   : > { %v2735_v24 = vpop.f32.mrf.mxu1 }
 0x62e   : > { %v1481_v25 = vpack.c.bf16 %v1476_v23, %v1476_v23 }
 0x62f   : > { %v1478_v26 = vpop.f32.mrf.mxu1 }
 0x630   : > { %2746 = vmatmul.mubr.msk.bf16.vlgmr.msra.gmra.mxu1 %vm891_vm6, %v1481_v25 }
 0x631   : > { %v2736_v27 = vpop.f32.mrf.mxu1  ;;  %2757 = vmatprep.mubr.msk.bf16.mxu1 %vm3188_vm1, %v3187_v15 }
 0x63c   : > { %1627 = vrot.lane.b32.xlu1 %v3496_v55, %s3196_s19  ;;  %s3200_s19 = smov 40  }
 0x640   : > { %1580 = vrot.lane.b32.xlu1 %v3496_v55, %s3197_s17 }
 0x644   : > { %1754 = vperm.xlu1 %2927, %v2559_v28  }
 0x68c   : > { %v3598_v29 = vpop.f32.mrf.mxu0 }
 0x68e   : > { %v2693_v30 = vpop.f32.mrf.mxu0 }
 0x690   : > { %v3600_v31 = vpop.f32.mrf.mxu0 }
 0x692   : > { %v2694_v32 = vpop.f32.mrf.mxu0 }
 0x694   : > { %v1207_v33 = vpop.f32.mrf.mxu0 }
 0x695   : > { %v1208_v34 = vadd.f32 %v1207_v33, %v1168_v2 }
 0x696   : > { %v2705_v35 = vpop.f32.mrf.mxu0 }
 0x697   : > { %v1213_v36 = vpack.c.bf16 %v1208_v34, %v1208_v34 }
 0x698   : > { %v1210_v37 = vpop.f32.mrf.mxu0 }
 0x699   : > { %2716 = vmatmul.mubr.msk.bf16.vlgmr.msra.gmra.mxu0 %vm891_vm6, %v1213_v36 }
 0x69a   : > { %v2706_v38 = vpop.f32.mrf.mxu0  ;;  %2727 = vmatprep.mubr.msk.bf16.mxu0 %vm3188_vm1, %v3187_v15 }
 0x6b0   : > { %v1359_v39 = vpop.xlane.xlu0 %1358 }
 0x6b1   : > { %v1363_v40 = vsub.f32 %v1351_v12, %v1359_v39 }
 0x6b3   : > { %v1365_v41 = vmul.f32 1.442695, %v1363_v40 }
 0x6b4   : > { %v1362_v42 = vpop.xlane.xlu1 %1361 }
 0x6b5   : > { %2969 = vpow2.f32 %v1365_v41  ;;  %v1364_v43 = vsub.f32 %v1354_v17, %v1362_v42 }
 0x6b7   : > { %v1367_v44 = vmul.f32 1.442695, %v1364_v43 }
 0x6b8   : > { %v1628_v58 = vpop.permute.xlu1 %1627 }
 0x6b9   : > { %2971 = vpow2.f32 %v1367_v44 }
 0x6bc   : > { %v1581_v12 = vpop.permute.xlu1 %1580 }
 0x6c0   : > { %v1755_v23 = vpop.permute.xlu1 %1754 }
 0x6c2   : > { %v2970_v45 = vpop.eup %2969 }
 0x6c3   : > { %v1369_v47 = vsel %vm989_vm7, %v2970_v45, 0.0 }
 0x6c4   : > { %1370 = vadd.xlane.f32.xlu0 %v1369_v47 }
 0x6c6   : > { %v2972_v48 = vpop.eup %2971 }
 0x6c7   : > { %v1372_v49 = vsel %vm989_vm7, %v2972_v48, 0.0 }
 0x6c8   : > { %1373 = vadd.xlane.f32.xlu0 %v1372_v49 }
 0x6de   : > { %1486 = vperm.xlu0 %2926, %v2551_v50  }
 0x6e2   : > { %1852 = vrot.lane.b32.xlu0 %v3496_v55, %s3198_s3  ;;  %s3889_s3 = sld [smem:[#allocation21_spill]] }
 0x6e8   : > { %p3891_p13 = scmp.ne.s32.totalorder %s3889_s3, 0 }
 0x6f0   : > { %v1573_v51 = vpop.f32.mrf.mxu1 }
 0x6f1   : > { %v1579_v52 = vpack.c.bf16 %v1573_v51, %v1573_v51 }
 0x6f2   : > { %v2747_v53 = vpop.f32.mrf.mxu1 }
 0x6f3   : > { %v1633_v54 = vsel %vm989_vm7, %v1579_v52, 0 }
 0x6f4   : > { %v1576_v56 = vpop.f32.mrf.mxu1  ;;  %2756 = vmatpush3.bf16.xpose.msra.mxu1 %v1633_v54  ;;  %v2561_v54 = vld [vmem:[%s3832_s9 + $0x18] sm:$0xff] }
 0x6f5   : > { %2767 = vmatprep.subr.bf16.mxu1 %v3187_v15 }
 0x6f6   : > { %v2748_v57 = vpop.f32.mrf.mxu1 }
 0x6fb   : > { %2758 = vmatmul.mubr.msk.bf16.vlgmr.msra.gmra.mxu1 %vm989_vm7, %v1628_v58 }
 0x6fc   : > { %2768 = vmatpush3.bf16.xpose.msra.mxu1 %v3481_v46  ;;  %2769 = vmatprep.mubr.msk.bf16.mxu1 %vm3188_vm1, %v3187_v15 }
 0x6fd   : > { %2779 = vmatprep.subr.bf16.mxu1 %v3187_v15 }
 0x703   : > { %2770 = vmatmul.mubr.msk.bf16.vlgmr.msra.gmra.mxu1 %vm654_vm0, %v2557_v59 }
 0x704   : > { %2781 = vmatprep.mubr.msk.bf16.mxu1 %vm3188_vm1, %v3187_v15 }
 0x74d   : > { %v1371_v60 = vpop.xlane.xlu0 %1370 }
 0x74e   : > { %2973 = vrcp.f32 %v1371_v60 }
 0x751   : > { %v1374_v61 = vpop.xlane.xlu0 %1373 }
 0x752   : > { %2975 = vrcp.f32 %v1374_v61 }
 0x759   : > { %v1301_v62 = vpop.f32.mrf.mxu0  ;;  %v1487_v63 = vpop.permute.xlu0 %1486 }
 0x75a   : > { %v1307_v0 = vpack.c.bf16 %v1301_v62, %v1301_v62 }
 0x75b   : > { %v2717_v1 = vpop.f32.mrf.mxu0  ;;  %v2974_v3 = vpop.eup %2973 }
 0x75c   : > { %v1384_v2 = vsel %vm1063_vm8, %v1307_v0, 0  ;;  %v1377_v8 = vmul.f32 %v2974_v3, %v2970_v45 }
 0x75d   : > { %v1304_v4 = vpop.f32.mrf.mxu0  ;;  %2726 = vmatpush3.bf16.msra.mxu0 %v1384_v2  ;;  %v1853_v5 = vpop.permute.xlu0 %1852 }
 0x75e   : > { %2780 = vmatpush3.bf16.msra.mxu1 %v1853_v5  ;;  %2737 = vmatprep.subr.bf16.mxu0 %v3187_v15 }
 0x75f   : > { %v2976_v6 = vpop.eup %2975  ;;  %v2718_v7 = vpop.f32.mrf.mxu0  ;;  %2791 = vmatprep.subr.bf16.mxu1 %v3187_v15 }
 0x760   : > { %v1378_v9 = vmul.f32 %v2976_v6, %v2972_v48 }
 0x762   : > { %v1379_v10 = vpack.c.bf16 %v1378_v9, %v1377_v8 }
 0x764   : > { %2728 = vmatmul.mubr.msk.bf16.vlgmr.msra.gmra.mxu0 %vm989_vm7, %v1379_v10 }
 0x765   : > { %2738 = vmatpush3.bf16.xpose.msra.mxu0 %v3481_v46  ;;  %2739 = vmatprep.mubr.msk.bf16.mxu0 %vm3188_vm1, %v3187_v15 }
 0x766   : > { %2749 = vmatprep.subr.bf16.mxu0 %v3187_v15 }
 0x76c   : > { %2740 = vmatmul.mubr.msk.bf16.vlgmr.msra.gmra.mxu0 %vm654_vm0, %v2548_v11 }
 0x76d   : > { %2750 = vmatpush3.bf16.msra.mxu0 %v1581_v12  ;;  %2751 = vmatprep.mubr.msk.bf16.mxu0 %vm3188_vm1, %v3187_v15  ;;  %v2558_v12 = vld [vmem:[%s3831_s8 + $0xc] sm:$0xf] }
 0x76e   : > { %2761 = vmatprep.subr.bf16.mxu0 %v3187_v15 }
 0x7bb   : > { %v1669_v13 = vpop.f32.mrf.mxu1 }
 0x7bc   : > { %v1670_v14 = vadd.f32 %v3538_v21, %v1669_v13 }
 0x7bd   : > { %v2759_v16 = vpop.f32.mrf.mxu1 }
 0x7be   : > { %v1676_v17 = vsel %vm989_vm7, %v1670_v14, -inf }
 0x7bf   : > { %1677 = vmax.xlane.f32.xlu1 %v1676_v17  ;;  %v1672_v18 = vpop.f32.mrf.mxu1 }
 0x7c0   : > { %v1673_v19 = vadd.f32 %v3538_v21, %v1672_v18 }
 0x7c1   : > { %v2760_v20 = vpop.f32.mrf.mxu1 }
 0x7c2   : > { %v1679_v22 = vsel %vm989_vm7, %v1673_v19, -inf }
 0x7c3   : > { %1680 = vmax.xlane.f32.xlu0 %v1679_v22  ;;  %v1794_v24 = vpop.f32.mrf.mxu1 }
 0x7c4   : > { %v1795_v25 = vadd.f32 %v1794_v24, %v1755_v23 }
 0x7c5   : > { %v2771_v26 = vpop.f32.mrf.mxu1 }
 0x7c6   : > { %v1800_v27 = vpack.c.bf16 %v1795_v25, %v1795_v25 }
 0x7c7   : > { %v1797_v28 = vpop.f32.mrf.mxu1 }
 0x7c8   : > { %2782 = vmatmul.mubr.msk.bf16.vlgmr.msra.gmra.mxu1 %vm891_vm6, %v1800_v27 }
 0x7c9   : > { %v2772_v30 = vpop.f32.mrf.mxu1  ;;  %2793 = vmatprep.mubr.msk.bf16.mxu1 %vm3188_vm1, %v3187_v15 }
 0x824   : > { %v3646_v32 = vpop.f32.mrf.mxu0 }
 0x826   : > { %v2729_v33 = vpop.f32.mrf.mxu0 }
 0x828   : > { %v3648_v34 = vpop.f32.mrf.mxu0 }
 0x829   : > { %v2928_v35 = vpack.i.bf16 %v3648_v34, %v3646_v32 }
 0x82a   : > { %v2730_v36 = vpop.f32.mrf.mxu0 }
 0x82c   : > { %v1526_v37 = vpop.f32.mrf.mxu0 }
 0x82d   : > { %v1527_v38 = vadd.f32 %v1526_v37, %v1487_v63 }
 0x82e   : > { %v2741_v39 = vpop.f32.mrf.mxu0 }
 0x82f   : > { %v1532_v40 = vpack.c.bf16 %v1527_v38, %v1527_v38 }
 0x830   : > { %v1529_v41 = vpop.f32.mrf.mxu0 }
 0x831   : > { %2752 = vmatmul.mubr.msk.bf16.vlgmr.msra.gmra.mxu0 %vm891_vm6, %v1532_v40 }
 0x832   : > { %v2742_v42 = vpop.f32.mrf.mxu0  ;;  %2763 = vmatprep.mubr.msk.bf16.mxu0 %vm3188_vm1, %v3187_v15 }
 0x848   : > { %v1678_v43 = vpop.xlane.xlu1 %1677 }
 0x849   : > { %v1682_v44 = vsub.f32 %v1670_v14, %v1678_v43 }
 0x84b   : > { %v1684_v45 = vmul.f32 1.442695, %v1682_v44 }
 0x84c   : > { %v1681_v47 = vpop.xlane.xlu0 %1680 }
 0x84d   : > { %2977 = vpow2.f32 %v1684_v45  ;;  %v1683_v48 = vsub.f32 %v1673_v19, %v1681_v47 }
 0x84f   : > { %v1686_v49 = vmul.f32 1.442695, %v1683_v48 }
 0x851   : > { %2979 = vpow2.f32 %v1686_v49 }
 0x85a   : > { %v2978_v50 = vpop.eup %2977 }
 0x85b   : > { %v1688_v51 = vsel %vm989_vm7, %v2978_v50, 0.0 }
 0x85c   : > { %1689 = vadd.xlane.f32.xlu0 %v1688_v51 }
 0x85e   : > { %v2980_v52 = vpop.eup %2979 }
 0x85f   : > { %v1691_v53 = vsel %vm989_vm7, %v2980_v52, 0.0 }
 0x860   : > { %1692 = vadd.xlane.f32.xlu1 %v1691_v53 }
 0x871   : > { %1805 = vperm.xlu1 %2927, %v2561_v54  }
 0x872   : > { %1946 = vrot.lane.b32.xlu0 %v3496_v55, %s3199_s27 }
 0x875   : > { %1899 = vrot.lane.b32.xlu1 %v3496_v55, %s3200_s19  ;;  %s3204_s19 = smov [#allocation10]  }
 0x876   : > { %s3113_s17 = sshll.u32 %s3204_s19, 4  ;;  %s3114_s17 = int_to_ptr.vmem [resolvable:$false] %s3113_s17 }
 0x877   : > { %s3115_s24 = scalar_lea.vmem %s3114_s17, 512 }
 0x888   : > { %v1892_v56 = vpop.f32.mrf.mxu1 }
 0x889   : > { %v1898_v57 = vpack.c.bf16 %v1892_v56, %v1892_v56 }
 0x88a   : > { %v2783_v58 = vpop.f32.mrf.mxu1 }
 0x88b   : > { %v1952_v59 = vsel %vm989_vm7, %v1898_v57, 0 }
 0x88c   : > { %v1895_v60 = vpop.f32.mrf.mxu1  ;;  %2792 = vmatpush3.bf16.xpose.msra.mxu1 %v1952_v59 }
 0x88d   : > { %2803 = vmatprep.subr.bf16.mxu1 %v3187_v15  ;;  %v2945_v60 = vld [vmem:[%s3833_s10 + $0x8] sm:$0xff]  }
 0x88e   : > { %v2784_v61 = vpop.f32.mrf.mxu1 }
 0x88f   : > { %v2946_v61 = vld [vmem:[%s3833_s10] sm:$0xff]  }
 0x8e5   : > { %v1690_v62 = vpop.xlane.xlu0 %1689 }
 0x8e6   : > { %2981 = vrcp.f32 %v1690_v62 }
 0x8e9   : > { %v1693_v63 = vpop.xlane.xlu1 %1692  ;;  %v1947_v0 = vpop.permute.xlu0 %1946 }
 0x8ea   : > { %2983 = vrcp.f32 %v1693_v63  ;;  %2794 = vmatmul.mubr.msk.bf16.vlgmr.msra.gmra.mxu1 %vm989_vm7, %v1947_v0 }
 0x8eb   : > { %2807 = vmatprep.mubr.msk.bf16.mxu1 %vm3188_vm1, %v3187_v15  ;;  %2804 = vmatpush3.bf16.msra.mxu1 %v2945_v60 }
 0x8ec   : > { %2805 = vmatprep.subr.bf16.mxu1 %v3187_v15 }
 0x8ed   : > { %v1806_v11 = vpop.permute.xlu1 %1805 }
 0x8ef   : > { %2806 = vmatpush3.bf16.msra.mxu1 %v2946_v61 }
 0x8f0   : > { %2819 = vmatprep.subr.bf16.mxu1 %v3187_v15 }
 0x8f1   : > { %v1620_v55 = vpop.f32.mrf.mxu0  ;;  %v1900_v13 = vpop.permute.xlu1 %1899 }
 0x8f2   : > { %v1626_v1 = vpack.c.bf16 %v1620_v55, %v1620_v55 }
 0x8f3   : > { %v2753_v2 = vpop.f32.mrf.mxu0  ;;  %v2982_v4 = vpop.eup %2981 }
 0x8f4   : > { %v1703_v3 = vsel %vm1063_vm8, %v1626_v1, 0  ;;  %v1696_v8 = vmul.f32 %v2982_v4, %v2978_v50 }
 0x8f5   : > { %v1623_v5 = vpop.f32.mrf.mxu0  ;;  %2762 = vmatpush3.bf16.msra.mxu0 %v1703_v3 }
 0x8f6   : > { %2773 = vmatprep.subr.bf16.mxu0 %v3187_v15 }
 0x8f7   : > { %v2984_v6 = vpop.eup %2983  ;;  %v2754_v7 = vpop.f32.mrf.mxu0 }
 0x8f8   : > { %v1697_v9 = vmul.f32 %v2984_v6, %v2980_v52 }
 0x8fa   : > { %v1698_v10 = vpack.c.bf16 %v1697_v9, %v1696_v8 }
 0x8fc   : > { %2764 = vmatmul.mubr.msk.bf16.vlgmr.msra.gmra.mxu0 %vm989_vm7, %v1698_v10 }
 0x8fd   : > { %2774 = vmatpush3.bf16.xpose.msra.mxu0 %v3481_v46  ;;  %2775 = vmatprep.mubr.msk.bf16.mxu0 %vm3188_vm1, %v3187_v15 }
 0x8fe   : > { %2785 = vmatprep.subr.bf16.mxu0 %v3187_v15 }
 0x904   : > { %2776 = vmatmul.mubr.msk.bf16.vlgmr.msra.gmra.mxu0 %vm654_vm0, %v2558_v12 }
 0x905   : > { %2786 = vmatpush3.bf16.msra.mxu0 %v1900_v13  ;;  %2787 = vmatprep.mubr.msk.bf16.mxu0 %vm3188_vm1, %v3187_v15 }
 0x906   : > { %2797 = vmatprep.subr.bf16.mxu0 %v3187_v15 }
 0x9aa   : > { %v1988_v46 = vpop.f32.mrf.mxu1 }
 0x9ab   : > { %v1989_v14 = vadd.f32 %v3538_v21, %v1988_v46 }
 0x9ac   : > { %v2795_v16 = vpop.f32.mrf.mxu1 }
 0x9ad   : > { %v1995_v17 = vsel %vm989_vm7, %v1989_v14, -inf }
 0x9ae   : > { %1996 = vmax.xlane.f32.xlu0 %v1995_v17  ;;  %v1991_v18 = vpop.f32.mrf.mxu1 }
 0x9af   : > { %v1992_v19 = vadd.f32 %v3538_v21, %v1991_v18 }
 0x9b0   : > { %v2796_v20 = vpop.f32.mrf.mxu1 }
 0x9b1   : > { %v1998_v22 = vsel %vm989_vm7, %v1992_v19, -inf  ;;  %v3001_v20 = vld [vmem:[%s3455_s22] sm:$0xff] }
 0x9b2   : > { %1999 = vmax.xlane.f32.xlu1 %v1998_v22 }
 0x9bc   : > { %v1739_v23 = vpop.f32.mrf.mxu0 }
 0x9be   : > { %v2765_v24 = vpop.f32.mrf.mxu0 }
 0x9c0   : > { %v1742_v25 = vpop.f32.mrf.mxu0 }
 0x9c1   : > { %v2933_v26 = vpack.i.bf16 %v1742_v25, %v1739_v23 }
 0x9c2   : > { %v2766_v27 = vpop.f32.mrf.mxu0 }
 0x9c3   : > { %2929 = vrot.lane.b32.xlu1 %v2928_v35, %s3201_s26  ;;  %v3002_v27 = vld [vmem:[%s3455_s22 + $0x8] sm:$0xff]  ;;  %s3890_s22 = sld [smem:[#allocation28_spill]] }
 0x9c4   : > { %v1845_v28 = vpop.f32.mrf.mxu0 }
 0x9c5   : > { %v1846_v30 = vadd.f32 %v1845_v28, %v1806_v11 }
 0x9c6   : > { %v2777_v33 = vpop.f32.mrf.mxu0 }
 0x9c7   : > { %v1851_v36 = vpack.c.bf16 %v1846_v30, %v1846_v30 }
 0x9c8   : > { %v1848_v21 = vpop.f32.mrf.mxu0 }
 0x9c9   : > { %2788 = vmatmul.mubr.msk.bf16.vlgmr.msra.gmra.mxu0 %vm891_vm6, %v1851_v36  ;;  %s3775_s25 = scalar_lea.hbm %s3890_s22, %s2588_s5 }
 0x9ca   : > { %v2778_v37 = vpop.f32.mrf.mxu0  ;;  %2799 = vmatprep.mubr.msk.bf16.mxu0 %vm3188_vm1, %v3187_v15 }
 0xa37   : > { %v1997_v38 = vpop.xlane.xlu0 %1996 }
 0xa38   : > { %v2001_v39 = vsub.f32 %v1989_v14, %v1997_v38 }
 0xa3a   : > { %v2003_v40 = vmul.f32 1.442695, %v2001_v39 }
 0xa3b   : > { %v2000_v41 = vpop.xlane.xlu1 %1999 }
 0xa3c   : > { %2985 = vpow2.f32 %v2003_v40  ;;  %v2002_v42 = vsub.f32 %v1992_v19, %v2000_v41 }
 0xa3e   : > { %v2005_v43 = vmul.f32 1.442695, %v2002_v42 }
 0xa3f   : > { %v2930_v2 = vpop.permute.xlu1 %2929 }
 0xa40   : > { %2987 = vpow2.f32 %v2005_v43  ;;  %v2932_v4 = vunpack.i.h.bf16 %v2930_v2  ;;  %v2931_v5 = vunpack.i.l.bf16 %v2930_v2 }
 0xa42   : > { %v2090_v9 = vsel %vm989_vm7, %v3600_v31, %v2932_v4  ;;  %v2089_v10 = vsel %vm989_vm7, %v3598_v29, %v2931_v5  ;;  %v2567_v31 = vld [vmem:[%s3834_s11] ss:$0 sm:$0xff] }
 0xa49   : > { %v2986_v32 = vpop.eup %2985 }
 0xa4a   : > { %v2007_v34 = vsel %vm989_vm7, %v2986_v32, 0.0 }
 0xa4b   : > { %2008 = vadd.xlane.f32.xlu0 %v2007_v34  ;;  %v2948_v34 = vld [vmem:[%s3837_s14] sm:$0xff]  }
 0xa4d   : > { %v2988_v35 = vpop.eup %2987 }
 0xa4e   : > { %v2010_v44 = vsel %vm989_vm7, %v2988_v35, 0.0 }
 0xa4f   : > { %2011 = vadd.xlane.f32.xlu0 %v2010_v44 }
 0xa65   : > { %2934 = vrot.lane.b32.xlu0 %v2933_v26, %s3202_s23  ;;  %s3888_s23 = sld [smem:[#allocation27_spill]] }
 0xa89   : > { %v1939_v45 = vpop.f32.mrf.mxu0 }
 0xa8a   : > { %v1945_v47 = vpack.c.bf16 %v1939_v45, %v1939_v45 }
 0xa8b   : > { %v2789_v48 = vpop.f32.mrf.mxu0 }
 0xa8c   : > { %v2022_v49 = vsel %vm1063_vm8, %v1945_v47, 0 }
 0xa8d   : > { %v1942_v50 = vpop.f32.mrf.mxu0  ;;  %2798 = vmatpush3.bf16.msra.mxu0 %v2022_v49 }
 0xa8e   : > { %2811 = vmatprep.subr.bf16.mxu0 %v3187_v15 }
 0xa8f   : > { %v2790_v51 = vpop.f32.mrf.mxu0 }
 0xad4   : > { %v2009_v52 = vpop.xlane.xlu0 %2008 }
 0xad5   : > { %2989 = vrcp.f32 %v2009_v52 }
 0xad8   : > { %v2012_v53 = vpop.xlane.xlu0 %2011 }
 0xad9   : > { %2991 = vrcp.f32 %v2012_v53 }
 0xadc   : > { %v2935_v3 = vpop.permute.xlu0 %2934 }
 0xadd   : > { %v2937_v6 = vunpack.i.h.bf16 %v2935_v3  ;;  %v2936_v7 = vunpack.i.l.bf16 %v2935_v3  ;;  %v2572_v3 = vld [vmem:[%s3836_s13] ss:$0 sm:$0xff] }
 0xadf   : > { %v2091_v13 = vsel %vm891_vm6, %v2089_v10, %v2936_v7  ;;  %v2092_v46 = vsel %vm891_vm6, %v2090_v9, %v2937_v6  ;;  %v2951_v9 = vld [vmem:[%s3839_s16 + $0x8] sm:$0xff]   ;;  %v2952_v10 = vld [vmem:[%s3839_s16] sm:$0xff]  }
 0xae2   : > { %v2990_v54 = vpop.eup %2989 }
 0xae3   : > { %v2015_v57 = vmul.f32 %v2990_v54, %v2986_v32  ;;  %v2947_v32 = vld [vmem:[%s3837_s14 + $0x8] sm:$0xff]  }
 0xae6   : > { %v2992_v56 = vpop.eup %2991 }
 0xae7   : > { %v2016_v58 = vmul.f32 %v2992_v56, %v2988_v35  ;;  %v2949_v35 = vld [vmem:[%s3839_s16 + $0x18] sm:$0xff]  }
 0xae9   : > { %v2017_v59 = vpack.c.bf16 %v2016_v58, %v2015_v57 }
 0xaeb   : > { %2800 = vmatmul.mubr.msk.bf16.vlgmr.msra.gmra.mxu0 %vm989_vm7, %v2017_v59 }
 0xaec   : > { %2815 = vmatprep.mubr.msk.bf16.mxu0 %vm3188_vm1, %v3187_v15  ;;  %2812 = vmatpush3.bf16.msra.mxu0 %v2947_v32 }
 0xaed   : > { %2813 = vmatprep.subr.bf16.mxu0 %v3187_v15 }
 0xaf0   : > { %2814 = vmatpush3.bf16.msra.mxu0 %v2948_v34 }
 0xbab   : > { %v2058_v62 = vpop.f32.mrf.mxu0 }
 0xbad   : > { %v2801_v63 = vpop.f32.mrf.mxu0 }
 0xbaf   : > { %v2061_v0 = vpop.f32.mrf.mxu0 }
 0xbb0   : > { %v2938_v55 = vpack.i.bf16 %v2061_v0, %v2058_v62  ;;  %v2571_v62 = vld [vmem:[%s3835_s12] ss:$0 sm:$0xff] }
 0xbb1   : > { %v2802_v1 = vpop.f32.mrf.mxu0 }
 0xbb2   : > { %2939 = vrot.lane.b32.xlu1 %v2938_v55, %s3203_s1  ;;  %s2399_s1 = sshll.u32 %s641_s30, 4  ;;  %s3778_s1 = int_to_ptr.vmem [resolvable:$true] %s2399_s1 }
 0xbb3   : > { %s3109_s27 = scalar_lea.vmem %s3778_s1, 256  ;;  %p3116_p1 = scmp.lt.s32.totalorder %s3778_s1, %s3114_s17 }
 0xbb4   : > { %p3110_p10 = scmp.ne.s32.totalorder %s3778_s1, %s3109_s27  ;;  %p3117_p9 = scmp.lt.s32.totalorder %s3115_s24, %s3109_s27 }
 0xbb6   : > { %p3111_p0 = pnand %p3110_p10, %p3891_p13  ;;  %p3118_p6 = por %p3117_p9, %p3116_p1 }
 0xbb8   : > { %p3112_p5 = pneg %p3111_p0 }
 0xbba   : > { %p3119_p3 = pnand %p3118_p6, %p3112_p5 }
 0xc24   : > { %v2940_v8 = vpop.permute.xlu1 %2939 }
 0xc25   : > { %v2942_v11 = vunpack.i.h.bf16 %v2940_v8  ;;  %v2941_v12 = vunpack.i.l.bf16 %v2940_v8  ;;  %v2950_v8 = vld [vmem:[%s3839_s16 + $0x10] sm:$0xff]  }
 0xc27   : > { %v2094_v14 = vsel %vm2093_vm9, %v2091_v13, %v2941_v12  ;;  %v2095_v16 = vsel %vm2093_vm9, %v2092_v46, %v2942_v11  ;;  %v2573_v11 = vld [vmem:[%s3838_s15] ss:$0 sm:$0xff] }
 0xc28   : > { %v2096_v17 = vpack.c.bf16 %v2095_v16, %v2094_v14 }
 0xc2a   : > { %2808 = vmatmul.mubr.msk.bf16.vlgmr.msra.gmra.mxu1 %vm654_vm0, %v2096_v17 }
 0xc2b   : > { %2827 = vmatprep.mubr.msk.bf16.mxu1 %vm3188_vm1, %v3187_v15  ;;  %2820 = vmatpush3.bf16.msra.mxu1 %v2949_v35 }
 0xc2c   : > { %2821 = vmatprep.subr.bf16.mxu1 %v3187_v15 }
 0xc2f   : > { %2822 = vmatpush3.bf16.msra.mxu1 %v2950_v8 }
 0xc30   : > { %2823 = vmatprep.subr.bf16.mxu1 %v3187_v15 }
 0xc33   : > { %2824 = vmatpush3.bf16.msra.mxu1 %v2951_v9 }
 0xc34   : > { %2825 = vmatprep.subr.bf16.mxu1 %v3187_v15 }
 0xc37   : > { %2826 = vmatpush3.bf16.msra.mxu1 %v2952_v10 }
 0xcea   : > { %v2157_v29 = vpop.f32.mrf.mxu1 }
 0xceb   : > { %v2158_v18 = vadd.f32 %v2567_v31, %v2157_v29 }
 0xcec   : > { %v2809_v19 = vpop.f32.mrf.mxu1 }
 0xced   : > { %v3720_v22 = vadd.f32 %v3001_v20, %v2158_v18  ;;  %v2577_v18 = vld [vmem:[%s3888_s23] ss:$0 sm:$0xff] }
 0xcee   : > { %v2160_v23 = vpop.f32.mrf.mxu1 }
 0xcef   : > { %v2161_v24 = vadd.f32 %v2567_v31, %v2160_v23  ;;  %v2168_v25 = vsel %vm654_vm0, %v3720_v22, 0.0 }
 0xcf0   : > { %2169 = vadd.xlane.f32.xlu1 %v2168_v25  ;;  %v2810_v26 = vpop.f32.mrf.mxu1 }
 0xcf1   : > { %v3725_v28 = vadd.f32 %v3002_v27, %v2161_v24 }
 0xcf3   : > { %v2171_v30 = vsel %vm654_vm0, %v3725_v28, 0.0 }
 0xcf4   : > { %2172 = vadd.xlane.f32.xlu0 %v2171_v30 }
 0xd79   : > { %v2170_v33 = vpop.xlane.xlu1 %2169 }
 0xd7a   : > { %v2174_v36 = vmul.f32 0.03125, %v2170_v33 }
 0xd7c   : > { %v2176_v21 = vsub.f32 %v3720_v22, %v2174_v36 }
 0xd7d   : > { %v2173_v37 = vpop.xlane.xlu0 %2172 }
 0xd7e   : > { %v2175_v38 = vmul.f32 0.03125, %v2173_v37  ;;  %v2178_v39 = vmul.f32 %v2176_v21, %v2176_v21  ;;  %v2214_v0 = vmul.f32 %v2571_v62, %v2176_v21 }
 0xd80   : > { %v2177_v40 = vsub.f32 %v3725_v28, %v2175_v38  ;;  %v2180_v41 = vsel %vm654_vm0, %v2178_v39, 0.0 }
 0xd81   : > { %2181 = vadd.xlane.f32.xlu0 %v2180_v41 }
 0xd82   : > { %v2179_v42 = vmul.f32 %v2177_v40, %v2177_v40  ;;  %v2215_v55 = vmul.f32 %v2571_v62, %v2177_v40 }
 0xd84   : > { %v2183_v43 = vsel %vm654_vm0, %v2179_v42, 0.0 }
 0xd85   : > { %2184 = vadd.xlane.f32.xlu1 %v2183_v43 }
 0xe0a   : > { %v2182_v44 = vpop.xlane.xlu0 %2181 }
 0xe0b   : > { %v2186_v45 = vmul.f32 0.032258064, %v2182_v44 }
 0xe0d   : > { %2993 = vrsqrt.f32 %v2186_v45  ;;  %vm2190_vm10 = vcmp.eq.f32.partialorder %v2186_v45, inf  ;;  %v2193_v51 = vand.u32 2147483648, %v2186_v45  ;;  %vm2192_vm11 = vcmp.eq.f32.partialorder %v2186_v45, 0.0 }
 0xe0e   : > { %v2185_v47 = vpop.xlane.xlu1 %2184 }
 0xe0f   : > { %v2187_v48 = vmul.f32 0.032258064, %v2185_v47 }
 0xe11   : > { %2995 = vrsqrt.f32 %v2187_v48  ;;  %vm2197_vm12 = vcmp.eq.f32.partialorder %v2187_v48, inf  ;;  %v2200_v58 = vand.u32 2147483648, %v2187_v48  ;;  %vm2199_vm13 = vcmp.eq.f32.partialorder %v2187_v48, 0.0 }
 0xe1a   : > { %v2994_v49 = vpop.eup %2993 }
 0xe1b   : > { %v2189_v50 = vmul.f32 %v2994_v49, %v2186_v45 }
 0xe1d   : > { %v2191_v52 = vsel %vm2190_vm10, %v2186_v45, %v2189_v50 }
 0xe1e   : > { %v2996_v53 = vpop.eup %2995  ;;  %v2194_v54 = vsel %vm2192_vm11, %v2193_v51, %v2191_v52 }
 0xe1f   : > { %v2202_v56 = vadd.f32 1e-06, %v2194_v54  ;;  %v2196_v57 = vmul.f32 %v2996_v53, %v2187_v48 }
 0xe21   : > { %2997 = vrcp.f32 %v2202_v56  ;;  %v2198_v59 = vsel %vm2197_vm12, %v2187_v48, %v2196_v57 }
 0xe22   : > { %v2201_v60 = vsel %vm2199_vm13, %v2200_v58, %v2198_v59 }
 0xe23   : > { %v2203_v61 = vadd.f32 1e-06, %v2201_v60 }
 0xe25   : > { %2999 = vrcp.f32 %v2203_v61 }
 0xe2e   : > { %v2998_v63 = vpop.eup %2997 }
 0xe2f   : > { %v2216_v1 = vmul.f32 %v2998_v63, %v2214_v0 }
 0xe31   : > { %v2224_v5 = vadd.f32 %v2572_v3, %v2216_v1 }
 0xe32   : > { %v3000_v2 = vpop.eup %2999 }
 0xe33   : > { %v2217_v4 = vmul.f32 %v3000_v2, %v2215_v55 }
 0xe35   : > { %v2225_v6 = vadd.f32 %v2572_v3, %v2217_v4 }
 0xe37   : > { %v2226_v7 = vpack.c.bf16 %v2225_v6, %v2224_v5 }
 0xe39   : > { %2816 = vmatmul.mubr.msk.bf16.vlgmr.msra.gmra.mxu0 %vm654_vm0, %v2226_v7 }
 0xef9   : > { %v2287_v12 = vpop.f32.mrf.mxu0 }
 0xefa   : > { %v2288_v46 = vadd.f32 %v2573_v11, %v2287_v12 }
 0xefb   : > { %v2817_v13 = vpop.f32.mrf.mxu0 }
 0xefc   : > { %v2294_v31 = vmax.f32 %v2288_v46, 0.0 }
 0xefd   : > { %v2290_v14 = vpop.f32.mrf.mxu0 }
 0xefe   : > { %v2291_v16 = vadd.f32 %v2573_v11, %v2290_v14 }
 0xeff   : > { %v2818_v17 = vpop.f32.mrf.mxu0 }
 0xf00   : > { %v2295_v29 = vmax.f32 %v2291_v16, 0.0 }
 0xf02   : > { %v2296_v15 = vpack.c.bf16 %v2295_v29, %v2294_v31 }
 0xf04   : > { %2828 = vmatmul.mubr.msk.bf16.vlgmr.msra.gmra.mxu1 %vm2336_vm14, %v2296_v15 }
 0xfc4   : > { %v2374_v19 = vpop.f32.mrf.mxu1 }
 0xfc5   : > { %v2375_v20 = vadd.f32 %v2577_v18, %v2374_v19 }
 0xfc6   : > { %v2829_v23 = vpop.f32.mrf.mxu1 }
 0xfc7   : > { %v2381_v24 = vadd.f32 %v2375_v20, %v3720_v22 }
 0xfc8   : > { %v2377_v25 = vpop.f32.mrf.mxu1 }
 0xfc9   : > { %2383 = vst.msk [vmem:[%s641_s30] sm:$0xff] %vm654_vm0, %v2381_v24  ;;  %v2378_v26 = vadd.f32 %v2577_v18, %v2377_v25 }
 0xfca   : > { %v2830_v27 = vpop.f32.mrf.mxu1 }
 0xfcb   : > { %v2382_v30 = vadd.f32 %v2378_v26, %v3725_v28 }
 0xfcd   : > { %2384 = vst.msk [vmem:[%s641_s30 + $0x8] sm:$0xff] %vm654_vm0, %v2382_v30 }
 0xfce   : > { %3122 = shalt.err (!%p3119_p3)
}
 0xfcf   : > { %s3123_s23 = scalar_lea.hbm %s3775_s25, 256  ;;  %s3127_s30 = scalar_lea.hbm %s3890_s22, 512 }
 0xfd0   : > { %p3124_p4 = scmp.ne.s32.totalorder %s3775_s25, %s3123_s23  ;;  %p3128_p11 = scmp.lt.s32.totalorder %s3775_s25, %s3890_s22 }
 0xfd1   : > { %p3129_p7 = scmp.lt.s32.totalorder %s3127_s30, %s3123_s23 }
 0xfd2   : > { %p3125_p8 = pnand %p3124_p4, %p3891_p13 }
 0xfd3   : > { %p3130_p12 = por %p3129_p7, %p3128_p11 }
 0xfd4   : > { %p3126_p2 = pneg %p3125_p8 }
 0xfd6   : > { %p3131_p10 = pnand %p3130_p12, %p3126_p2 }
 0xfd8   : > { %3134 = shalt.err (!%p3131_p10)
}
 0xfd9   : > { %s3205_s27 = smov 128  }
 0xfda   : > { %2845 = dma.vmem_to_hbm [thread:$0]  (%p3891_p13), %s3778_s1, 256, %s3775_s25, %s2386_s0, %s3205_s27, %s3205_s27, %s3201_s26  }
 0xfdb PF: > { %s3892_s19 = sld [smem:[#allocation15_spill]] }
 0xfdc   : > { %s3893_s17 = sld [smem:[#allocation18_spill]] }
 0xfdd   : > { %s3894_s24 = sld [smem:[#allocation17_spill]] }
 0xfe1   : > { %s2414_s2 = sand.u32 1, %s3892_s19  }
 0xfe2   : > { %p3895_p0 = scmp.ne.s32.totalorder %s3893_s17, 0  ;;  %s2415_s23 = scalar_lea.sflag [#allocation4], %s2414_s2 }
 0xfe3   : > { %p3896_p5 = scmp.ge.s32.totalorder %s3894_s24, 2 }
 0xfe5   : > { %p2862_p1 = pnand %p3896_p5, %p3895_p0 }
 0xfe7   : > { %p2863_p9 = pneg %p2862_p1 }
 0xfe9   : > { %3164 = dma.done.wait (%p2863_p9), %s2415_s23, 256  }
 0xfea   : > { %3166 = vsyncadd (%p2863_p9), %s2415_s23, 4294967040  ;;  %s3897_s30 = sld [smem:[#allocation19_spill]]  ;;  %s3900_s27 = smov %s3173_s28 }
 0xfeb   : > { %s3898_s3 = sld [smem:[#allocation16_spill]] }
 0xfec   : > { %s3899_s29 = sld [smem:[#allocation20_spill]] }
 0xff0   : > { %p33_p6 = scmp.ge.s32.totalorder %s3897_s30, 4  }
 0xff1   : > { %s3901_s28 = smov %s3898_s3 }
 0xff2   :  { %35 = sbr.rel (!%p33_p6) target bundleno = 15 (0xf), region = 164 }
 0xff7   :  { %2420 = vsyncpa [#allocation3], 1 }
 0xff8   :  { %2422 = vsyncpa [#allocation3 + $0x1], 1 }
 0xff9   :  { %2423 = vsyncpa [#allocation6], 1 }
 0xffa   :  { %2424 = vsyncpa [#allocation9], 1 }
 0xffb   :  { %2425 = vsyncpa [#allocation4], 1 }
 0xffc   :  { %2427 = vsyncpa [#allocation4 + $0x1], 1 }

</bundles_post_ra>
